<compile_context>
chip_gen: v7x
topology: tpu7x:2x2x1
jax: 0.10.0
libtpu: 0.0.40
codegen_flags: <defaults>
</compile_context>

<pallas_src>
import functools

import jax
import jax.numpy as jnp
from jax import lax
from jax.experimental import pallas as pl
from jax.experimental.pallas import tpu as pltpu


def _round_up(v, m):
    return (v + m - 1) // m * m


def _arnn_kernel(x_ref, wie_ref, be_ref, whe_ref, wid_ref, whd_ref, bd_ref,
                 wo_ref, bo_ref, out_ref, xproj_ref, *, recurrent_dtype):
    """One batch-tile (batch on lanes) of the full A_RNN forward pass."""
    T_in, F, TB = x_ref.shape
    G, H = whe_ref.shape                      # G = 4 * H
    T_out, O, _ = out_ref.shape

    # Fully unroll only short serial loops; long trip counts would blow up code
    # size / vreg live ranges with no latency benefit (data-dependent chain).
    pre_unroll = True if T_in <= 16 else 4
    enc_unroll = True if T_in <= 16 else 4
    dec_unroll = True if T_out <= 16 else 4

    # ---- bulk encoder input projection.  softmax(attn) is already folded into
    # the per-timestep weights wie_ref[t] by the wrapper, so this is just one
    # small matmul + bias per t, entirely off the serial h->h chain.
    be = be_ref[...]                          # (G, 1) broadcasts over lanes

    def xproj_body(t, _):
        xproj_ref[t] = jnp.dot(wie_ref[t], x_ref[t],
                               preferred_element_type=jnp.float32) + be
        return 0

    lax.fori_loop(0, T_in, xproj_body, 0, unroll=pre_unroll)

    # Recurrent weights: cast once to bf16 -> single-pass MXU on the serial path.
    whe = whe_ref[...].astype(recurrent_dtype)              # (G, H)
    wid = wid_ref[...].astype(recurrent_dtype)              # (G, H)
    # Decoder input equals the previous hidden state (autoregressive decode,
    # zero dropout), so the two per-step matmuls fuse algebraically into one.
    # NOTE: this fusion is only valid for that exact configuration.
    w_dec = (wid_ref[...] + whd_ref[...]).astype(recurrent_dtype)

    def cell(gates, c):
        # PyTorch LSTMCell gate order: i, f, g, o.  With gates laid out (4H, TB)
        # these slices are sublane-aligned (H % 8 == 0): no XLU lane relayout
        # sits between the MXU result and the EUP nonlinearities.
        i_g = jax.nn.sigmoid(gates[0 * H:1 * H])
        f_g = jax.nn.sigmoid(gates[1 * H:2 * H])
        g_g = jnp.tanh(gates[2 * H:3 * H])
        o_g = jax.nn.sigmoid(gates[3 * H:4 * H])
        c_new = f_g * c + i_g * g_g
        h_new = o_g * jnp.tanh(c_new)
        return h_new, c_new

    zeros = jnp.zeros((H, TB), jnp.float32)

    # ---- encoder recurrence: only Whh @ h remains serial.
    # TemporalMapper 'last' keeps only the final hidden state (dropout = 0).
    def enc_body(t, carry):
        h, c = carry
        gates = xproj_ref[t] + jnp.dot(whe, h.astype(recurrent_dtype),
                                       preferred_element_type=jnp.float32)
        return cell(gates, c)

    h_enc, _ = lax.fori_loop(0, T_in, enc_body, (zeros, zeros),
                             unroll=enc_unroll)

    # Hoisted broadcasts (JAX does not CSE broadcast_in_dim across iterations).
    bd_b = jnp.broadcast_to(bd_ref[...], (G, TB))
    bo_b = jnp.broadcast_to(bo_ref[...], (O, TB))
    wo = wo_ref[...]                                         # (O, H) f32

    def project(h):
        # Lane-dense (O, TB) result; the store below is full-lane vst.
        return (jnp.dot(wo, h, preferred_element_type=jnp.float32)
                + bo_b).astype(out_ref.dtype)

    # ---- decoder step 0: h = c = 0, input = 'last'-mapped encoder state.
    gates0 = jnp.dot(wid, h_enc.astype(recurrent_dtype),
                     preferred_element_type=jnp.float32) + bd_b
    h_d, c_d = cell(gates0, zeros)
    out_ref[0] = project(h_d)

    # ---- decoder steps t >= 1: one fused matmul per step; the out-projection
    # and the lane-dense store are off the h->h critical path.
    def dec_body(t, carry):
        h, c = carry
        gates = jnp.dot(w_dec, h.astype(recurrent_dtype),
                        preferred_element_type=jnp.float32) + bd_b
        h_new, c_new = cell(gates, c)
        out_ref[t] = project(h_new)
        return (h_new, c_new)

    lax.fori_loop(1, T_out, dec_body, (h_d, c_d), unroll=dec_unroll)


def a_rnn_forward(x, n_temporal_out, params, *, batch_tile=512,
                  recurrent_dtype=jnp.bfloat16):
    """x: (N, T_in, S, F) float32 -> (N, T_out, S, out_size) float32."""
    N, T_in, S, F = x.shape
    B = N * S
    H = params["whe"].shape[0]
    O = params["wo"].shape[1]
    G = 4 * H
    T_out = int(n_temporal_out)
    assert H % 8 == 0, "hidden_size must be a multiple of 8 (sublane-aligned gates)"

    # ---- single-transpose layout plumbing: (N,T,S,F) -> (T_in, F, B),
    # batch on the minor axis (b = n*S + s, matching the module's reshape).
    a = jnp.transpose(x, (1, 3, 0, 2)).reshape(T_in, F, B).astype(jnp.float32)

    # ---- fold softmax(attn) into the per-timestep encoder input weights so the
    # kernel does neither the softmax nor the attention multiply.
    attn_w = jax.nn.softmax(params["attn"].astype(jnp.float32), axis=-1)  # (T_in, F)
    wie_eff = params["wie"].T[None, :, :] * attn_w[:, None, :]            # (T_in, G, F)

    whe_t = params["whe"].T                 # (G, H)
    wid_t = params["wid"].T                 # (G, H)
    whd_t = params["whd"].T                 # (G, H)
    be_c = params["be"].reshape(G, 1)
    bd_c = params["bd"].reshape(G, 1)
    wo_t = params["wo"].T                   # (O, H)
    bo_c = params["bo"].reshape(O, 1)

    # ---- batch tile = lane dim of every recurrent tensor.  Either the whole
    # (8-rounded) batch, or a multiple of 128 (lane-dense stores) chosen so the
    # grid has >= 2 steps (v7x: 2 TensorCores; v5e/v6e: DMA/compute overlap).
    if B <= 256:
        TB = _round_up(B, 8)
    else:
        half = _round_up((B + 1) // 2, 128)
        TB = max(128, min(_round_up(batch_tile, 128), half))

    # Respect VMEM (v7x: 64 MiB / TensorCore): shrink TB if the x-projection
    # scratch plus double-buffered blocks would get too large.
    def _vmem_bytes(tb):
        return 4 * (T_in * G * tb            # xproj scratch
                    + 2 * T_in * F * tb      # x block, double-buffered
                    + 2 * T_out * O * tb)    # out block, double-buffered
    vmem_budget = 48 * 1024 * 1024
    while TB > 128 and _vmem_bytes(TB) > vmem_budget // 2:
        TB = max(128, _round_up(TB // 2, 128))
    # TODO(synk): for very long T_in with a tiny batch, chunk the x-projection
    # scratch over T_in instead of relying on TB reduction alone.

    Bp = _round_up(B, TB)
    if Bp != B:
        a = jnp.pad(a, ((0, 0), (0, 0), (0, Bp - B)))

    kernel = functools.partial(_arnn_kernel, recurrent_dtype=recurrent_dtype)

    out = pl.pallas_call(
        kernel,
        out_shape=jax.ShapeDtypeStruct((T_out, O, Bp), jnp.float32),
        grid_spec=pltpu.PrefetchScalarGridSpec(
            num_scalar_prefetch=0,
            grid=(Bp // TB,),
            in_specs=[
                pl.BlockSpec((T_in, F, TB), lambda b: (0, 0, b)),   # x (t, f, batch)
                pl.BlockSpec((T_in, G, F), lambda b: (0, 0, 0)),    # attn-folded enc W_ih
                pl.BlockSpec((G, 1), lambda b: (0, 0)),             # enc bias (column)
                pl.BlockSpec((G, H), lambda b: (0, 0)),             # enc W_hh
                pl.BlockSpec((G, H), lambda b: (0, 0)),             # dec W_ih
                pl.BlockSpec((G, H), lambda b: (0, 0)),             # dec W_hh
                pl.BlockSpec((G, 1), lambda b: (0, 0)),             # dec bias (column)
                pl.BlockSpec((O, H), lambda b: (0, 0)),             # out_proj W
                pl.BlockSpec((O, 1), lambda b: (0, 0)),             # out_proj bias
            ],
            out_specs=pl.BlockSpec((T_out, O, TB), lambda b: (0, 0, b)),
            scratch_shapes=[
                pltpu.VMEM((T_in, G, TB), jnp.float32),   # bulk enc x-projections
            ],
        ),
        compiler_params=pltpu.CompilerParams(
            dimension_semantics=("parallel",),
            vmem_limit_bytes=min(64 * 1024 * 1024,
                                 max(32 * 1024 * 1024, 8 * _vmem_bytes(TB))),
        ),
    )(a, wie_eff, be_c, whe_t, wid_t, whd_t, bd_c, wo_t, bo_c)

    out = out[:, :, :B]                              # strip batch padding
    out = out.reshape(T_out, O, N, S)
    return jnp.transpose(out, (2, 0, 3, 1))          # (N, T_out, S, O)


def init_params(key, in_size, hidden_size, out_size, n_temporal_in):
    """Deterministic synthetic parameters matching the module's shapes."""
    H = hidden_size
    ks = jax.random.split(key, 10)
    bound = 1.0 / (H ** 0.5)

    def u(k, shape):
        return jax.random.uniform(k, shape, jnp.float32, -bound, bound)

    return {
        # attn parameter is initialized to ones in the module's __init__
        "attn": jnp.ones((n_temporal_in, in_size), jnp.float32),
        # encoder LSTMCell(in_size, H)  (weights stored as x @ W orientation)
        "wie": u(ks[0], (in_size, 4 * H)),
        "whe": u(ks[1], (H, 4 * H)),
        "be": u(ks[2], (1, 4 * H)) + u(ks[3], (1, 4 * H)),   # b_ih + b_hh
        # decoder LSTMCell(H, H)
        "wid": u(ks[4], (H, 4 * H)),
        "whd": u(ks[5], (H, 4 * H)),
        "bd": u(ks[6], (1, 4 * H)) + u(ks[7], (1, 4 * H)),   # b_ih + b_hh
        # out_proj Linear(H, out_size)
        "wo": u(ks[8], (H, out_size)),
        "bo": u(ks[9], (1, out_size)),
    }


def a_rnn_reference(x, n_temporal_out, params):
    """Pure-JAX reference mirroring the PyTorch forward pass (f32)."""
    N, T_in, S, F = x.shape
    B = N * S
    H = params["whe"].shape[0]
    O = params["wo"].shape[1]

    a = jnp.transpose(x, (0, 2, 1, 3)).reshape(B, T_in, F)
    attn_w = jax.nn.softmax(params["attn"], axis=-1)
    a = a * attn_w[None]

    def lstm_step(xt, h, c, wi, wh, b):
        gates = xt @ wi + h @ wh + b
        i = jax.nn.sigmoid(gates[:, :H])
        f = jax.nn.sigmoid(gates[:, H:2 * H])
        g = jnp.tanh(gates[:, 2 * H:3 * H])
        o = jax.nn.sigmoid(gates[:, 3 * H:])
        c = f * c + i * g
        h = o * jnp.tanh(c)
        return h, c

    h = jnp.zeros((B, H), jnp.float32)
    c = jnp.zeros((B, H), jnp.float32)
    for t in range(T_in):
        h, c = lstm_step(a[:, t], h, c, params["wie"], params["whe"], params["be"])

    dec_in = h
    hd = jnp.zeros((B, H), jnp.float32)
    cd = jnp.zeros((B, H), jnp.float32)
    ys = []
    for _ in range(n_temporal_out):
        hd, cd = lstm_step(dec_in, hd, cd, params["wid"], params["whd"], params["bd"])
        dec_in = hd
        ys.append(hd @ params["wo"] + params["bo"])
    y = jnp.stack(ys, axis=1)                      # (B, T_out, O)
    y = y.reshape(N, S, n_temporal_out, O)
    return jnp.transpose(y, (0, 2, 1, 3))          # (N, T_out, S, O)


def _run_case(key, N, T_in, S, F, H, O, T_out, *, batch_tile=512,
              recurrent_dtype=jnp.bfloat16, tol=2e-2):
    k_x, k_p = jax.random.split(key)
    x = jax.random.normal(k_x, (N, T_in, S, F), jnp.float32)
    params = init_params(k_p, F, H, O, T_in)

    y = jax.block_until_ready(
        a_rnn_forward(x, T_out, params, batch_tile=batch_tile,
                      recurrent_dtype=recurrent_dtype))
    assert y.shape == (N, T_out, S, O), y.shape
    assert bool(jnp.all(jnp.isfinite(y)))

    y_ref = jax.block_until_ready(a_rnn_reference(x, T_out, params))
    err = float(jnp.max(jnp.abs(y - y_ref)))
    assert bool(jnp.allclose(y, y_ref, atol=tol, rtol=tol)), err


if __name__ == "__main__":
    key = jax.random.PRNGKey(0)
    k1, k2, k3 = jax.random.split(key, 3)

    # Small shape matching the module's convention
    # (n_samples, n_temporal_in, n_spatial, in_size); f32 recurrence, tight tol.
    _run_case(k1, N=2, T_in=8, S=4, F=8, H=32, O=4, T_out=3,
              recurrent_dtype=jnp.float32, tol=2e-3)

    # Larger batch: default bf16 recurrence, 128-multiple tiles, batch padding,
    # and a 2-step "parallel" grid (v7x megacore path).
    _run_case(k2, N=4, T_in=8, S=90, F=8, H=32, O=4, T_out=3)

    # Same shapes with a smaller explicit batch_tile -> 3-step grid.
    _run_case(k3, N=4, T_in=8, S=90, F=8, H=32, O=4, T_out=3, batch_tile=128)

    print("KERNEL_OK")
</pallas_src>

<mosaic_0001>
module attributes {stable_mosaic.version = 11 : i64} {
  func.func @_arnn_kernel(%arg0: i32, %arg1: memref<8x8x8xf32, #tpu.memory_space<vmem>>, %arg2: memref<8x128x8xf32, #tpu.memory_space<vmem>>, %arg3: memref<128x1xf32, #tpu.memory_space<vmem>>, %arg4: memref<128x32xf32, #tpu.memory_space<vmem>>, %arg5: memref<128x32xf32, #tpu.memory_space<vmem>>, %arg6: memref<128x32xf32, #tpu.memory_space<vmem>>, %arg7: memref<128x1xf32, #tpu.memory_space<vmem>>, %arg8: memref<4x32xf32, #tpu.memory_space<vmem>>, %arg9: memref<4x1xf32, #tpu.memory_space<vmem>>, %arg10: memref<3x4x8xf32, #tpu.memory_space<vmem>>, %arg11: memref<8x128x8xf32, #tpu.memory_space<vmem>>) attributes {dimension_semantics = [#tpu.dimension_semantics<parallel>], iteration_bounds = array<i64: 1>, scalar_prefetch = 0 : i64, scratch_operands = 1 : i64, tpu.core_type = #tpu.core_type<tc>, window_params = [{transform_indices = @transform_0, window_bounds = array<i64: 8, 8, 8>}, {pipeline_mode = #tpu.pipeline_mode<synchronous>, transform_indices = @transform_1, window_bounds = array<i64: 8, 128, 8>}, {pipeline_mode = #tpu.pipeline_mode<synchronous>, transform_indices = @transform_2, window_bounds = array<i64: 128, 1>}, {pipeline_mode = #tpu.pipeline_mode<synchronous>, transform_indices = @transform_3, window_bounds = array<i64: 128, 32>}, {pipeline_mode = #tpu.pipeline_mode<synchronous>, transform_indices = @transform_4, window_bounds = array<i64: 128, 32>}, {pipeline_mode = #tpu.pipeline_mode<synchronous>, transform_indices = @transform_5, window_bounds = array<i64: 128, 32>}, {pipeline_mode = #tpu.pipeline_mode<synchronous>, transform_indices = @transform_6, window_bounds = array<i64: 128, 1>}, {pipeline_mode = #tpu.pipeline_mode<synchronous>, transform_indices = @transform_7, window_bounds = array<i64: 4, 32>}, {pipeline_mode = #tpu.pipeline_mode<synchronous>, transform_indices = @transform_8, window_bounds = array<i64: 4, 1>}, {transform_indices = @transform_9, window_bounds = array<i64: 3, 4, 8>}]} {
    %c0 = arith.constant 0 : index
    %c0_0 = arith.constant 0 : index
    %0 = vector.load %arg3[%c0, %c0_0] : memref<128x1xf32, #tpu.memory_space<vmem>>, vector<128x1xf32>
    %c0_i32 = arith.constant 0 : i32
    %1 = arith.index_cast %c0_i32 : i32 to index
    %c0_1 = arith.constant 0 : index
    %c0_2 = arith.constant 0 : index
    %2 = vector.load %arg2[%1, %c0_1, %c0_2] : memref<8x128x8xf32, #tpu.memory_space<vmem>>, vector<1x128x8xf32>
    %3 = vector.shape_cast %2 : vector<1x128x8xf32> to vector<128x8xf32>
    %4 = arith.index_cast %c0_i32 : i32 to index
    %c0_3 = arith.constant 0 : index
    %c0_4 = arith.constant 0 : index
    %5 = vector.load %arg1[%4, %c0_3, %c0_4] : memref<8x8x8xf32, #tpu.memory_space<vmem>>, vector<1x8x8xf32>
    %6 = vector.shape_cast %5 : vector<1x8x8xf32> to vector<8x8xf32>
    %cst = arith.constant dense<0.000000e+00> : vector<128x8xf32>
    %7 = tpu.matmul %3, %6, %cst {dimension_numbers = #tpu.dot_dimension_numbers<[1], [0], [0], [1], [0, 0, 1, 1], [], []>} : vector<128x8xf32>, vector<8x8xf32>, vector<128x8xf32> -> vector<128x8xf32>
    %8 = vector.broadcast %0 : vector<128x1xf32> to vector<128x8xf32>
    %9 = arith.addf %7, %8 : vector<128x8xf32>
    %10 = arith.index_cast %c0_i32 : i32 to index
    %c0_5 = arith.constant 0 : index
    %c0_6 = arith.constant 0 : index
    %11 = vector.load %arg11[%10, %c0_5, %c0_6] : memref<8x128x8xf32, #tpu.memory_space<vmem>>, vector<1x128x8xf32>
    %12 = vector.shape_cast %11 : vector<1x128x8xf32> to vector<128x8xf32>
    %13 = vector.shape_cast %9 : vector<128x8xf32> to vector<1x128x8xf32>
    tpu.vector_store %arg11[%10, %c0_5, %c0_6], %13 {strides = array<i32>} : memref<8x128x8xf32, #tpu.memory_space<vmem>>, vector<1x128x8xf32>,
    %c1_i32 = arith.constant 1 : i32
    %14 = arith.index_cast %c1_i32 : i32 to index
    %c0_7 = arith.constant 0 : index
    %c0_8 = arith.constant 0 : index
    %15 = vector.load %arg2[%14, %c0_7, %c0_8] : memref<8x128x8xf32, #tpu.memory_space<vmem>>, vector<1x128x8xf32>
    %16 = vector.shape_cast %15 : vector<1x128x8xf32> to vector<128x8xf32>
    %17 = arith.index_cast %c1_i32 : i32 to index
    %c0_9 = arith.constant 0 : index
    %c0_10 = arith.constant 0 : index
    %18 = vector.load %arg1[%17, %c0_9, %c0_10] : memref<8x8x8xf32, #tpu.memory_space<vmem>>, vector<1x8x8xf32>
    %19 = vector.shape_cast %18 : vector<1x8x8xf32> to vector<8x8xf32>
    %cst_11 = arith.constant dense<0.000000e+00> : vector<128x8xf32>
    %20 = tpu.matmul %16, %19, %cst_11 {dimension_numbers = #tpu.dot_dimension_numbers<[1], [0], [0], [1], [0, 0, 1, 1], [], []>} : vector<128x8xf32>, vector<8x8xf32>, vector<128x8xf32> -> vector<128x8xf32>
    %21 = vector.broadcast %0 : vector<128x1xf32> to vector<128x8xf32>
    %22 = arith.addf %20, %21 : vector<128x8xf32>
    %23 = arith.index_cast %c1_i32 : i32 to index
    %c0_12 = arith.constant 0 : index
    %c0_13 = arith.constant 0 : index
    %24 = vector.load %arg11[%23, %c0_12, %c0_13] : memref<8x128x8xf32, #tpu.memory_space<vmem>>, vector<1x128x8xf32>
    %25 = vector.shape_cast %24 : vector<1x128x8xf32> to vector<128x8xf32>
    %26 = vector.shape_cast %22 : vector<128x8xf32> to vector<1x128x8xf32>
    tpu.vector_store %arg11[%23, %c0_12, %c0_13], %26 {strides = array<i32>} : memref<8x128x8xf32, #tpu.memory_space<vmem>>, vector<1x128x8xf32>,
    %c2_i32 = arith.constant 2 : i32
    %27 = arith.index_cast %c2_i32 : i32 to index
    %c0_14 = arith.constant 0 : index
    %c0_15 = arith.constant 0 : index
    %28 = vector.load %arg2[%27, %c0_14, %c0_15] : memref<8x128x8xf32, #tpu.memory_space<vmem>>, vector<1x128x8xf32>
    %29 = vector.shape_cast %28 : vector<1x128x8xf32> to vector<128x8xf32>
    %30 = arith.index_cast %c2_i32 : i32 to index
    %c0_16 = arith.constant 0 : index
    %c0_17 = arith.constant 0 : index
    %31 = vector.load %arg1[%30, %c0_16, %c0_17] : memref<8x8x8xf32, #tpu.memory_space<vmem>>, vector<1x8x8xf32>
    %32 = vector.shape_cast %31 : vector<1x8x8xf32> to vector<8x8xf32>
    %cst_18 = arith.constant dense<0.000000e+00> : vector<128x8xf32>
    %33 = tpu.matmul %29, %32, %cst_18 {dimension_numbers = #tpu.dot_dimension_numbers<[1], [0], [0], [1], [0, 0, 1, 1], [], []>} : vector<128x8xf32>, vector<8x8xf32>, vector<128x8xf32> -> vector<128x8xf32>
    %34 = vector.broadcast %0 : vector<128x1xf32> to vector<128x8xf32>
    %35 = arith.addf %33, %34 : vector<128x8xf32>
    %36 = arith.index_cast %c2_i32 : i32 to index
    %c0_19 = arith.constant 0 : index
    %c0_20 = arith.constant 0 : index
    %37 = vector.load %arg11[%36, %c0_19, %c0_20] : memref<8x128x8xf32, #tpu.memory_space<vmem>>, vector<1x128x8xf32>
    %38 = vector.shape_cast %37 : vector<1x128x8xf32> to vector<128x8xf32>
    %39 = vector.shape_cast %35 : vector<128x8xf32> to vector<1x128x8xf32>
    tpu.vector_store %arg11[%36, %c0_19, %c0_20], %39 {strides = array<i32>} : memref<8x128x8xf32, #tpu.memory_space<vmem>>, vector<1x128x8xf32>,
    %c3_i32 = arith.constant 3 : i32
    %40 = arith.index_cast %c3_i32 : i32 to index
    %c0_21 = arith.constant 0 : index
    %c0_22 = arith.constant 0 : index
    %41 = vector.load %arg2[%40, %c0_21, %c0_22] : memref<8x128x8xf32, #tpu.memory_space<vmem>>, vector<1x128x8xf32>
    %42 = vector.shape_cast %41 : vector<1x128x8xf32> to vector<128x8xf32>
    %43 = arith.index_cast %c3_i32 : i32 to index
    %c0_23 = arith.constant 0 : index
    %c0_24 = arith.constant 0 : index
    %44 = vector.load %arg1[%43, %c0_23, %c0_24] : memref<8x8x8xf32, #tpu.memory_space<vmem>>, vector<1x8x8xf32>
    %45 = vector.shape_cast %44 : vector<1x8x8xf32> to vector<8x8xf32>
    %cst_25 = arith.constant dense<0.000000e+00> : vector<128x8xf32>
    %46 = tpu.matmul %42, %45, %cst_25 {dimension_numbers = #tpu.dot_dimension_numbers<[1], [0], [0], [1], [0, 0, 1, 1], [], []>} : vector<128x8xf32>, vector<8x8xf32>, vector<128x8xf32> -> vector<128x8xf32>
    %47 = vector.broadcast %0 : vector<128x1xf32> to vector<128x8xf32>
    %48 = arith.addf %46, %47 : vector<128x8xf32>
    %49 = arith.index_cast %c3_i32 : i32 to index
    %c0_26 = arith.constant 0 : index
    %c0_27 = arith.constant 0 : index
    %50 = vector.load %arg11[%49, %c0_26, %c0_27] : memref<8x128x8xf32, #tpu.memory_space<vmem>>, vector<1x128x8xf32>
    %51 = vector.shape_cast %50 : vector<1x128x8xf32> to vector<128x8xf32>
    %52 = vector.shape_cast %48 : vector<128x8xf32> to vector<1x128x8xf32>
    tpu.vector_store %arg11[%49, %c0_26, %c0_27], %52 {strides = array<i32>} : memref<8x128x8xf32, #tpu.memory_space<vmem>>, vector<1x128x8xf32>,
    %c4_i32 = arith.constant 4 : i32
    %53 = arith.index_cast %c4_i32 : i32 to index
    %c0_28 = arith.constant 0 : index
    %c0_29 = arith.constant 0 : index
    %54 = vector.load %arg2[%53, %c0_28, %c0_29] : memref<8x128x8xf32, #tpu.memory_space<vmem>>, vector<1x128x8xf32>
    %55 = vector.shape_cast %54 : vector<1x128x8xf32> to vector<128x8xf32>
    %56 = arith.index_cast %c4_i32 : i32 to index
    %c0_30 = arith.constant 0 : index
    %c0_31 = arith.constant 0 : index
    %57 = vector.load %arg1[%56, %c0_30, %c0_31] : memref<8x8x8xf32, #tpu.memory_space<vmem>>, vector<1x8x8xf32>
    %58 = vector.shape_cast %57 : vector<1x8x8xf32> to vector<8x8xf32>
    %cst_32 = arith.constant dense<0.000000e+00> : vector<128x8xf32>
    %59 = tpu.matmul %55, %58, %cst_32 {dimension_numbers = #tpu.dot_dimension_numbers<[1], [0], [0], [1], [0, 0, 1, 1], [], []>} : vector<128x8xf32>, vector<8x8xf32>, vector<128x8xf32> -> vector<128x8xf32>
    %60 = vector.broadcast %0 : vector<128x1xf32> to vector<128x8xf32>
    %61 = arith.addf %59, %60 : vector<128x8xf32>
    %62 = arith.index_cast %c4_i32 : i32 to index
    %c0_33 = arith.constant 0 : index
    %c0_34 = arith.constant 0 : index
    %63 = vector.load %arg11[%62, %c0_33, %c0_34] : memref<8x128x8xf32, #tpu.memory_space<vmem>>, vector<1x128x8xf32>
    %64 = vector.shape_cast %63 : vector<1x128x8xf32> to vector<128x8xf32>
    %65 = vector.shape_cast %61 : vector<128x8xf32> to vector<1x128x8xf32>
    tpu.vector_store %arg11[%62, %c0_33, %c0_34], %65 {strides = array<i32>} : memref<8x128x8xf32, #tpu.memory_space<vmem>>, vector<1x128x8xf32>,
    %c5_i32 = arith.constant 5 : i32
    %66 = arith.index_cast %c5_i32 : i32 to index
    %c0_35 = arith.constant 0 : index
    %c0_36 = arith.constant 0 : index
    %67 = vector.load %arg2[%66, %c0_35, %c0_36] : memref<8x128x8xf32, #tpu.memory_space<vmem>>, vector<1x128x8xf32>
    %68 = vector.shape_cast %67 : vector<1x128x8xf32> to vector<128x8xf32>
    %69 = arith.index_cast %c5_i32 : i32 to index
    %c0_37 = arith.constant 0 : index
    %c0_38 = arith.constant 0 : index
    %70 = vector.load %arg1[%69, %c0_37, %c0_38] : memref<8x8x8xf32, #tpu.memory_space<vmem>>, vector<1x8x8xf32>
    %71 = vector.shape_cast %70 : vector<1x8x8xf32> to vector<8x8xf32>
    %cst_39 = arith.constant dense<0.000000e+00> : vector<128x8xf32>
    %72 = tpu.matmul %68, %71, %cst_39 {dimension_numbers = #tpu.dot_dimension_numbers<[1], [0], [0], [1], [0, 0, 1, 1], [], []>} : vector<128x8xf32>, vector<8x8xf32>, vector<128x8xf32> -> vector<128x8xf32>
    %73 = vector.broadcast %0 : vector<128x1xf32> to vector<128x8xf32>
    %74 = arith.addf %72, %73 : vector<128x8xf32>
    %75 = arith.index_cast %c5_i32 : i32 to index
    %c0_40 = arith.constant 0 : index
    %c0_41 = arith.constant 0 : index
    %76 = vector.load %arg11[%75, %c0_40, %c0_41] : memref<8x128x8xf32, #tpu.memory_space<vmem>>, vector<1x128x8xf32>
    %77 = vector.shape_cast %76 : vector<1x128x8xf32> to vector<128x8xf32>
    %78 = vector.shape_cast %74 : vector<128x8xf32> to vector<1x128x8xf32>
    tpu.vector_store %arg11[%75, %c0_40, %c0_41], %78 {strides = array<i32>} : memref<8x128x8xf32, #tpu.memory_space<vmem>>, vector<1x128x8xf32>,
    %c6_i32 = arith.constant 6 : i32
    %79 = arith.index_cast %c6_i32 : i32 to index
    %c0_42 = arith.constant 0 : index
    %c0_43 = arith.constant 0 : index
    %80 = vector.load %arg2[%79, %c0_42, %c0_43] : memref<8x128x8xf32, #tpu.memory_space<vmem>>, vector<1x128x8xf32>
    %81 = vector.shape_cast %80 : vector<1x128x8xf32> to vector<128x8xf32>
    %82 = arith.index_cast %c6_i32 : i32 to index
    %c0_44 = arith.constant 0 : index
    %c0_45 = arith.constant 0 : index
    %83 = vector.load %arg1[%82, %c0_44, %c0_45] : memref<8x8x8xf32, #tpu.memory_space<vmem>>, vector<1x8x8xf32>
    %84 = vector.shape_cast %83 : vector<1x8x8xf32> to vector<8x8xf32>
    %cst_46 = arith.constant dense<0.000000e+00> : vector<128x8xf32>
    %85 = tpu.matmul %81, %84, %cst_46 {dimension_numbers = #tpu.dot_dimension_numbers<[1], [0], [0], [1], [0, 0, 1, 1], [], []>} : vector<128x8xf32>, vector<8x8xf32>, vector<128x8xf32> -> vector<128x8xf32>
    %86 = vector.broadcast %0 : vector<128x1xf32> to vector<128x8xf32>
    %87 = arith.addf %85, %86 : vector<128x8xf32>
    %88 = arith.index_cast %c6_i32 : i32 to index
    %c0_47 = arith.constant 0 : index
    %c0_48 = arith.constant 0 : index
    %89 = vector.load %arg11[%88, %c0_47, %c0_48] : memref<8x128x8xf32, #tpu.memory_space<vmem>>, vector<1x128x8xf32>
    %90 = vector.shape_cast %89 : vector<1x128x8xf32> to vector<128x8xf32>
    %91 = vector.shape_cast %87 : vector<128x8xf32> to vector<1x128x8xf32>
    tpu.vector_store %arg11[%88, %c0_47, %c0_48], %91 {strides = array<i32>} : memref<8x128x8xf32, #tpu.memory_space<vmem>>, vector<1x128x8xf32>,
    %c7_i32 = arith.constant 7 : i32
    %92 = arith.index_cast %c7_i32 : i32 to index
    %c0_49 = arith.constant 0 : index
    %c0_50 = arith.constant 0 : index
    %93 = vector.load %arg2[%92, %c0_49, %c0_50] : memref<8x128x8xf32, #tpu.memory_space<vmem>>, vector<1x128x8xf32>
    %94 = vector.shape_cast %93 : vector<1x128x8xf32> to vector<128x8xf32>
    %95 = arith.index_cast %c7_i32 : i32 to index
    %c0_51 = arith.constant 0 : index
    %c0_52 = arith.constant 0 : index
    %96 = vector.load %arg1[%95, %c0_51, %c0_52] : memref<8x8x8xf32, #tpu.memory_space<vmem>>, vector<1x8x8xf32>
    %97 = vector.shape_cast %96 : vector<1x8x8xf32> to vector<8x8xf32>
    %cst_53 = arith.constant dense<0.000000e+00> : vector<128x8xf32>
    %98 = tpu.matmul %94, %97, %cst_53 {dimension_numbers = #tpu.dot_dimension_numbers<[1], [0], [0], [1], [0, 0, 1, 1], [], []>} : vector<128x8xf32>, vector<8x8xf32>, vector<128x8xf32> -> vector<128x8xf32>
    %99 = vector.broadcast %0 : vector<128x1xf32> to vector<128x8xf32>
    %100 = arith.addf %98, %99 : vector<128x8xf32>
    %101 = arith.index_cast %c7_i32 : i32 to index
    %c0_54 = arith.constant 0 : index
    %c0_55 = arith.constant 0 : index
    %102 = vector.load %arg11[%101, %c0_54, %c0_55] : memref<8x128x8xf32, #tpu.memory_space<vmem>>, vector<1x128x8xf32>
    %103 = vector.shape_cast %102 : vector<1x128x8xf32> to vector<128x8xf32>
    %104 = vector.shape_cast %100 : vector<128x8xf32> to vector<1x128x8xf32>
    tpu.vector_store %arg11[%101, %c0_54, %c0_55], %104 {strides = array<i32>} : memref<8x128x8xf32, #tpu.memory_space<vmem>>, vector<1x128x8xf32>,
    %c8_i32 = arith.constant 8 : i32
    %c0_56 = arith.constant 0 : index
    %c0_57 = arith.constant 0 : index
    %105 = vector.load %arg4[%c0_56, %c0_57] : memref<128x32xf32, #tpu.memory_space<vmem>>, vector<128x32xf32>
    %c0_58 = arith.constant 0 : index
    %c0_59 = arith.constant 0 : index
    %106 = vector.load %arg5[%c0_58, %c0_59] : memref<128x32xf32, #tpu.memory_space<vmem>>, vector<128x32xf32>
    %c0_60 = arith.constant 0 : index
    %c0_61 = arith.constant 0 : index
    %107 = vector.load %arg5[%c0_60, %c0_61] : memref<128x32xf32, #tpu.memory_space<vmem>>, vector<128x32xf32>
    %c0_62 = arith.constant 0 : index
    %c0_63 = arith.constant 0 : index
    %108 = vector.load %arg6[%c0_62, %c0_63] : memref<128x32xf32, #tpu.memory_space<vmem>>, vector<128x32xf32>
    %109 = arith.addf %107, %108 : vector<128x32xf32>
    %cst_64 = arith.constant 0.000000e+00 : f32
    %110 = vector.broadcast %cst_64 : f32 to vector<32x8xf32>
    %c0_i32_65 = arith.constant 0 : i32
    %111 = arith.index_cast %c0_i32_65 : i32 to index
    %c0_66 = arith.constant 0 : index
    %c0_67 = arith.constant 0 : index
    %112 = vector.load %arg11[%111, %c0_66, %c0_67] : memref<8x128x8xf32, #tpu.memory_space<vmem>>, vector<1x128x8xf32>
    %113 = vector.shape_cast %112 : vector<1x128x8xf32> to vector<128x8xf32>
    %cst_68 = arith.constant dense<0.000000e+00> : vector<128x8xf32>
    %114 = tpu.matmul %105, %110, %cst_68 {dimension_numbers = #tpu.dot_dimension_numbers<[1], [0], [0], [1], [0, 0, 1, 1], [], []>} : vector<128x32xf32>, vector<32x8xf32>, vector<128x8xf32> -> vector<128x8xf32>
    %115 = arith.addf %113, %114 : vector<128x8xf32>
    %116 = vector.extract_strided_slice %115 {offsets = [0, 0], sizes = [32, 8], strides = [1, 1]} : vector<128x8xf32> to vector<32x8xf32>
    %117 = arith.negf %116 : vector<32x8xf32>
    %118 = math.exp %117 : vector<32x8xf32>
    %cst_69 = arith.constant 1.000000e+00 : f32
    %119 = vector.broadcast %cst_69 : f32 to vector<32x8xf32>
    %120 = arith.addf %119, %118 : vector<32x8xf32>
    %121 = arith.divf %119, %120 : vector<32x8xf32>
    %122 = vector.extract_strided_slice %115 {offsets = [32, 0], sizes = [32, 8], strides = [1, 1]} : vector<128x8xf32> to vector<32x8xf32>
    %123 = arith.negf %122 : vector<32x8xf32>
    %124 = math.exp %123 : vector<32x8xf32>
    %cst_70 = arith.constant 1.000000e+00 : f32
    %125 = vector.broadcast %cst_70 : f32 to vector<32x8xf32>
    %126 = arith.addf %125, %124 : vector<32x8xf32>
    %127 = arith.divf %125, %126 : vector<32x8xf32>
    %128 = vector.extract_strided_slice %115 {offsets = [64, 0], sizes = [32, 8], strides = [1, 1]} : vector<128x8xf32> to vector<32x8xf32>
    %129 = math.tanh %128 : vector<32x8xf32>
    %130 = vector.extract_strided_slice %115 {offsets = [96, 0], sizes = [32, 8], strides = [1, 1]} : vector<128x8xf32> to vector<32x8xf32>
    %131 = arith.negf %130 : vector<32x8xf32>
    %132 = math.exp %131 : vector<32x8xf32>
    %cst_71 = arith.constant 1.000000e+00 : f32
    %133 = vector.broadcast %cst_71 : f32 to vector<32x8xf32>
    %134 = arith.addf %133, %132 : vector<32x8xf32>
    %135 = arith.divf %133, %134 : vector<32x8xf32>
    %136 = arith.mulf %127, %110 : vector<32x8xf32>
    %137 = arith.mulf %121, %129 : vector<32x8xf32>
    %138 = arith.addf %136, %137 : vector<32x8xf32>
    %139 = math.tanh %138 : vector<32x8xf32>
    %140 = arith.mulf %135, %139 : vector<32x8xf32>
    %c1_i32_72 = arith.constant 1 : i32
    %141 = arith.index_cast %c1_i32_72 : i32 to index
    %c0_73 = arith.constant 0 : index
    %c0_74 = arith.constant 0 : index
    %142 = vector.load %arg11[%141, %c0_73, %c0_74] : memref<8x128x8xf32, #tpu.memory_space<vmem>>, vector<1x128x8xf32>
    %143 = vector.shape_cast %142 : vector<1x128x8xf32> to vector<128x8xf32>
    %cst_75 = arith.constant dense<0.000000e+00> : vector<128x8xf32>
    %144 = tpu.matmul %105, %140, %cst_75 {dimension_numbers = #tpu.dot_dimension_numbers<[1], [0], [0], [1], [0, 0, 1, 1], [], []>} : vector<128x32xf32>, vector<32x8xf32>, vector<128x8xf32> -> vector<128x8xf32>
    %145 = arith.addf %143, %144 : vector<128x8xf32>
    %146 = vector.extract_strided_slice %145 {offsets = [0, 0], sizes = [32, 8], strides = [1, 1]} : vector<128x8xf32> to vector<32x8xf32>
    %147 = arith.negf %146 : vector<32x8xf32>
    %148 = math.exp %147 : vector<32x8xf32>
    %cst_76 = arith.constant 1.000000e+00 : f32
    %149 = vector.broadcast %cst_76 : f32 to vector<32x8xf32>
    %150 = arith.addf %149, %148 : vector<32x8xf32>
    %151 = arith.divf %149, %150 : vector<32x8xf32>
    %152 = vector.extract_strided_slice %145 {offsets = [32, 0], sizes = [32, 8], strides = [1, 1]} : vector<128x8xf32> to vector<32x8xf32>
    %153 = arith.negf %152 : vector<32x8xf32>
    %154 = math.exp %153 : vector<32x8xf32>
    %cst_77 = arith.constant 1.000000e+00 : f32
    %155 = vector.broadcast %cst_77 : f32 to vector<32x8xf32>
    %156 = arith.addf %155, %154 : vector<32x8xf32>
    %157 = arith.divf %155, %156 : vector<32x8xf32>
    %158 = vector.extract_strided_slice %145 {offsets = [64, 0], sizes = [32, 8], strides = [1, 1]} : vector<128x8xf32> to vector<32x8xf32>
    %159 = math.tanh %158 : vector<32x8xf32>
    %160 = vector.extract_strided_slice %145 {offsets = [96, 0], sizes = [32, 8], strides = [1, 1]} : vector<128x8xf32> to vector<32x8xf32>
    %161 = arith.negf %160 : vector<32x8xf32>
    %162 = math.exp %161 : vector<32x8xf32>
    %cst_78 = arith.constant 1.000000e+00 : f32
    %163 = vector.broadcast %cst_78 : f32 to vector<32x8xf32>
    %164 = arith.addf %163, %162 : vector<32x8xf32>
    %165 = arith.divf %163, %164 : vector<32x8xf32>
    %166 = arith.mulf %157, %138 : vector<32x8xf32>
    %167 = arith.mulf %151, %159 : vector<32x8xf32>
    %168 = arith.addf %166, %167 : vector<32x8xf32>
    %169 = math.tanh %168 : vector<32x8xf32>
    %170 = arith.mulf %165, %169 : vector<32x8xf32>
    %c2_i32_79 = arith.constant 2 : i32
    %171 = arith.index_cast %c2_i32_79 : i32 to index
    %c0_80 = arith.constant 0 : index
    %c0_81 = arith.constant 0 : index
    %172 = vector.load %arg11[%171, %c0_80, %c0_81] : memref<8x128x8xf32, #tpu.memory_space<vmem>>, vector<1x128x8xf32>
    %173 = vector.shape_cast %172 : vector<1x128x8xf32> to vector<128x8xf32>
    %cst_82 = arith.constant dense<0.000000e+00> : vector<128x8xf32>
    %174 = tpu.matmul %105, %170, %cst_82 {dimension_numbers = #tpu.dot_dimension_numbers<[1], [0], [0], [1], [0, 0, 1, 1], [], []>} : vector<128x32xf32>, vector<32x8xf32>, vector<128x8xf32> -> vector<128x8xf32>
    %175 = arith.addf %173, %174 : vector<128x8xf32>
    %176 = vector.extract_strided_slice %175 {offsets = [0, 0], sizes = [32, 8], strides = [1, 1]} : vector<128x8xf32> to vector<32x8xf32>
    %177 = arith.negf %176 : vector<32x8xf32>
    %178 = math.exp %177 : vector<32x8xf32>
    %cst_83 = arith.constant 1.000000e+00 : f32
    %179 = vector.broadcast %cst_83 : f32 to vector<32x8xf32>
    %180 = arith.addf %179, %178 : vector<32x8xf32>
    %181 = arith.divf %179, %180 : vector<32x8xf32>
    %182 = vector.extract_strided_slice %175 {offsets = [32, 0], sizes = [32, 8], strides = [1, 1]} : vector<128x8xf32> to vector<32x8xf32>
    %183 = arith.negf %182 : vector<32x8xf32>
    %184 = math.exp %183 : vector<32x8xf32>
    %cst_84 = arith.constant 1.000000e+00 : f32
    %185 = vector.broadcast %cst_84 : f32 to vector<32x8xf32>
    %186 = arith.addf %185, %184 : vector<32x8xf32>
    %187 = arith.divf %185, %186 : vector<32x8xf32>
    %188 = vector.extract_strided_slice %175 {offsets = [64, 0], sizes = [32, 8], strides = [1, 1]} : vector<128x8xf32> to vector<32x8xf32>
    %189 = math.tanh %188 : vector<32x8xf32>
    %190 = vector.extract_strided_slice %175 {offsets = [96, 0], sizes = [32, 8], strides = [1, 1]} : vector<128x8xf32> to vector<32x8xf32>
    %191 = arith.negf %190 : vector<32x8xf32>
    %192 = math.exp %191 : vector<32x8xf32>
    %cst_85 = arith.constant 1.000000e+00 : f32
    %193 = vector.broadcast %cst_85 : f32 to vector<32x8xf32>
    %194 = arith.addf %193, %192 : vector<32x8xf32>
    %195 = arith.divf %193, %194 : vector<32x8xf32>
    %196 = arith.mulf %187, %168 : vector<32x8xf32>
    %197 = arith.mulf %181, %189 : vector<32x8xf32>
    %198 = arith.addf %196, %197 : vector<32x8xf32>
    %199 = math.tanh %198 : vector<32x8xf32>
    %200 = arith.mulf %195, %199 : vector<32x8xf32>
    %c3_i32_86 = arith.constant 3 : i32
    %201 = arith.index_cast %c3_i32_86 : i32 to index
    %c0_87 = arith.constant 0 : index
    %c0_88 = arith.constant 0 : index
    %202 = vector.load %arg11[%201, %c0_87, %c0_88] : memref<8x128x8xf32, #tpu.memory_space<vmem>>, vector<1x128x8xf32>
    %203 = vector.shape_cast %202 : vector<1x128x8xf32> to vector<128x8xf32>
    %cst_89 = arith.constant dense<0.000000e+00> : vector<128x8xf32>
    %204 = tpu.matmul %105, %200, %cst_89 {dimension_numbers = #tpu.dot_dimension_numbers<[1], [0], [0], [1], [0, 0, 1, 1], [], []>} : vector<128x32xf32>, vector<32x8xf32>, vector<128x8xf32> -> vector<128x8xf32>
    %205 = arith.addf %203, %204 : vector<128x8xf32>
    %206 = vector.extract_strided_slice %205 {offsets = [0, 0], sizes = [32, 8], strides = [1, 1]} : vector<128x8xf32> to vector<32x8xf32>
    %207 = arith.negf %206 : vector<32x8xf32>
    %208 = math.exp %207 : vector<32x8xf32>
    %cst_90 = arith.constant 1.000000e+00 : f32
    %209 = vector.broadcast %cst_90 : f32 to vector<32x8xf32>
    %210 = arith.addf %209, %208 : vector<32x8xf32>
    %211 = arith.divf %209, %210 : vector<32x8xf32>
    %212 = vector.extract_strided_slice %205 {offsets = [32, 0], sizes = [32, 8], strides = [1, 1]} : vector<128x8xf32> to vector<32x8xf32>
    %213 = arith.negf %212 : vector<32x8xf32>
    %214 = math.exp %213 : vector<32x8xf32>
    %cst_91 = arith.constant 1.000000e+00 : f32
    %215 = vector.broadcast %cst_91 : f32 to vector<32x8xf32>
    %216 = arith.addf %215, %214 : vector<32x8xf32>
    %217 = arith.divf %215, %216 : vector<32x8xf32>
    %218 = vector.extract_strided_slice %205 {offsets = [64, 0], sizes = [32, 8], strides = [1, 1]} : vector<128x8xf32> to vector<32x8xf32>
    %219 = math.tanh %218 : vector<32x8xf32>
    %220 = vector.extract_strided_slice %205 {offsets = [96, 0], sizes = [32, 8], strides = [1, 1]} : vector<128x8xf32> to vector<32x8xf32>
    %221 = arith.negf %220 : vector<32x8xf32>
    %222 = math.exp %221 : vector<32x8xf32>
    %cst_92 = arith.constant 1.000000e+00 : f32
    %223 = vector.broadcast %cst_92 : f32 to vector<32x8xf32>
    %224 = arith.addf %223, %222 : vector<32x8xf32>
    %225 = arith.divf %223, %224 : vector<32x8xf32>
    %226 = arith.mulf %217, %198 : vector<32x8xf32>
    %227 = arith.mulf %211, %219 : vector<32x8xf32>
    %228 = arith.addf %226, %227 : vector<32x8xf32>
    %229 = math.tanh %228 : vector<32x8xf32>
    %230 = arith.mulf %225, %229 : vector<32x8xf32>
    %c4_i32_93 = arith.constant 4 : i32
    %231 = arith.index_cast %c4_i32_93 : i32 to index
    %c0_94 = arith.constant 0 : index
    %c0_95 = arith.constant 0 : index
    %232 = vector.load %arg11[%231, %c0_94, %c0_95] : memref<8x128x8xf32, #tpu.memory_space<vmem>>, vector<1x128x8xf32>
    %233 = vector.shape_cast %232 : vector<1x128x8xf32> to vector<128x8xf32>
    %cst_96 = arith.constant dense<0.000000e+00> : vector<128x8xf32>
    %234 = tpu.matmul %105, %230, %cst_96 {dimension_numbers = #tpu.dot_dimension_numbers<[1], [0], [0], [1], [0, 0, 1, 1], [], []>} : vector<128x32xf32>, vector<32x8xf32>, vector<128x8xf32> -> vector<128x8xf32>
    %235 = arith.addf %233, %234 : vector<128x8xf32>
    %236 = vector.extract_strided_slice %235 {offsets = [0, 0], sizes = [32, 8], strides = [1, 1]} : vector<128x8xf32> to vector<32x8xf32>
    %237 = arith.negf %236 : vector<32x8xf32>
    %238 = math.exp %237 : vector<32x8xf32>
    %cst_97 = arith.constant 1.000000e+00 : f32
    %239 = vector.broadcast %cst_97 : f32 to vector<32x8xf32>
    %240 = arith.addf %239, %238 : vector<32x8xf32>
    %241 = arith.divf %239, %240 : vector<32x8xf32>
    %242 = vector.extract_strided_slice %235 {offsets = [32, 0], sizes = [32, 8], strides = [1, 1]} : vector<128x8xf32> to vector<32x8xf32>
    %243 = arith.negf %242 : vector<32x8xf32>
    %244 = math.exp %243 : vector<32x8xf32>
    %cst_98 = arith.constant 1.000000e+00 : f32
    %245 = vector.broadcast %cst_98 : f32 to vector<32x8xf32>
    %246 = arith.addf %245, %244 : vector<32x8xf32>
    %247 = arith.divf %245, %246 : vector<32x8xf32>
    %248 = vector.extract_strided_slice %235 {offsets = [64, 0], sizes = [32, 8], strides = [1, 1]} : vector<128x8xf32> to vector<32x8xf32>
    %249 = math.tanh %248 : vector<32x8xf32>
    %250 = vector.extract_strided_slice %235 {offsets = [96, 0], sizes = [32, 8], strides = [1, 1]} : vector<128x8xf32> to vector<32x8xf32>
    %251 = arith.negf %250 : vector<32x8xf32>
    %252 = math.exp %251 : vector<32x8xf32>
    %cst_99 = arith.constant 1.000000e+00 : f32
    %253 = vector.broadcast %cst_99 : f32 to vector<32x8xf32>
    %254 = arith.addf %253, %252 : vector<32x8xf32>
    %255 = arith.divf %253, %254 : vector<32x8xf32>
    %256 = arith.mulf %247, %228 : vector<32x8xf32>
    %257 = arith.mulf %241, %249 : vector<32x8xf32>
    %258 = arith.addf %256, %257 : vector<32x8xf32>
    %259 = math.tanh %258 : vector<32x8xf32>
    %260 = arith.mulf %255, %259 : vector<32x8xf32>
    %c5_i32_100 = arith.constant 5 : i32
    %261 = arith.index_cast %c5_i32_100 : i32 to index
    %c0_101 = arith.constant 0 : index
    %c0_102 = arith.constant 0 : index
    %262 = vector.load %arg11[%261, %c0_101, %c0_102] : memref<8x128x8xf32, #tpu.memory_space<vmem>>, vector<1x128x8xf32>
    %263 = vector.shape_cast %262 : vector<1x128x8xf32> to vector<128x8xf32>
    %cst_103 = arith.constant dense<0.000000e+00> : vector<128x8xf32>
    %264 = tpu.matmul %105, %260, %cst_103 {dimension_numbers = #tpu.dot_dimension_numbers<[1], [0], [0], [1], [0, 0, 1, 1], [], []>} : vector<128x32xf32>, vector<32x8xf32>, vector<128x8xf32> -> vector<128x8xf32>
    %265 = arith.addf %263, %264 : vector<128x8xf32>
    %266 = vector.extract_strided_slice %265 {offsets = [0, 0], sizes = [32, 8], strides = [1, 1]} : vector<128x8xf32> to vector<32x8xf32>
    %267 = arith.negf %266 : vector<32x8xf32>
    %268 = math.exp %267 : vector<32x8xf32>
    %cst_104 = arith.constant 1.000000e+00 : f32
    %269 = vector.broadcast %cst_104 : f32 to vector<32x8xf32>
    %270 = arith.addf %269, %268 : vector<32x8xf32>
    %271 = arith.divf %269, %270 : vector<32x8xf32>
    %272 = vector.extract_strided_slice %265 {offsets = [32, 0], sizes = [32, 8], strides = [1, 1]} : vector<128x8xf32> to vector<32x8xf32>
    %273 = arith.negf %272 : vector<32x8xf32>
    %274 = math.exp %273 : vector<32x8xf32>
    %cst_105 = arith.constant 1.000000e+00 : f32
    %275 = vector.broadcast %cst_105 : f32 to vector<32x8xf32>
    %276 = arith.addf %275, %274 : vector<32x8xf32>
    %277 = arith.divf %275, %276 : vector<32x8xf32>
    %278 = vector.extract_strided_slice %265 {offsets = [64, 0], sizes = [32, 8], strides = [1, 1]} : vector<128x8xf32> to vector<32x8xf32>
    %279 = math.tanh %278 : vector<32x8xf32>
    %280 = vector.extract_strided_slice %265 {offsets = [96, 0], sizes = [32, 8], strides = [1, 1]} : vector<128x8xf32> to vector<32x8xf32>
    %281 = arith.negf %280 : vector<32x8xf32>
    %282 = math.exp %281 : vector<32x8xf32>
    %cst_106 = arith.constant 1.000000e+00 : f32
    %283 = vector.broadcast %cst_106 : f32 to vector<32x8xf32>
    %284 = arith.addf %283, %282 : vector<32x8xf32>
    %285 = arith.divf %283, %284 : vector<32x8xf32>
    %286 = arith.mulf %277, %258 : vector<32x8xf32>
    %287 = arith.mulf %271, %279 : vector<32x8xf32>
    %288 = arith.addf %286, %287 : vector<32x8xf32>
    %289 = math.tanh %288 : vector<32x8xf32>
    %290 = arith.mulf %285, %289 : vector<32x8xf32>
    %c6_i32_107 = arith.constant 6 : i32
    %291 = arith.index_cast %c6_i32_107 : i32 to index
    %c0_108 = arith.constant 0 : index
    %c0_109 = arith.constant 0 : index
    %292 = vector.load %arg11[%291, %c0_108, %c0_109] : memref<8x128x8xf32, #tpu.memory_space<vmem>>, vector<1x128x8xf32>
    %293 = vector.shape_cast %292 : vector<1x128x8xf32> to vector<128x8xf32>
    %cst_110 = arith.constant dense<0.000000e+00> : vector<128x8xf32>
    %294 = tpu.matmul %105, %290, %cst_110 {dimension_numbers = #tpu.dot_dimension_numbers<[1], [0], [0], [1], [0, 0, 1, 1], [], []>} : vector<128x32xf32>, vector<32x8xf32>, vector<128x8xf32> -> vector<128x8xf32>
    %295 = arith.addf %293, %294 : vector<128x8xf32>
    %296 = vector.extract_strided_slice %295 {offsets = [0, 0], sizes = [32, 8], strides = [1, 1]} : vector<128x8xf32> to vector<32x8xf32>
    %297 = arith.negf %296 : vector<32x8xf32>
    %298 = math.exp %297 : vector<32x8xf32>
    %cst_111 = arith.constant 1.000000e+00 : f32
    %299 = vector.broadcast %cst_111 : f32 to vector<32x8xf32>
    %300 = arith.addf %299, %298 : vector<32x8xf32>
    %301 = arith.divf %299, %300 : vector<32x8xf32>
    %302 = vector.extract_strided_slice %295 {offsets = [32, 0], sizes = [32, 8], strides = [1, 1]} : vector<128x8xf32> to vector<32x8xf32>
    %303 = arith.negf %302 : vector<32x8xf32>
    %304 = math.exp %303 : vector<32x8xf32>
    %cst_112 = arith.constant 1.000000e+00 : f32
    %305 = vector.broadcast %cst_112 : f32 to vector<32x8xf32>
    %306 = arith.addf %305, %304 : vector<32x8xf32>
    %307 = arith.divf %305, %306 : vector<32x8xf32>
    %308 = vector.extract_strided_slice %295 {offsets = [64, 0], sizes = [32, 8], strides = [1, 1]} : vector<128x8xf32> to vector<32x8xf32>
    %309 = math.tanh %308 : vector<32x8xf32>
    %310 = vector.extract_strided_slice %295 {offsets = [96, 0], sizes = [32, 8], strides = [1, 1]} : vector<128x8xf32> to vector<32x8xf32>
    %311 = arith.negf %310 : vector<32x8xf32>
    %312 = math.exp %311 : vector<32x8xf32>
    %cst_113 = arith.constant 1.000000e+00 : f32
    %313 = vector.broadcast %cst_113 : f32 to vector<32x8xf32>
    %314 = arith.addf %313, %312 : vector<32x8xf32>
    %315 = arith.divf %313, %314 : vector<32x8xf32>
    %316 = arith.mulf %307, %288 : vector<32x8xf32>
    %317 = arith.mulf %301, %309 : vector<32x8xf32>
    %318 = arith.addf %316, %317 : vector<32x8xf32>
    %319 = math.tanh %318 : vector<32x8xf32>
    %320 = arith.mulf %315, %319 : vector<32x8xf32>
    %c7_i32_114 = arith.constant 7 : i32
    %321 = arith.index_cast %c7_i32_114 : i32 to index
    %c0_115 = arith.constant 0 : index
    %c0_116 = arith.constant 0 : index
    %322 = vector.load %arg11[%321, %c0_115, %c0_116] : memref<8x128x8xf32, #tpu.memory_space<vmem>>, vector<1x128x8xf32>
    %323 = vector.shape_cast %322 : vector<1x128x8xf32> to vector<128x8xf32>
    %cst_117 = arith.constant dense<0.000000e+00> : vector<128x8xf32>
    %324 = tpu.matmul %105, %320, %cst_117 {dimension_numbers = #tpu.dot_dimension_numbers<[1], [0], [0], [1], [0, 0, 1, 1], [], []>} : vector<128x32xf32>, vector<32x8xf32>, vector<128x8xf32> -> vector<128x8xf32>
    %325 = arith.addf %323, %324 : vector<128x8xf32>
    %326 = vector.extract_strided_slice %325 {offsets = [0, 0], sizes = [32, 8], strides = [1, 1]} : vector<128x8xf32> to vector<32x8xf32>
    %327 = arith.negf %326 : vector<32x8xf32>
    %328 = math.exp %327 : vector<32x8xf32>
    %cst_118 = arith.constant 1.000000e+00 : f32
    %329 = vector.broadcast %cst_118 : f32 to vector<32x8xf32>
    %330 = arith.addf %329, %328 : vector<32x8xf32>
    %331 = arith.divf %329, %330 : vector<32x8xf32>
    %332 = vector.extract_strided_slice %325 {offsets = [32, 0], sizes = [32, 8], strides = [1, 1]} : vector<128x8xf32> to vector<32x8xf32>
    %333 = arith.negf %332 : vector<32x8xf32>
    %334 = math.exp %333 : vector<32x8xf32>
    %cst_119 = arith.constant 1.000000e+00 : f32
    %335 = vector.broadcast %cst_119 : f32 to vector<32x8xf32>
    %336 = arith.addf %335, %334 : vector<32x8xf32>
    %337 = arith.divf %335, %336 : vector<32x8xf32>
    %338 = vector.extract_strided_slice %325 {offsets = [64, 0], sizes = [32, 8], strides = [1, 1]} : vector<128x8xf32> to vector<32x8xf32>
    %339 = math.tanh %338 : vector<32x8xf32>
    %340 = vector.extract_strided_slice %325 {offsets = [96, 0], sizes = [32, 8], strides = [1, 1]} : vector<128x8xf32> to vector<32x8xf32>
    %341 = arith.negf %340 : vector<32x8xf32>
    %342 = math.exp %341 : vector<32x8xf32>
    %cst_120 = arith.constant 1.000000e+00 : f32
    %343 = vector.broadcast %cst_120 : f32 to vector<32x8xf32>
    %344 = arith.addf %343, %342 : vector<32x8xf32>
    %345 = arith.divf %343, %344 : vector<32x8xf32>
    %346 = arith.mulf %337, %318 : vector<32x8xf32>
    %347 = arith.mulf %331, %339 : vector<32x8xf32>
    %348 = arith.addf %346, %347 : vector<32x8xf32>
    %349 = math.tanh %348 : vector<32x8xf32>
    %350 = arith.mulf %345, %349 : vector<32x8xf32>
    %c8_i32_121 = arith.constant 8 : i32
    %c0_122 = arith.constant 0 : index
    %c0_123 = arith.constant 0 : index
    %351 = vector.load %arg7[%c0_122, %c0_123] : memref<128x1xf32, #tpu.memory_space<vmem>>, vector<128x1xf32>
    %352 = vector.shape_cast %351 : vector<128x1xf32> to vector<128x1xf32>
    %353 = vector.broadcast %352 : vector<128x1xf32> to vector<128x8xf32>
    %c0_124 = arith.constant 0 : index
    %c0_125 = arith.constant 0 : index
    %354 = vector.load %arg9[%c0_124, %c0_125] : memref<4x1xf32, #tpu.memory_space<vmem>>, vector<4x1xf32>
    %355 = vector.shape_cast %354 : vector<4x1xf32> to vector<4x1xf32>
    %356 = vector.broadcast %355 : vector<4x1xf32> to vector<4x8xf32>
    %c0_126 = arith.constant 0 : index
    %c0_127 = arith.constant 0 : index
    %357 = vector.load %arg8[%c0_126, %c0_127] : memref<4x32xf32, #tpu.memory_space<vmem>>, vector<4x32xf32>
    %cst_128 = arith.constant dense<0.000000e+00> : vector<128x8xf32>
    %358 = tpu.matmul %106, %350, %cst_128 {dimension_numbers = #tpu.dot_dimension_numbers<[1], [0], [0], [1], [0, 0, 1, 1], [], []>} : vector<128x32xf32>, vector<32x8xf32>, vector<128x8xf32> -> vector<128x8xf32>
    %359 = arith.addf %358, %353 : vector<128x8xf32>
    %360 = vector.extract_strided_slice %359 {offsets = [0, 0], sizes = [32, 8], strides = [1, 1]} : vector<128x8xf32> to vector<32x8xf32>
    %361 = arith.negf %360 : vector<32x8xf32>
    %362 = math.exp %361 : vector<32x8xf32>
    %cst_129 = arith.constant 1.000000e+00 : f32
    %363 = vector.broadcast %cst_129 : f32 to vector<32x8xf32>
    %364 = arith.addf %363, %362 : vector<32x8xf32>
    %365 = arith.divf %363, %364 : vector<32x8xf32>
    %366 = vector.extract_strided_slice %359 {offsets = [32, 0], sizes = [32, 8], strides = [1, 1]} : vector<128x8xf32> to vector<32x8xf32>
    %367 = arith.negf %366 : vector<32x8xf32>
    %368 = math.exp %367 : vector<32x8xf32>
    %cst_130 = arith.constant 1.000000e+00 : f32
    %369 = vector.broadcast %cst_130 : f32 to vector<32x8xf32>
    %370 = arith.addf %369, %368 : vector<32x8xf32>
    %371 = arith.divf %369, %370 : vector<32x8xf32>
    %372 = vector.extract_strided_slice %359 {offsets = [64, 0], sizes = [32, 8], strides = [1, 1]} : vector<128x8xf32> to vector<32x8xf32>
    %373 = math.tanh %372 : vector<32x8xf32>
    %374 = vector.extract_strided_slice %359 {offsets = [96, 0], sizes = [32, 8], strides = [1, 1]} : vector<128x8xf32> to vector<32x8xf32>
    %375 = arith.negf %374 : vector<32x8xf32>
    %376 = math.exp %375 : vector<32x8xf32>
    %cst_131 = arith.constant 1.000000e+00 : f32
    %377 = vector.broadcast %cst_131 : f32 to vector<32x8xf32>
    %378 = arith.addf %377, %376 : vector<32x8xf32>
    %379 = arith.divf %377, %378 : vector<32x8xf32>
    %380 = arith.mulf %371, %110 : vector<32x8xf32>
    %381 = arith.mulf %365, %373 : vector<32x8xf32>
    %382 = arith.addf %380, %381 : vector<32x8xf32>
    %383 = math.tanh %382 : vector<32x8xf32>
    %384 = arith.mulf %379, %383 : vector<32x8xf32>
    %cst_132 = arith.constant dense<0.000000e+00> : vector<4x8xf32>
    %385 = tpu.matmul %357, %384, %cst_132 {dimension_numbers = #tpu.dot_dimension_numbers<[1], [0], [0], [1], [0, 0, 1, 1], [], []>} : vector<4x32xf32>, vector<32x8xf32>, vector<4x8xf32> -> vector<4x8xf32>
    %386 = arith.addf %385, %356 : vector<4x8xf32>
    %c0_133 = arith.constant 0 : index
    %c0_134 = arith.constant 0 : index
    %c0_135 = arith.constant 0 : index
    %387 = vector.load %arg10[%c0_133, %c0_134, %c0_135] : memref<3x4x8xf32, #tpu.memory_space<vmem>>, vector<1x4x8xf32>
    %388 = vector.shape_cast %387 : vector<1x4x8xf32> to vector<4x8xf32>
    %389 = vector.shape_cast %386 : vector<4x8xf32> to vector<1x4x8xf32>
    tpu.vector_store %arg10[%c0_133, %c0_134, %c0_135], %389 {strides = array<i32>} : memref<3x4x8xf32, #tpu.memory_space<vmem>>, vector<1x4x8xf32>,
    %c1_i32_136 = arith.constant 1 : i32
    %cst_137 = arith.constant dense<0.000000e+00> : vector<128x8xf32>
    %390 = tpu.matmul %109, %384, %cst_137 {dimension_numbers = #tpu.dot_dimension_numbers<[1], [0], [0], [1], [0, 0, 1, 1], [], []>} : vector<128x32xf32>, vector<32x8xf32>, vector<128x8xf32> -> vector<128x8xf32>
    %391 = arith.addf %390, %353 : vector<128x8xf32>
    %392 = vector.extract_strided_slice %391 {offsets = [0, 0], sizes = [32, 8], strides = [1, 1]} : vector<128x8xf32> to vector<32x8xf32>
    %393 = arith.negf %392 : vector<32x8xf32>
    %394 = math.exp %393 : vector<32x8xf32>
    %cst_138 = arith.constant 1.000000e+00 : f32
    %395 = vector.broadcast %cst_138 : f32 to vector<32x8xf32>
    %396 = arith.addf %395, %394 : vector<32x8xf32>
    %397 = arith.divf %395, %396 : vector<32x8xf32>
    %398 = vector.extract_strided_slice %391 {offsets = [32, 0], sizes = [32, 8], strides = [1, 1]} : vector<128x8xf32> to vector<32x8xf32>
    %399 = arith.negf %398 : vector<32x8xf32>
    %400 = math.exp %399 : vector<32x8xf32>
    %cst_139 = arith.constant 1.000000e+00 : f32
    %401 = vector.broadcast %cst_139 : f32 to vector<32x8xf32>
    %402 = arith.addf %401, %400 : vector<32x8xf32>
    %403 = arith.divf %401, %402 : vector<32x8xf32>
    %404 = vector.extract_strided_slice %391 {offsets = [64, 0], sizes = [32, 8], strides = [1, 1]} : vector<128x8xf32> to vector<32x8xf32>
    %405 = math.tanh %404 : vector<32x8xf32>
    %406 = vector.extract_strided_slice %391 {offsets = [96, 0], sizes = [32, 8], strides = [1, 1]} : vector<128x8xf32> to vector<32x8xf32>
    %407 = arith.negf %406 : vector<32x8xf32>
    %408 = math.exp %407 : vector<32x8xf32>
    %cst_140 = arith.constant 1.000000e+00 : f32
    %409 = vector.broadcast %cst_140 : f32 to vector<32x8xf32>
    %410 = arith.addf %409, %408 : vector<32x8xf32>
    %411 = arith.divf %409, %410 : vector<32x8xf32>
    %412 = arith.mulf %403, %382 : vector<32x8xf32>
    %413 = arith.mulf %397, %405 : vector<32x8xf32>
    %414 = arith.addf %412, %413 : vector<32x8xf32>
    %415 = math.tanh %414 : vector<32x8xf32>
    %416 = arith.mulf %411, %415 : vector<32x8xf32>
    %cst_141 = arith.constant dense<0.000000e+00> : vector<4x8xf32>
    %417 = tpu.matmul %357, %416, %cst_141 {dimension_numbers = #tpu.dot_dimension_numbers<[1], [0], [0], [1], [0, 0, 1, 1], [], []>} : vector<4x32xf32>, vector<32x8xf32>, vector<4x8xf32> -> vector<4x8xf32>
    %418 = arith.addf %417, %356 : vector<4x8xf32>
    %419 = arith.index_cast %c1_i32_136 : i32 to index
    %c0_142 = arith.constant 0 : index
    %c0_143 = arith.constant 0 : index
    %420 = vector.load %arg10[%419, %c0_142, %c0_143] : memref<3x4x8xf32, #tpu.memory_space<vmem>>, vector<1x4x8xf32>
    %421 = vector.shape_cast %420 : vector<1x4x8xf32> to vector<4x8xf32>
    %422 = vector.shape_cast %418 : vector<4x8xf32> to vector<1x4x8xf32>
    tpu.vector_store %arg10[%419, %c0_142, %c0_143], %422 {strides = array<i32>} : memref<3x4x8xf32, #tpu.memory_space<vmem>>, vector<1x4x8xf32>,
    %c2_i32_144 = arith.constant 2 : i32
    %cst_145 = arith.constant dense<0.000000e+00> : vector<128x8xf32>
    %423 = tpu.matmul %109, %416, %cst_145 {dimension_numbers = #tpu.dot_dimension_numbers<[1], [0], [0], [1], [0, 0, 1, 1], [], []>} : vector<128x32xf32>, vector<32x8xf32>, vector<128x8xf32> -> vector<128x8xf32>
    %424 = arith.addf %423, %353 : vector<128x8xf32>
    %425 = vector.extract_strided_slice %424 {offsets = [0, 0], sizes = [32, 8], strides = [1, 1]} : vector<128x8xf32> to vector<32x8xf32>
    %426 = arith.negf %425 : vector<32x8xf32>
    %427 = math.exp %426 : vector<32x8xf32>
    %cst_146 = arith.constant 1.000000e+00 : f32
    %428 = vector.broadcast %cst_146 : f32 to vector<32x8xf32>
    %429 = arith.addf %428, %427 : vector<32x8xf32>
    %430 = arith.divf %428, %429 : vector<32x8xf32>
    %431 = vector.extract_strided_slice %424 {offsets = [32, 0], sizes = [32, 8], strides = [1, 1]} : vector<128x8xf32> to vector<32x8xf32>
    %432 = arith.negf %431 : vector<32x8xf32>
    %433 = math.exp %432 : vector<32x8xf32>
    %cst_147 = arith.constant 1.000000e+00 : f32
    %434 = vector.broadcast %cst_147 : f32 to vector<32x8xf32>
    %435 = arith.addf %434, %433 : vector<32x8xf32>
    %436 = arith.divf %434, %435 : vector<32x8xf32>
    %437 = vector.extract_strided_slice %424 {offsets = [64, 0], sizes = [32, 8], strides = [1, 1]} : vector<128x8xf32> to vector<32x8xf32>
    %438 = math.tanh %437 : vector<32x8xf32>
    %439 = vector.extract_strided_slice %424 {offsets = [96, 0], sizes = [32, 8], strides = [1, 1]} : vector<128x8xf32> to vector<32x8xf32>
    %440 = arith.negf %439 : vector<32x8xf32>
    %441 = math.exp %440 : vector<32x8xf32>
    %cst_148 = arith.constant 1.000000e+00 : f32
    %442 = vector.broadcast %cst_148 : f32 to vector<32x8xf32>
    %443 = arith.addf %442, %441 : vector<32x8xf32>
    %444 = arith.divf %442, %443 : vector<32x8xf32>
    %445 = arith.mulf %436, %414 : vector<32x8xf32>
    %446 = arith.mulf %430, %438 : vector<32x8xf32>
    %447 = arith.addf %445, %446 : vector<32x8xf32>
    %448 = math.tanh %447 : vector<32x8xf32>
    %449 = arith.mulf %444, %448 : vector<32x8xf32>
    %cst_149 = arith.constant dense<0.000000e+00> : vector<4x8xf32>
    %450 = tpu.matmul %357, %449, %cst_149 {dimension_numbers = #tpu.dot_dimension_numbers<[1], [0], [0], [1], [0, 0, 1, 1], [], []>} : vector<4x32xf32>, vector<32x8xf32>, vector<4x8xf32> -> vector<4x8xf32>
    %451 = arith.addf %450, %356 : vector<4x8xf32>
    %452 = arith.index_cast %c2_i32_144 : i32 to index
    %c0_150 = arith.constant 0 : index
    %c0_151 = arith.constant 0 : index
    %453 = vector.load %arg10[%452, %c0_150, %c0_151] : memref<3x4x8xf32, #tpu.memory_space<vmem>>, vector<1x4x8xf32>
    %454 = vector.shape_cast %453 : vector<1x4x8xf32> to vector<4x8xf32>
    %455 = vector.shape_cast %451 : vector<4x8xf32> to vector<1x4x8xf32>
    tpu.vector_store %arg10[%452, %c0_150, %c0_151], %455 {strides = array<i32>} : memref<3x4x8xf32, #tpu.memory_space<vmem>>, vector<1x4x8xf32>,
    %c2_i32_152 = arith.constant 2 : i32
    return
  }
  func.func @transform_0(%arg0: i32) -> (i32, i32, i32) {
    %c0_i32 = arith.constant 0 : i32
    %c0_i32_0 = arith.constant 0 : i32
    %c0_i32_1 = arith.constant 0 : i32
    return %c0_i32, %c0_i32_0, %arg0 : i32, i32, i32
  }
  func.func @transform_1(%arg0: i32) -> (i32, i32, i32) {
    %c0_i32 = arith.constant 0 : i32
    %c0_i32_0 = arith.constant 0 : i32
    %c0_i32_1 = arith.constant 0 : i32
    %c0_i32_2 = arith.constant 0 : i32
    return %c0_i32, %c0_i32_0, %c0_i32_1 : i32, i32, i32
  }
  func.func @transform_2(%arg0: i32) -> (i32, i32) {
    %c0_i32 = arith.constant 0 : i32
    %c0_i32_0 = arith.constant 0 : i32
    %c0_i32_1 = arith.constant 0 : i32
    return %c0_i32, %c0_i32_0 : i32, i32
  }
  func.func @transform_3(%arg0: i32) -> (i32, i32) {
    %c0_i32 = arith.constant 0 : i32
    %c0_i32_0 = arith.constant 0 : i32
    %c0_i32_1 = arith.constant 0 : i32
    return %c0_i32, %c0_i32_0 : i32, i32
  }
  func.func @transform_4(%arg0: i32) -> (i32, i32) {
    %c0_i32 = arith.constant 0 : i32
    %c0_i32_0 = arith.constant 0 : i32
    %c0_i32_1 = arith.constant 0 : i32
    return %c0_i32, %c0_i32_0 : i32, i32
  }
  func.func @transform_5(%arg0: i32) -> (i32, i32) {
    %c0_i32 = arith.constant 0 : i32
    %c0_i32_0 = arith.constant 0 : i32
    %c0_i32_1 = arith.constant 0 : i32
    return %c0_i32, %c0_i32_0 : i32, i32
  }
  func.func @transform_6(%arg0: i32) -> (i32, i32) {
    %c0_i32 = arith.constant 0 : i32
    %c0_i32_0 = arith.constant 0 : i32
    %c0_i32_1 = arith.constant 0 : i32
    return %c0_i32, %c0_i32_0 : i32, i32
  }
  func.func @transform_7(%arg0: i32) -> (i32, i32) {
    %c0_i32 = arith.constant 0 : i32
    %c0_i32_0 = arith.constant 0 : i32
    %c0_i32_1 = arith.constant 0 : i32
    return %c0_i32, %c0_i32_0 : i32, i32
  }
  func.func @transform_8(%arg0: i32) -> (i32, i32) {
    %c0_i32 = arith.constant 0 : i32
    %c0_i32_0 = arith.constant 0 : i32
    %c0_i32_1 = arith.constant 0 : i32
    return %c0_i32, %c0_i32_0 : i32, i32
  }
  func.func @transform_9(%arg0: i32) -> (i32, i32, i32) {
    %c0_i32 = arith.constant 0 : i32
    %c0_i32_0 = arith.constant 0 : i32
    %c0_i32_1 = arith.constant 0 : i32
    return %c0_i32, %c0_i32_0, %arg0 : i32, i32, i32
  }
}

</mosaic_0001>

<bundles_post_ra>
// kernel: tpu_custom_call.1
= control target key start
LH: loop header
LB: loop body
LE: loop exit
PB: predicated region body
PF: predicated region fallthrough
CT: control target
= control target key end

     0   :  { %vm146_vm0 = vcmask 64512   ;;  %v7810_v12 = vmov 0   ;;  %s9819_s0 = inlined_call_operand.vmem [shape: f32[8,8,8], index: 0, kind: input, shape index: {}]   ;;  %s9820_s1 = inlined_call_operand.vmem [shape: f32[8,128,8], index: 1, kind: input, shape index: {}]   ;;  %s9821_s2 = inlined_call_operand.vmem [shape: f32[128,1], index: 2, kind: input, shape index: {}]   ;;  %s9822_s3 = inlined_call_operand.vmem [shape: f32[128,32], index: 3, kind: input, shape index: {}]   ;;  %s9823_s4 = inlined_call_operand.vmem [shape: f32[128,32], index: 4, kind: input, shape index: {}]   ;;  %s9824_s5 = inlined_call_operand.vmem [shape: f32[128,32], index: 5, kind: input, shape index: {}]   ;;  %s9825_s6 = inlined_call_operand.vmem [shape: f32[128,1], index: 6, kind: input, shape index: {}]   ;;  %s9826_s7 = inlined_call_operand.vmem [shape: f32[4,32], index: 7, kind: input, shape index: {}]   ;;  %s9827_s8 = inlined_call_operand.vmem [shape: f32[4,1], index: 8, kind: input, shape index: {}]   ;;  %s9828_s9 = inlined_call_operand.hbm [shape: f32[3,4,8], index: 9, kind: output, shape index: {}]  }
   0x1   :  { %v65_v0 = vld [vmem:[%s9819_s0] sm:$0xff]  ;;  %v59_v2 = vld [vmem:[%s9820_s1 + $0x50] sm:$0xff]  ;;  %v50_v3 = vld [vmem:[%s9820_s1 + $0x8] sm:$0xff]  ;;  %7034 = vset.pattern.permute.xlu1 %v7810_v12  ;;  %7033 = vset.pattern.permute.xlu0 %v7810_v12 }
   0x2   :  { %v49_v1 = vld [vmem:[%s9820_s1] sm:$0xff]  ;;  %6339 = vmatprep.subr.mxu0 %v65_v0  ;;  %7024 = vmatprep.subr.mxu1 %v65_v0  ;;  %v60_v4 = vld [vmem:[%s9820_s1 + $0x58] sm:$0xff]  ;;  %v51_v5 = vld [vmem:[%s9820_s1 + $0x10] sm:$0xff] }
   0x3   :  { %6340 = vmatpush3.msra.mxu0 %v65_v0  ;;  %7025 = vmatpush3.msra.mxu1 %v65_v0  ;;  %v61_v6 = vld [vmem:[%s9820_s1 + $0x60] sm:$0xff]  ;;  %v5445_v7 = vld [vmem:[%s9819_s0 + $0x8] sm:$0xff]  ;;  %v52_v8 = vld [vmem:[%s9820_s1 + $0x18] sm:$0xff] }
   0x4   :  { %6341 = vmatprep.mubr.msk.f32.mxu0 %vm146_vm0, %v49_v1  ;;  %6356 = vmatprep.mubr.msk.f32.mxu1 %vm146_vm0, %v59_v2  ;;  %v62_v9 = vld [vmem:[%s9820_s1 + $0x68] sm:$0xff]  ;;  %v53_v10 = vld [vmem:[%s9820_s1 + $0x20] sm:$0xff]  ;;  %v63_v11 = vld [vmem:[%s9820_s1 + $0x70] sm:$0xff] }
   0x5   :  { %6342 = vmatmul.mubr.msk.f32.vlgmr.msra.gmra.mrb[0].mxu0 %vm146_vm0, %v50_v3  ;;  %6357 = vmatmul.mubr.msk.f32.vlgmr.msra.gmra.mrb[0].mxu1 %vm146_vm0, %v60_v4  ;;  %v5478_v13 = vld [vmem:[%s9819_s0 + $0x10] sm:$0xff]  ;;  %v54_v14 = vld [vmem:[%s9820_s1 + $0x28] sm:$0xff]  ;;  %v64_v15 = vld [vmem:[%s9820_s1 + $0x78] sm:$0xff] }
   0x6   :  { %6344 = vmatprep.mubr.msk.f32.mxu0 %vm146_vm0, %v51_v5  ;;  %6359 = vmatprep.mubr.msk.f32.mxu1 %vm146_vm0, %v61_v6  ;;  %v55_v16 = vld [vmem:[%s9820_s1 + $0x30] sm:$0xff]  ;;  %v5429_v17 = vld [vmem:[%s9820_s1 + $0x80] sm:$0xff]  ;;  %v56_v18 = vld [vmem:[%s9820_s1 + $0x38] sm:$0xff] }
   0x7   :  { %6365 = vmatprep.subr.mxu1 %v5445_v7  ;;  %6391 = vmatprep.subr.mxu0 %v5478_v13  ;;  %v5430_v19 = vld [vmem:[%s9820_s1 + $0x88] sm:$0xff]  ;;  %v57_v20 = vld [vmem:[%s9820_s1 + $0x40] sm:$0xff]  ;;  %v5431_v21 = vld [vmem:[%s9820_s1 + $0x90] sm:$0xff] }
   0x8   :  { %6366 = vmatpush3.msra.mxu1 %v5445_v7  ;;  %6392 = vmatpush3.msra.mxu0 %v5478_v13  ;;  %v5511_v22 = vld [vmem:[%s9819_s0 + $0x18] sm:$0xff]  ;;  %v58_v23 = vld [vmem:[%s9820_s1 + $0x48] sm:$0xff]  ;;  %v5544_v25 = vld [vmem:[%s9819_s0 + $0x20] sm:$0xff] }
   0x9   :  { %6345 = vmatmul.mubr.msk.f32.gmra.mrb[2].mxu0 %vm146_vm0, %v52_v8  ;;  %6360 = vmatmul.mubr.msk.f32.gmra.mrb[2].mxu1 %vm146_vm0, %v62_v9  ;;  %v5432_v24 = vld [vmem:[%s9820_s1 + $0x98] sm:$0xff]  ;;  %v5433_v26 = vld [vmem:[%s9820_s1 + $0xa0] sm:$0xff]  ;;  %v5434_v28 = vld [vmem:[%s9820_s1 + $0xa8] sm:$0xff] }
   0xa   :  { %6347 = vmatprep.mubr.msk.f32.mxu0 %vm146_vm0, %v53_v10  ;;  %6362 = vmatprep.mubr.msk.f32.mxu1 %vm146_vm0, %v63_v11  ;;  %v5462_v27 = vld [vmem:[%s9820_s1 + $0x100] sm:$0xff]  ;;  %v5463_v29 = vld [vmem:[%s9820_s1 + $0x108] sm:$0xff]  ;;  %v5435_v30 = vld [vmem:[%s9820_s1 + $0xb0] sm:$0xff] }
   0xb   :  { %6417 = vmatprep.subr.mxu1 %v5511_v22  ;;  %6443 = vmatprep.subr.mxu0 %v5544_v25  ;;  %v5464_v31 = vld [vmem:[%s9820_s1 + $0x110] sm:$0xff]  ;;  %v5436_v32 = vld [vmem:[%s9820_s1 + $0xb8] sm:$0xff]  ;;  %v5437_v34 = vld [vmem:[%s9820_s1 + $0xc0] sm:$0xff] }
   0xc   :  { %v5465_v33 = vld [vmem:[%s9820_s1 + $0x118] sm:$0xff]  ;;  %v5466_v35 = vld [vmem:[%s9820_s1 + $0x120] sm:$0xff]  ;;  %v8001_v36 = vld [vmem:[%s9819_s0 + $0x28] sm:$0xff] }
   0xd   :  { %6348 = vmatmul.mubr.msk.f32.gmra.mrb[4].mxu0 %vm146_vm0, %v54_v14  ;;  %6363 = vmatmul.mubr.msk.f32.gmra.mrb[4].mxu1 %vm146_vm0, %v64_v15  ;;  %v8008_v37 = vld [vmem:[%s9819_s0 + $0x30] sm:$0xff]  ;;  %v5438_v38 = vld [vmem:[%s9820_s1 + $0xc8] sm:$0xff]  ;;  %v37_v42 = vld [vmem:[%s9821_s2 + $0x20] sm:$0xff] }
   0xe   :  { %6350 = vmatprep.mubr.msk.f32.mxu0 %vm146_vm0, %v55_v16  ;;  %6367 = vmatprep.mubr.msk.f32.mxu1 %vm146_vm0, %v5429_v17  ;;  %v5467_v39 = vld [vmem:[%s9820_s1 + $0x128] sm:$0xff]  ;;  %v5439_v40 = vld [vmem:[%s9820_s1 + $0xd0] sm:$0xff]  ;;  %v33_v43 = vld [vmem:[%s9821_s2] sm:$0xff] }
   0xf   :  { %v5468_v41 = vld [vmem:[%s9820_s1 + $0x130] sm:$0xff]  ;;  %88 = vperm.xlu1 %7034, %v37_v42   ;;  %68 = vperm.xlu0 %7033, %v33_v43   ;;  %v38_v44 = vld [vmem:[%s9821_s2 + $0x28] sm:$0xff]  ;;  %v5440_v46 = vld [vmem:[%s9820_s1 + $0xd8] sm:$0xff] }
  0x10   :  { %v34_v45 = vld [vmem:[%s9821_s2 + $0x8] sm:$0xff]  ;;  %v5469_v47 = vld [vmem:[%s9820_s1 + $0x138] sm:$0xff]  ;;  %v5441_v48 = vld [vmem:[%s9820_s1 + $0xe0] sm:$0xff] }
  0x11   :  { %6351 = vmatmul.mubr.msk.f32.gmra.mrb[6].mxu0 %vm146_vm0, %v56_v18  ;;  %6368 = vmatmul.mubr.msk.f32.vlgmr.msra.gmra.mrb[6].mxu1 %vm146_vm0, %v5430_v19  ;;  %v5470_v49 = vld [vmem:[%s9820_s1 + $0x140] sm:$0xff]  ;;  %v36_v50 = vld [vmem:[%s9821_s2 + $0x18] sm:$0xff]  ;;  %v35_v51 = vld [vmem:[%s9821_s2 + $0x10] sm:$0xff] }
  0x12   :  { %6353 = vmatprep.mubr.msk.f32.mxu0 %vm146_vm0, %v57_v20  ;;  %6370 = vmatprep.mubr.msk.f32.mxu1 %vm146_vm0, %v5431_v21  ;;  %v5442_v52 = vld [vmem:[%s9820_s1 + $0xe8] sm:$0xff]  ;;  %v5443_v54 = vld [vmem:[%s9820_s1 + $0xf0] sm:$0xff]  ;;  %v40_v56 = vld [vmem:[%s9821_s2 + $0x38] sm:$0xff] }
  0x13   :  { %6418 = vmatpush3.msra.mxu1 %v5511_v22  ;;  %93 = vperm.xlu1 %7034, %v38_v44   ;;  %v5471_v53 = vld [vmem:[%s9820_s1 + $0x148] sm:$0xff]  ;;  %v5472_v55 = vld [vmem:[%s9820_s1 + $0x150] sm:$0xff]  ;;  %v5444_v58 = vld [vmem:[%s9820_s1 + $0xf8] sm:$0xff]  ;;  %v7811_v22 = vmov 0.0  }
  0x14   :  { %6469 = vmatprep.subr.mxu1 %v8001_v36  ;;  %73 = vperm.xlu0 %7033, %v34_v45   ;;  %v39_v57 = vld [vmem:[%s9821_s2 + $0x30] sm:$0xff]  ;;  %v5473_v59 = vld [vmem:[%s9820_s1 + $0x158] sm:$0xff]  ;;  %v5474_v60 = vld [vmem:[%s9820_s1 + $0x160] sm:$0xff] }
  0x15   :  { %6354 = vmatmul.mubr.msk.f32.gmra.mrb[8].mxu0 %vm146_vm0, %v58_v23  ;;  %6371 = vmatmul.mubr.msk.f32.gmra.mrb[8].mxu1 %vm146_vm0, %v5432_v24  ;;  %v5495_v61 = vld [vmem:[%s9820_s1 + $0x180] sm:$0xff]  ;;  %v42_v62 = vld [vmem:[%s9821_s2 + $0x48] sm:$0xff]  ;;  %v5476_v2 = vld [vmem:[%s9820_s1 + $0x170] sm:$0xff] }
  0x16   :  { %6373 = vmatprep.mubr.msk.f32.mxu1 %vm146_vm0, %v5433_v26  ;;  %6393 = vmatprep.mubr.msk.f32.mxu0 %vm146_vm0, %v5462_v27  ;;  %v41_v63 = vld [vmem:[%s9821_s2 + $0x40] sm:$0xff]  ;;  %v5475_v0 = vld [vmem:[%s9820_s1 + $0x168] sm:$0xff]  ;;  %v5497_v3 = vld [vmem:[%s9820_s1 + $0x190] sm:$0xff] }
  0x17   :  { %83 = vperm.xlu1 %7034, %v36_v50   ;;  %v5496_v1 = vld [vmem:[%s9820_s1 + $0x188] sm:$0xff]  ;;  %v8125_v4 = vld [vmem:[%s9819_s0 + $0x38] sm:$0xff]  ;;  %v5499_v8 = vld [vmem:[%s9820_s1 + $0x1a0] sm:$0xff] }
  0x18   :  { %78 = vperm.xlu0 %7033, %v35_v51   ;;  %v46_v5 = vld [vmem:[%s9821_s2 + $0x68] sm:$0xff]  ;;  %v5477_v6 = vld [vmem:[%s9820_s1 + $0x178] sm:$0xff]  ;;  %v5528_v9 = vld [vmem:[%s9820_s1 + $0x200] sm:$0xff] }
  0x19   :  { %6374 = vmatmul.mubr.msk.f32.gmra.mrb[10].mxu1 %vm146_vm0, %v5434_v28  ;;  %6394 = vmatmul.mubr.msk.f32.vlgmr.msra.gmra.mrb[10].mxu0 %vm146_vm0, %v5463_v29  ;;  %v5498_v7 = vld [vmem:[%s9820_s1 + $0x198] sm:$0xff]  ;;  %v45_v10 = vld [vmem:[%s9821_s2 + $0x60] sm:$0xff]  ;;  %v5500_v12 = vld [vmem:[%s9820_s1 + $0x1a8] sm:$0xff] }
  0x1a   :  { %6376 = vmatprep.mubr.msk.f32.mxu1 %vm146_vm0, %v5435_v30  ;;  %6396 = vmatprep.mubr.msk.f32.mxu0 %vm146_vm0, %v5464_v31  ;;  %v44_v11 = vld [vmem:[%s9821_s2 + $0x58] sm:$0xff]  ;;  %v5529_v13 = vld [vmem:[%s9820_s1 + $0x208] sm:$0xff]  ;;  %v5501_v14 = vld [vmem:[%s9820_s1 + $0x1b0] sm:$0xff] }
  0x1b   :  { %6444 = vmatpush3.msra.mxu0 %v5544_v25  ;;  %103 = vperm.xlu1 %7034, %v40_v56   ;;  %v5530_v15 = vld [vmem:[%s9820_s1 + $0x210] sm:$0xff]  ;;  %v48_v17 = vld [vmem:[%s9821_s2 + $0x78] sm:$0xff]  ;;  %v5503_v20 = vld [vmem:[%s9820_s1 + $0x1c0] sm:$0xff] }
  0x1c   :  { %6495 = vmatprep.subr.mxu0 %v8008_v37  ;;  %98 = vperm.xlu0 %7033, %v39_v57   ;;  %v43_v16 = vld [vmem:[%s9821_s2 + $0x50] sm:$0xff]  ;;  %v5502_v18 = vld [vmem:[%s9820_s1 + $0x1b8] sm:$0xff]  ;;  %v5532_v21 = vld [vmem:[%s9820_s1 + $0x220] sm:$0xff] }
  0x1d   :  { %6377 = vmatmul.mubr.msk.f32.gmra.mrb[12].mxu1 %vm146_vm0, %v5436_v32  ;;  %6397 = vmatmul.mubr.msk.f32.gmra.mrb[12].mxu0 %vm146_vm0, %v5465_v33  ;;  %v5531_v19 = vld [vmem:[%s9820_s1 + $0x218] sm:$0xff]  ;;  %v47_v23 = vld [vmem:[%s9821_s2 + $0x70] sm:$0xff]  ;;  %v4257_v24 = vld [vmem:[%s9825_s6 + $0x8] sm:$0xff] }
  0x1e   :  { %6379 = vmatprep.mubr.msk.f32.mxu1 %vm146_vm0, %v5437_v34  ;;  %6399 = vmatprep.mubr.msk.f32.mxu0 %vm146_vm0, %v5466_v35  ;;  %v5504_v25 = vld [vmem:[%s9820_s1 + $0x1c8] sm:$0xff] }
  0x1f   :  { %113 = vperm.xlu1 %7034, %v42_v62   ;;  %v5533_v26 = vld [vmem:[%s9820_s1 + $0x228] sm:$0xff] }
  0x20   :  { %108 = vperm.xlu0 %7033, %v41_v63  }
  0x21   :  { %6380 = vmatmul.mubr.msk.f32.gmra.mrb[14].mxu1 %vm146_vm0, %v5438_v38  ;;  %6400 = vmatmul.mubr.msk.f32.gmra.mrb[14].mxu0 %vm146_vm0, %v5467_v39 }
  0x22   :  { %6382 = vmatprep.mubr.msk.f32.mxu1 %vm146_vm0, %v5439_v40  ;;  %6402 = vmatprep.mubr.msk.f32.mxu0 %vm146_vm0, %v5468_v41 }
  0x23   :  { %133 = vperm.xlu1 %7034, %v46_v5  }
  0x24   :  { %128 = vperm.xlu0 %7033, %v45_v10  }
  0x25   :  { %6383 = vmatmul.mubr.msk.f32.gmra.mrb[16].mxu1 %vm146_vm0, %v5440_v46  ;;  %6403 = vmatmul.mubr.msk.f32.gmra.mrb[16].mxu0 %vm146_vm0, %v5469_v47 }
  0x26   :  { %6385 = vmatprep.mubr.msk.f32.mxu1 %vm146_vm0, %v5441_v48  ;;  %6405 = vmatprep.mubr.msk.f32.mxu0 %vm146_vm0, %v5470_v49 }
  0x27   :  { %123 = vperm.xlu1 %7034, %v44_v11  }
  0x28   :  { %118 = vperm.xlu0 %7033, %v43_v16  }
  0x29   :  { %6386 = vmatmul.mubr.msk.f32.gmra.mrb[18].mxu1 %vm146_vm0, %v5442_v52  ;;  %6406 = vmatmul.mubr.msk.f32.gmra.mrb[18].mxu0 %vm146_vm0, %v5471_v53 }
  0x2a   :  { %6388 = vmatprep.mubr.msk.f32.mxu1 %vm146_vm0, %v5443_v54  ;;  %6408 = vmatprep.mubr.msk.f32.mxu0 %vm146_vm0, %v5472_v55 }
  0x2b   :  { %143 = vperm.xlu1 %7034, %v48_v17  }
  0x2d   :  { %6389 = vmatmul.mubr.msk.f32.gmra.mrb[20].mxu1 %vm146_vm0, %v5444_v58  ;;  %6409 = vmatmul.mubr.msk.f32.gmra.mrb[20].mxu0 %vm146_vm0, %v5473_v59 }
  0x2e   :  { %6411 = vmatprep.mubr.msk.f32.mxu0 %vm146_vm0, %v5474_v60  ;;  %6419 = vmatprep.mubr.msk.f32.mxu1 %vm146_vm0, %v5495_v61 }
  0x31   :  { %6412 = vmatmul.mubr.msk.f32.gmra.mrb[22].mxu0 %vm146_vm0, %v5475_v0  ;;  %6420 = vmatmul.mubr.msk.f32.vlgmr.msra.gmra.mrb[22].mxu1 %vm146_vm0, %v5496_v1 }
  0x32   :  { %6414 = vmatprep.mubr.msk.f32.mxu0 %vm146_vm0, %v5476_v2  ;;  %6422 = vmatprep.mubr.msk.f32.mxu1 %vm146_vm0, %v5497_v3 }
  0x33   :  { %6470 = vmatpush3.msra.mxu1 %v8001_v36 }
  0x34   :  { %6521 = vmatprep.subr.mxu1 %v8125_v4 }
  0x35   :  { %6415 = vmatmul.mubr.msk.f32.gmra.mrb[24].mxu0 %vm146_vm0, %v5477_v6  ;;  %6423 = vmatmul.mubr.msk.f32.gmra.mrb[24].mxu1 %vm146_vm0, %v5498_v7 }
  0x36   :  { %6425 = vmatprep.mubr.msk.f32.mxu1 %vm146_vm0, %v5499_v8  ;;  %6445 = vmatprep.mubr.msk.f32.mxu0 %vm146_vm0, %v5528_v9 }
  0x39   :  { %6426 = vmatmul.mubr.msk.f32.gmra.mrb[26].mxu1 %vm146_vm0, %v5500_v12  ;;  %6446 = vmatmul.mubr.msk.f32.vlgmr.msra.gmra.mrb[26].mxu0 %vm146_vm0, %v5529_v13 }
  0x3a   :  { %6428 = vmatprep.mubr.msk.f32.mxu1 %vm146_vm0, %v5501_v14  ;;  %6448 = vmatprep.mubr.msk.f32.mxu0 %vm146_vm0, %v5530_v15 }
  0x3b   :  { %6496 = vmatpush3.msra.mxu0 %v8008_v37 }
  0x3c   :  { %6547 = vmatprep.subr.mxu0 %v7811_v22 }
  0x3d   :  { %6429 = vmatmul.mubr.msk.f32.gmra.mrb[28].mxu1 %vm146_vm0, %v5502_v18  ;;  %6449 = vmatmul.mubr.msk.f32.gmra.mrb[28].mxu0 %vm146_vm0, %v5531_v19 }
  0x3e   :  { %6431 = vmatprep.mubr.msk.f32.mxu1 %vm146_vm0, %v5503_v20  ;;  %6451 = vmatprep.mubr.msk.f32.mxu0 %vm146_vm0, %v5532_v21 }
  0x3f   :  { %14 = vsyncpa [#allocation4], 0  ;;  %v5505_v27 = vld [vmem:[%s9820_s1 + $0x1d0] sm:$0xff]  ;;  %138 = vperm.xlu0 %7033, %v47_v23   ;;  %v4256_v29 = vld [vmem:[%s9825_s6] sm:$0xff]  ;;  %4279 = vperm.xlu1 %7034, %v4257_v24   ;;  %vm2039_vm1 = vcmask 261120   ;;  %vm7813_vm2 = vmmov 0  }
  0x40   :  { %v5534_v28 = vld [vmem:[%s9820_s1 + $0x230] sm:$0xff]  ;;  %v4261_v30 = vld [vmem:[%s9825_s6 + $0x28] sm:$0xff]  ;;  %v5506_v31 = vld [vmem:[%s9820_s1 + $0x1d8] sm:$0xff]  ;;  %vm4721_vm3 = vcmask 60416  }
  0x41   :  { %6432 = vmatmul.mubr.msk.f32.gmra.mrb[30].mxu1 %vm146_vm0, %v5504_v25  ;;  %6452 = vmatmul.mubr.msk.f32.gmra.mrb[30].mxu0 %vm146_vm0, %v5533_v26  ;;  %v5535_v32 = vld [vmem:[%s9820_s1 + $0x238] sm:$0xff]  ;;  %v5507_v33 = vld [vmem:[%s9820_s1 + $0x1e0] sm:$0xff]  ;;  %v5508_v37 = vld [vmem:[%s9820_s1 + $0x1e8] sm:$0xff] }
  0x42   :  { %6434 = vmatprep.mubr.msk.f32.mxu1 %vm146_vm0, %v5505_v27  ;;  %6454 = vmatprep.mubr.msk.f32.mxu0 %vm146_vm0, %v5534_v28  ;;  %v5536_v34 = vld [vmem:[%s9820_s1 + $0x240] sm:$0xff]  ;;  %v4259_v36 = vld [vmem:[%s9825_s6 + $0x18] sm:$0xff]  ;;  %v5537_v38 = vld [vmem:[%s9820_s1 + $0x248] sm:$0xff] }
  0x43   :  { %4274 = vperm.xlu0 %7033, %v4256_v29   ;;  %v4260_v35 = vld [vmem:[%s9825_s6 + $0x20] sm:$0xff]  ;;  %4299 = vperm.xlu1 %7034, %v4261_v30   ;;  %v5509_v39 = vld [vmem:[%s9820_s1 + $0x1f0] sm:$0xff]  ;;  %v4263_v42 = vld [vmem:[%s9825_s6 + $0x38] sm:$0xff] }
  0x44   :  { %v5538_v40 = vld [vmem:[%s9820_s1 + $0x250] sm:$0xff]  ;;  %v5510_v43 = vld [vmem:[%s9820_s1 + $0x1f8] sm:$0xff]  ;;  %v5540_v45 = vld [vmem:[%s9820_s1 + $0x260] sm:$0xff] }
  0x45   :  { %6435 = vmatmul.mubr.msk.f32.gmra.mrb[32].mxu1 %vm146_vm0, %v5506_v31  ;;  %6455 = vmatmul.mubr.msk.f32.gmra.mrb[32].mxu0 %vm146_vm0, %v5535_v32  ;;  %v4258_v41 = vld [vmem:[%s9825_s6 + $0x10] sm:$0xff]  ;;  %v5539_v44 = vld [vmem:[%s9820_s1 + $0x258] sm:$0xff]  ;;  %v5561_v46 = vld [vmem:[%s9820_s1 + $0x280] sm:$0xff] }
  0x46   :  { %6437 = vmatprep.mubr.msk.f32.mxu1 %vm146_vm0, %v5507_v33  ;;  %6457 = vmatprep.mubr.msk.f32.mxu0 %vm146_vm0, %v5536_v34  ;;  %v4262_v47 = vld [vmem:[%s9825_s6 + $0x30] sm:$0xff]  ;;  %v4265_v48 = vld [vmem:[%s9825_s6 + $0x48] sm:$0xff]  ;;  %v4264_v53 = vld [vmem:[%s9825_s6 + $0x40] sm:$0xff] }
  0x47   :  { %4294 = vperm.xlu0 %7033, %v4260_v35   ;;  %4289 = vperm.xlu1 %7034, %v4259_v36   ;;  %v5541_v49 = vld [vmem:[%s9820_s1 + $0x268] sm:$0xff]  ;;  %v5542_v51 = vld [vmem:[%s9820_s1 + $0x270] sm:$0xff]  ;;  %v5543_v55 = vld [vmem:[%s9820_s1 + $0x278] sm:$0xff] }
  0x48   :  { %v5562_v50 = vld [vmem:[%s9820_s1 + $0x288] sm:$0xff]  ;;  %v5563_v52 = vld [vmem:[%s9820_s1 + $0x290] sm:$0xff]  ;;  %v5564_v56 = vld [vmem:[%s9820_s1 + $0x298] sm:$0xff] }
  0x49   :  { %6438 = vmatmul.mubr.msk.f32.gmra.mrb[34].mxu1 %vm146_vm0, %v5508_v37  ;;  %6458 = vmatmul.mubr.msk.f32.gmra.mrb[34].mxu0 %vm146_vm0, %v5537_v38  ;;  %v4269_v54 = vld [vmem:[%s9825_s6 + $0x68] sm:$0xff]  ;;  %v5565_v57 = vld [vmem:[%s9820_s1 + $0x2a0] sm:$0xff]  ;;  %v4267_v60 = vld [vmem:[%s9825_s6 + $0x58] sm:$0xff] }
  0x4a   :  { %6440 = vmatprep.mubr.msk.f32.mxu1 %vm146_vm0, %v5509_v39  ;;  %6460 = vmatprep.mubr.msk.f32.mxu0 %vm146_vm0, %v5538_v40  ;;  %v5594_v58 = vld [vmem:[%s9820_s1 + $0x300] sm:$0xff]  ;;  %v5566_v61 = vld [vmem:[%s9820_s1 + $0x2a8] sm:$0xff]  ;;  %v5567_v63 = vld [vmem:[%s9820_s1 + $0x2b0] sm:$0xff] }
  0x4b   :  { %4284 = vperm.xlu0 %7033, %v4258_v41   ;;  %4309 = vperm.xlu1 %7034, %v4263_v42   ;;  %v4268_v59 = vld [vmem:[%s9825_s6 + $0x60] sm:$0xff]  ;;  %v5595_v62 = vld [vmem:[%s9820_s1 + $0x308] sm:$0xff]  ;;  %v5596_v0 = vld [vmem:[%s9820_s1 + $0x310] sm:$0xff] }
  0x4c   :  { %v4266_v1 = vld [vmem:[%s9825_s6 + $0x50] sm:$0xff]  ;;  %v4271_v2 = vld [vmem:[%s9825_s6 + $0x78] sm:$0xff]  ;;  %v5569_v5 = vld [vmem:[%s9820_s1 + $0x2c0] sm:$0xff] }
  0x4d   :  { %6441 = vmatmul.mubr.msk.f32.gmra.mrb[36].mxu1 %vm146_vm0, %v5510_v43  ;;  %6461 = vmatmul.mubr.msk.f32.gmra.mrb[36].mxu0 %vm146_vm0, %v5539_v44  ;;  %v5568_v3 = vld [vmem:[%s9820_s1 + $0x2b8] sm:$0xff]  ;;  %v5598_v6 = vld [vmem:[%s9820_s1 + $0x320] sm:$0xff]  ;;  %v4270_v7 = vld [vmem:[%s9825_s6 + $0x70] sm:$0xff] }
  0x4e   :  { %6463 = vmatprep.mubr.msk.f32.mxu0 %vm146_vm0, %v5540_v45  ;;  %6471 = vmatprep.mubr.msk.f32.mxu1 %vm146_vm0, %v5561_v46  ;;  %v5570_v8 = vld [vmem:[%s9820_s1 + $0x2c8] sm:$0xff]  ;;  %v5571_v10 = vld [vmem:[%s9820_s1 + $0x2d0] sm:$0xff]  ;;  %v4352_v12 = vld [vmem:[%s9827_s8] sm:$0xf] }
  0x4f   :  { %4304 = vperm.xlu0 %7033, %v4262_v47   ;;  %4319 = vperm.xlu1 %7034, %v4265_v48   ;;  %v5599_v9 = vld [vmem:[%s9820_s1 + $0x328] sm:$0xff]  ;;  %v5600_v11 = vld [vmem:[%s9820_s1 + $0x330] sm:$0xff]  ;;  %v5572_v13 = vld [vmem:[%s9820_s1 + $0x2d8] sm:$0xff] }
  0x50   :  { %v5601_v14 = vld [vmem:[%s9820_s1 + $0x338] sm:$0xff]  ;;  %v5573_v15 = vld [vmem:[%s9820_s1 + $0x2e0] sm:$0xff]  ;;  %v5574_v17 = vld [vmem:[%s9820_s1 + $0x2e8] sm:$0xff] }
  0x51   :  { %6464 = vmatmul.mubr.msk.f32.gmra.mrb[38].mxu0 %vm146_vm0, %v5541_v49  ;;  %6472 = vmatmul.mubr.msk.f32.vlgmr.msra.gmra.mrb[38].mxu1 %vm146_vm0, %v5562_v50  ;;  %v5602_v16 = vld [vmem:[%s9820_s1 + $0x340] sm:$0xff]  ;;  %v5603_v18 = vld [vmem:[%s9820_s1 + $0x348] sm:$0xff]  ;;  %v5575_v19 = vld [vmem:[%s9820_s1 + $0x2f0] sm:$0xff] }
  0x52   :  { %6466 = vmatprep.mubr.msk.f32.mxu0 %vm146_vm0, %v5542_v51  ;;  %6474 = vmatprep.mubr.msk.f32.mxu1 %vm146_vm0, %v5563_v52  ;;  %v5604_v20 = vld [vmem:[%s9820_s1 + $0x350] sm:$0xff]  ;;  %v5576_v21 = vld [vmem:[%s9820_s1 + $0x2f8] sm:$0xff]  ;;  %v5606_v24 = vld [vmem:[%s9820_s1 + $0x360] sm:$0xff] }
  0x53   :  { %6522 = vmatpush3.msra.mxu1 %v8125_v4  ;;  %4314 = vperm.xlu0 %7033, %v4264_v53   ;;  %v5597_v4 = vld [vmem:[%s9820_s1 + $0x318] sm:$0xff]  ;;  %v5627_v25 = vld [vmem:[%s9820_s1 + $0x380] sm:$0xff]  ;;  %v5607_v26 = vld [vmem:[%s9820_s1 + $0x368] sm:$0xff] }
  0x54   :  { %4339 = vperm.xlu1 %7034, %v4269_v54   ;;  %v5605_v23 = vld [vmem:[%s9820_s1 + $0x358] sm:$0xff]  ;;  %v5628_v27 = vld [vmem:[%s9820_s1 + $0x388] sm:$0xff]  ;;  %v5608_v28 = vld [vmem:[%s9820_s1 + $0x370] sm:$0xff] }
  0x55   :  { %6467 = vmatmul.mubr.msk.f32.gmra.mrb[40].mxu0 %vm146_vm0, %v5543_v55  ;;  %6475 = vmatmul.mubr.msk.f32.gmra.mrb[40].mxu1 %vm146_vm0, %v5564_v56  ;;  %v5629_v29 = vld [vmem:[%s9820_s1 + $0x390] sm:$0xff]  ;;  %v5609_v30 = vld [vmem:[%s9820_s1 + $0x378] sm:$0xff]  ;;  %v5631_v32 = vld [vmem:[%s9820_s1 + $0x3a0] sm:$0xff] }
  0x56   :  { %6477 = vmatprep.mubr.msk.f32.mxu1 %vm146_vm0, %v5565_v57  ;;  %6497 = vmatprep.mubr.msk.f32.mxu0 %vm146_vm0, %v5594_v58  ;;  %v5630_v31 = vld [vmem:[%s9820_s1 + $0x398] sm:$0xff]  ;;  %v1959_v33 = vld [vmem:[%s9822_s3] sm:$0xff]  ;;  %v5632_v34 = vld [vmem:[%s9820_s1 + $0x3a8] sm:$0xff] }
  0x57   :  { %4334 = vperm.xlu0 %7033, %v4268_v59   ;;  %v1960_v35 = vld [vmem:[%s9822_s3 + $0x8] sm:$0xff]  ;;  %v5633_v36 = vld [vmem:[%s9820_s1 + $0x3b0] sm:$0xff]  ;;  %v5634_v38 = vld [vmem:[%s9820_s1 + $0x3b8] sm:$0xff] }
  0x58   :  { %4329 = vperm.xlu1 %7034, %v4267_v60   ;;  %v1961_v37 = vld [vmem:[%s9822_s3 + $0x10] sm:$0xff]  ;;  %v1962_v39 = vld [vmem:[%s9822_s3 + $0x18] sm:$0xff]  ;;  %v5635_v40 = vld [vmem:[%s9820_s1 + $0x3c0] sm:$0xff] }
  0x59   :  { %6478 = vmatmul.mubr.msk.f32.gmra.mrb[42].mxu1 %vm146_vm0, %v5566_v61  ;;  %6498 = vmatmul.mubr.msk.f32.vlgmr.msra.gmra.mrb[42].mxu0 %vm146_vm0, %v5595_v62  ;;  %v1963_v41 = vld [vmem:[%s9822_s3 + $0x20] sm:$0xff]  ;;  %v5636_v42 = vld [vmem:[%s9820_s1 + $0x3c8] sm:$0xff]  ;;  %v5637_v44 = vld [vmem:[%s9820_s1 + $0x3d0] sm:$0xff] }
  0x5a   :  { %6480 = vmatprep.mubr.msk.f32.mxu1 %vm146_vm0, %v5567_v63  ;;  %6500 = vmatprep.mubr.msk.f32.mxu0 %vm146_vm0, %v5596_v0  ;;  %v1964_v43 = vld [vmem:[%s9822_s3 + $0x28] sm:$0xff]  ;;  %v1965_v45 = vld [vmem:[%s9822_s3 + $0x30] sm:$0xff]  ;;  %v5638_v46 = vld [vmem:[%s9820_s1 + $0x3d8] sm:$0xff] }
  0x5b   :  { %6548 = vmatpush3.msra.mxu0 %v7811_v22  ;;  %4324 = vperm.xlu0 %7033, %v4266_v1   ;;  %v1966_v47 = vld [vmem:[%s9822_s3 + $0x38] sm:$0xff]  ;;  %v5639_v48 = vld [vmem:[%s9820_s1 + $0x3e0] sm:$0xff]  ;;  %v5640_v50 = vld [vmem:[%s9820_s1 + $0x3e8] sm:$0xff] }
  0x5c   :  { %4349 = vperm.xlu1 %7034, %v4271_v2   ;;  %v1967_v49 = vld [vmem:[%s9822_s3 + $0x40] sm:$0xff]  ;;  %v1968_v51 = vld [vmem:[%s9822_s3 + $0x48] sm:$0xff]  ;;  %v5641_v52 = vld [vmem:[%s9820_s1 + $0x3f0] sm:$0xff] }
  0x5d   :  { %6481 = vmatmul.mubr.msk.f32.gmra.mrb[44].mxu1 %vm146_vm0, %v5568_v3  ;;  %6501 = vmatmul.mubr.msk.f32.gmra.mrb[44].mxu0 %vm146_vm0, %v5597_v4  ;;  %v1969_v53 = vld [vmem:[%s9822_s3 + $0x50] sm:$0xff]  ;;  %v5642_v54 = vld [vmem:[%s9820_s1 + $0x3f8] sm:$0xff]  ;;  %v1971_v56 = vld [vmem:[%s9822_s3 + $0x60] sm:$0xff] }
  0x5e   :  { %6483 = vmatprep.mubr.msk.f32.mxu1 %vm146_vm0, %v5569_v5  ;;  %6503 = vmatprep.mubr.msk.f32.mxu0 %vm146_vm0, %v5598_v6  ;;  %v1970_v55 = vld [vmem:[%s9822_s3 + $0x58] sm:$0xff]  ;;  %v1972_v57 = vld [vmem:[%s9822_s3 + $0x68] sm:$0xff]  ;;  %v1973_v58 = vld [vmem:[%s9822_s3 + $0x70] sm:$0xff] }
  0x5f   :  { %4344 = vperm.xlu0 %7033, %v4270_v7   ;;  %v1974_v59 = vld [vmem:[%s9822_s3 + $0x78] sm:$0xff] }
  0x61   :  { %6484 = vmatmul.mubr.msk.f32.gmra.mrb[46].mxu1 %vm146_vm0, %v5570_v8  ;;  %6504 = vmatmul.mubr.msk.f32.gmra.mrb[46].mxu0 %vm146_vm0, %v5599_v9 }
  0x62   :  { %6486 = vmatprep.mubr.msk.f32.mxu1 %vm146_vm0, %v5571_v10  ;;  %6506 = vmatprep.mubr.msk.f32.mxu0 %vm146_vm0, %v5600_v11 }
  0x63   :  { %4355 = vperm.xlu0 %7033, %v4352_v12  }
  0x65   :  { %6487 = vmatmul.mubr.msk.f32.gmra.mrb[48].mxu1 %vm146_vm0, %v5572_v13  ;;  %6507 = vmatmul.mubr.msk.f32.gmra.mrb[48].mxu0 %vm146_vm0, %v5601_v14 }
  0x66   :  { %6489 = vmatprep.mubr.msk.f32.mxu1 %vm146_vm0, %v5573_v15  ;;  %6509 = vmatprep.mubr.msk.f32.mxu0 %vm146_vm0, %v5602_v16 }
  0x69   :  { %6490 = vmatmul.mubr.msk.f32.gmra.mrb[50].mxu1 %vm146_vm0, %v5574_v17  ;;  %6510 = vmatmul.mubr.msk.f32.gmra.mrb[50].mxu0 %vm146_vm0, %v5603_v18 }
  0x6a   :  { %6492 = vmatprep.mubr.msk.f32.mxu1 %vm146_vm0, %v5575_v19  ;;  %6512 = vmatprep.mubr.msk.f32.mxu0 %vm146_vm0, %v5604_v20 }
  0x6d   :  { %6493 = vmatmul.mubr.msk.f32.gmra.mrb[52].mxu1 %vm146_vm0, %v5576_v21  ;;  %6513 = vmatmul.mubr.msk.f32.gmra.mrb[52].mxu0 %vm146_vm0, %v5605_v23 }
  0x6e   :  { %6515 = vmatprep.mubr.msk.f32.mxu0 %vm146_vm0, %v5606_v24  ;;  %6523 = vmatprep.mubr.msk.f32.mxu1 %vm146_vm0, %v5627_v25 }
  0x71   :  { %6516 = vmatmul.mubr.msk.f32.gmra.mrb[54].mxu0 %vm146_vm0, %v5607_v26  ;;  %6524 = vmatmul.mubr.msk.f32.vlgmr.msra.gmra.mrb[54].mxu1 %vm146_vm0, %v5628_v27 }
  0x72   :  { %6518 = vmatprep.mubr.msk.f32.mxu0 %vm146_vm0, %v5608_v28  ;;  %6526 = vmatprep.mubr.msk.f32.mxu1 %vm146_vm0, %v5629_v29 }
  0x75   :  { %6519 = vmatmul.mubr.msk.f32.gmra.mrb[56].mxu0 %vm146_vm0, %v5609_v30  ;;  %6527 = vmatmul.mubr.msk.f32.gmra.mrb[56].mxu1 %vm146_vm0, %v5630_v31 }
  0x76   :  { %6529 = vmatprep.mubr.msk.f32.mxu1 %vm146_vm0, %v5631_v32  ;;  %6549 = vmatprep.mubr.msk.f32.mxu0 %vm2039_vm1, %v1959_v33 }
  0x79   :  { %6530 = vmatmul.mubr.msk.f32.gmra.mrb[58].mxu1 %vm146_vm0, %v5632_v34  ;;  %6550 = vmatmul.mubr.msk.f32.vlgmr.msra.gmra.mrb[58].mxu0 %vm2039_vm1, %v1960_v35 }
  0x7a   :  { %6532 = vmatprep.mubr.msk.f32.mxu1 %vm146_vm0, %v5633_v36  ;;  %6552 = vmatprep.mubr.msk.f32.mxu0 %vm2039_vm1, %v1961_v37 }
  0x7d   :  { %6533 = vmatmul.mubr.msk.f32.gmra.mrb[60].mxu1 %vm146_vm0, %v5634_v38  ;;  %6553 = vmatmul.mubr.msk.f32.gmra.mrb[60].mxu0 %vm2039_vm1, %v1962_v39 }
  0x7e   :  { %6535 = vmatprep.mubr.msk.f32.mxu1 %vm146_vm0, %v5635_v40  ;;  %6555 = vmatprep.mubr.msk.f32.mxu0 %vm2039_vm1, %v1963_v41 }
  0x81   :  { %6536 = vmatmul.mubr.msk.f32.gmra.mrb[62].mxu1 %vm146_vm0, %v5636_v42  ;;  %6556 = vmatmul.mubr.msk.f32.gmra.mrb[62].mxu0 %vm2039_vm1, %v1964_v43 }
  0x82   :  { %6538 = vmatprep.mubr.msk.f32.mxu1 %vm146_vm0, %v5637_v44  ;;  %6558 = vmatprep.mubr.msk.f32.mxu0 %vm2039_vm1, %v1965_v45 }
  0x85   :  { %6539 = vmatmul.mubr.msk.f32.gmra.mrb[64].mxu1 %vm146_vm0, %v5638_v46  ;;  %6559 = vmatmul.mubr.msk.f32.gmra.mrb[64].mxu0 %vm2039_vm1, %v1966_v47 }
  0x86   :  { %6541 = vmatprep.mubr.msk.f32.mxu1 %vm146_vm0, %v5639_v48  ;;  %6561 = vmatprep.mubr.msk.f32.mxu0 %vm2039_vm1, %v1967_v49 }
  0x89   :  { %6542 = vmatmul.mubr.msk.f32.gmra.mrb[66].mxu1 %vm146_vm0, %v5640_v50  ;;  %6562 = vmatmul.mubr.msk.f32.gmra.mrb[66].mxu0 %vm2039_vm1, %v1968_v51 }
  0x8a   :  { %6544 = vmatprep.mubr.msk.f32.mxu1 %vm146_vm0, %v5641_v52  ;;  %6564 = vmatprep.mubr.msk.f32.mxu0 %vm2039_vm1, %v1969_v53 }
  0x8d   :  { %6545 = vmatmul.mubr.msk.f32.gmra.mrb[68].mxu1 %vm146_vm0, %v5642_v54  ;;  %6565 = vmatmul.mubr.msk.f32.gmra.mrb[68].mxu0 %vm2039_vm1, %v1970_v55 }
  0x8e   :  { %6567 = vmatprep.mubr.msk.f32.mxu0 %vm2039_vm1, %v1971_v56  ;;  %6581 = vmatprep.mubr.msk.f32.mxu1 %vm2039_vm1, %v1959_v33  ;;  %v8582_v60 = vpop.permute.xlu1 %88  ;;  %v8584_v61 = vpop.permute.xlu0 %68 }
  0x91   :  { %6568 = vmatmul.mubr.msk.f32.gmra.mrb[70].mxu0 %vm2039_vm1, %v1972_v57 }
  0x92   :  { %6570 = vmatprep.mubr.msk.f32.mxu0 %vm2039_vm1, %v1973_v58  ;;  %v8586_v62 = vpop.permute.xlu1 %93 }
  0x93   :  { %v8588_v63 = vpop.permute.xlu0 %73 }
  0x95   :  { %6571 = vmatmul.mubr.msk.f32.gmra.mrb[72].mxu0 %vm2039_vm1, %v1974_v59 }
  0x96   :  { %6613 = vmatprep.mubr.msk.f32.mxu0 %vm2039_vm1, %v1959_v33  ;;  %v8590_v0 = vpop.permute.xlu1 %83 }
  0x97   :  { %v8592_v1 = vpop.permute.xlu0 %78 }
  0x9a   :  { %v8594_v2 = vpop.permute.xlu1 %103 }
  0x9b   :  { %v8596_v3 = vpop.permute.xlu0 %98 }
  0x9e   :  { %v8598_v4 = vpop.permute.xlu1 %113 }
  0x9f   :  { %v8600_v5 = vpop.permute.xlu0 %108 }
  0xa2   :  { %v8602_v6 = vpop.permute.xlu1 %133 }
  0xa3   :  { %v8604_v7 = vpop.permute.xlu0 %128 }
  0xa6   :  { %v8606_v8 = vpop.permute.xlu1 %123 }
  0xa7   :  { %v8608_v9 = vpop.permute.xlu0 %118 }
  0xaa   :  { %v8623_v27 = vpop.permute.xlu1 %143 }
  0xbe   :  { %v8625_v28 = vpop.permute.xlu0 %138 }
  0xd8   :  { %v6343_v10 = vpop.f32.mrb[0].mxu0  ;;  %v6358_v11 = vpop.f32.mrb[0].mxu1 }
  0xd9   :  { %v267_v12 = vadd.f32 %v6343_v10, %v8588_v63  ;;  %v261_v13 = vpop.f32.mrb[1].mxu0  ;;  %v317_v14 = vadd.f32 %v6358_v11, %v8606_v8  ;;  %v311_v15 = vpop.f32.mrb[1].mxu1 }
  0xda   :  { %v262_v16 = vadd.f32 %v261_v13, %v8584_v61  ;;  %v312_v17 = vadd.f32 %v311_v15, %v8608_v9 }
  0xdb   :  { %341 = vst.msk [vmem:[#allocation2 + $0x8] sm:$0xff] %vm146_vm0, %v267_v12  ;;  %351 = vst.msk [vmem:[#allocation2 + $0x58] sm:$0xff] %vm146_vm0, %v317_v14 }
  0xdc   :  { %340 = vst.msk [vmem:[#allocation2] sm:$0xff] %vm146_vm0, %v262_v16  ;;  %v6346_v18 = vpop.f32.mrb[2].mxu0  ;;  %350 = vst.msk [vmem:[#allocation2 + $0x50] sm:$0xff] %vm146_vm0, %v312_v17  ;;  %v6361_v19 = vpop.f32.mrb[2].mxu1 }
  0xdd   :  { %v277_v20 = vadd.f32 %v6346_v18, %v8590_v0  ;;  %v271_v21 = vpop.f32.mrb[3].mxu0  ;;  %v327_v23 = vadd.f32 %v6361_v19, %v8602_v6  ;;  %v321_v24 = vpop.f32.mrb[3].mxu1 }
  0xde   :  { %v272_v25 = vadd.f32 %v271_v21, %v8592_v1  ;;  %v322_v26 = vadd.f32 %v321_v24, %v8604_v7 }
  0xdf   :  { %343 = vst.msk [vmem:[#allocation2 + $0x18] sm:$0xff] %vm146_vm0, %v277_v20  ;;  %353 = vst.msk [vmem:[#allocation2 + $0x68] sm:$0xff] %vm146_vm0, %v327_v23 }
  0xe0   :  { %342 = vst.msk [vmem:[#allocation2 + $0x10] sm:$0xff] %vm146_vm0, %v272_v25  ;;  %v6349_v29 = vpop.f32.mrb[4].mxu0  ;;  %352 = vst.msk [vmem:[#allocation2 + $0x60] sm:$0xff] %vm146_vm0, %v322_v26  ;;  %v6364_v30 = vpop.f32.mrb[4].mxu1 }
  0xe1   :  { %v287_v31 = vadd.f32 %v6349_v29, %v8586_v62  ;;  %v281_v32 = vpop.f32.mrb[5].mxu0  ;;  %v337_v33 = vadd.f32 %v6364_v30, %v8623_v27  ;;  %v331_v34 = vpop.f32.mrb[5].mxu1 }
  0xe2   :  { %v282_v35 = vadd.f32 %v281_v32, %v8582_v60  ;;  %v332_v36 = vadd.f32 %v331_v34, %v8625_v28 }
  0xe3   :  { %345 = vst.msk [vmem:[#allocation2 + $0x28] sm:$0xff] %vm146_vm0, %v287_v31  ;;  %355 = vst.msk [vmem:[#allocation2 + $0x78] sm:$0xff] %vm146_vm0, %v337_v33 }
  0xe4   :  { %344 = vst.msk [vmem:[#allocation2 + $0x20] sm:$0xff] %vm146_vm0, %v282_v35  ;;  %v6352_v37 = vpop.f32.mrb[6].mxu0  ;;  %354 = vst.msk [vmem:[#allocation2 + $0x70] sm:$0xff] %vm146_vm0, %v332_v36  ;;  %v6369_v38 = vpop.f32.mrb[6].mxu1 }
  0xe5   :  { %v297_v39 = vadd.f32 %v6352_v37, %v8594_v2  ;;  %v291_v40 = vpop.f32.mrb[7].mxu0  ;;  %v495_v41 = vadd.f32 %v6369_v38, %v8588_v63  ;;  %v489_v42 = vpop.f32.mrb[7].mxu1 }
  0xe6   :  { %v292_v43 = vadd.f32 %v291_v40, %v8596_v3  ;;  %v490_v44 = vadd.f32 %v489_v42, %v8584_v61 }
  0xe7   :  { %347 = vst.msk [vmem:[#allocation2 + $0x38] sm:$0xff] %vm146_vm0, %v297_v39  ;;  %570 = vst.msk [vmem:[#allocation2 + $0x88] sm:$0xff] %vm146_vm0, %v495_v41 }
  0xe8   :  { %346 = vst.msk [vmem:[#allocation2 + $0x30] sm:$0xff] %vm146_vm0, %v292_v43  ;;  %v6355_v45 = vpop.f32.mrb[8].mxu0  ;;  %569 = vst.msk [vmem:[#allocation2 + $0x80] sm:$0xff] %vm146_vm0, %v490_v44  ;;  %v6372_v46 = vpop.f32.mrb[8].mxu1 }
  0xe9   :  { %v307_v47 = vadd.f32 %v6355_v45, %v8598_v4  ;;  %v301_v48 = vpop.f32.mrb[9].mxu0  ;;  %v505_v49 = vadd.f32 %v6372_v46, %v8590_v0  ;;  %v499_v50 = vpop.f32.mrb[9].mxu1 }
  0xea   :  { %v302_v51 = vadd.f32 %v301_v48, %v8600_v5  ;;  %v500_v52 = vadd.f32 %v499_v50, %v8592_v1 }
  0xeb   :  { %349 = vst.msk [vmem:[#allocation2 + $0x48] sm:$0xff] %vm146_vm0, %v307_v47  ;;  %572 = vst.msk [vmem:[#allocation2 + $0x98] sm:$0xff] %vm146_vm0, %v505_v49 }
  0xec   :  { %348 = vst.msk [vmem:[#allocation2 + $0x40] sm:$0xff] %vm146_vm0, %v302_v51  ;;  %v6395_v53 = vpop.f32.mrb[10].mxu0  ;;  %571 = vst.msk [vmem:[#allocation2 + $0x90] sm:$0xff] %vm146_vm0, %v500_v52  ;;  %v6375_v54 = vpop.f32.mrb[10].mxu1 }
  0xed   :  { %v724_v55 = vadd.f32 %v6395_v53, %v8588_v63  ;;  %v718_v56 = vpop.f32.mrb[11].mxu0  ;;  %v515_v57 = vadd.f32 %v6375_v54, %v8586_v62  ;;  %v509_v58 = vpop.f32.mrb[11].mxu1 }
  0xee   :  { %v719_v59 = vadd.f32 %v718_v56, %v8584_v61  ;;  %v510_v10 = vadd.f32 %v509_v58, %v8582_v60 }
  0xef   :  { %799 = vst.msk [vmem:[#allocation2 + $0x108] sm:$0xff] %vm146_vm0, %v724_v55  ;;  %574 = vst.msk [vmem:[#allocation2 + $0xa8] sm:$0xff] %vm146_vm0, %v515_v57 }
  0xf0   :  { %798 = vst.msk [vmem:[#allocation2 + $0x100] sm:$0xff] %vm146_vm0, %v719_v59  ;;  %v6398_v11 = vpop.f32.mrb[12].mxu0  ;;  %573 = vst.msk [vmem:[#allocation2 + $0xa0] sm:$0xff] %vm146_vm0, %v510_v10  ;;  %v6378_v12 = vpop.f32.mrb[12].mxu1 }
  0xf1   :  { %v734_v13 = vadd.f32 %v6398_v11, %v8590_v0  ;;  %v728_v14 = vpop.f32.mrb[13].mxu0  ;;  %v525_v15 = vadd.f32 %v6378_v12, %v8594_v2  ;;  %v519_v16 = vpop.f32.mrb[13].mxu1 }
  0xf2   :  { %v729_v17 = vadd.f32 %v728_v14, %v8592_v1  ;;  %v520_v18 = vadd.f32 %v519_v16, %v8596_v3 }
  0xf3   :  { %801 = vst.msk [vmem:[#allocation2 + $0x118] sm:$0xff] %vm146_vm0, %v734_v13  ;;  %576 = vst.msk [vmem:[#allocation2 + $0xb8] sm:$0xff] %vm146_vm0, %v525_v15 }
  0xf4   :  { %800 = vst.msk [vmem:[#allocation2 + $0x110] sm:$0xff] %vm146_vm0, %v729_v17  ;;  %v6401_v19 = vpop.f32.mrb[14].mxu0  ;;  %575 = vst.msk [vmem:[#allocation2 + $0xb0] sm:$0xff] %vm146_vm0, %v520_v18  ;;  %v6381_v20 = vpop.f32.mrb[14].mxu1 }
  0xf5   :  { %v744_v21 = vadd.f32 %v6401_v19, %v8586_v62  ;;  %v738_v23 = vpop.f32.mrb[15].mxu0  ;;  %v535_v24 = vadd.f32 %v6381_v20, %v8598_v4  ;;  %v529_v25 = vpop.f32.mrb[15].mxu1 }
  0xf6   :  { %v739_v26 = vadd.f32 %v738_v23, %v8582_v60  ;;  %v530_v29 = vadd.f32 %v529_v25, %v8600_v5 }
  0xf7   :  { %803 = vst.msk [vmem:[#allocation2 + $0x128] sm:$0xff] %vm146_vm0, %v744_v21  ;;  %578 = vst.msk [vmem:[#allocation2 + $0xc8] sm:$0xff] %vm146_vm0, %v535_v24 }
  0xf8   :  { %802 = vst.msk [vmem:[#allocation2 + $0x120] sm:$0xff] %vm146_vm0, %v739_v26  ;;  %v6404_v30 = vpop.f32.mrb[16].mxu0  ;;  %577 = vst.msk [vmem:[#allocation2 + $0xc0] sm:$0xff] %vm146_vm0, %v530_v29  ;;  %v6384_v31 = vpop.f32.mrb[16].mxu1 }
  0xf9   :  { %v754_v32 = vadd.f32 %v6404_v30, %v8594_v2  ;;  %v748_v33 = vpop.f32.mrb[17].mxu0  ;;  %v545_v34 = vadd.f32 %v6384_v31, %v8606_v8  ;;  %v539_v35 = vpop.f32.mrb[17].mxu1 }
  0xfa   :  { %v749_v36 = vadd.f32 %v748_v33, %v8596_v3  ;;  %v540_v37 = vadd.f32 %v539_v35, %v8608_v9 }
  0xfb   :  { %805 = vst.msk [vmem:[#allocation2 + $0x138] sm:$0xff] %vm146_vm0, %v754_v32  ;;  %580 = vst.msk [vmem:[#allocation2 + $0xd8] sm:$0xff] %vm146_vm0, %v545_v34 }
  0xfc   :  { %804 = vst.msk [vmem:[#allocation2 + $0x130] sm:$0xff] %vm146_vm0, %v749_v36  ;;  %v6407_v38 = vpop.f32.mrb[18].mxu0  ;;  %579 = vst.msk [vmem:[#allocation2 + $0xd0] sm:$0xff] %vm146_vm0, %v540_v37  ;;  %v6387_v39 = vpop.f32.mrb[18].mxu1 }
  0xfd   :  { %v764_v40 = vadd.f32 %v6407_v38, %v8598_v4  ;;  %v758_v41 = vpop.f32.mrb[19].mxu0  ;;  %v555_v42 = vadd.f32 %v6387_v39, %v8602_v6  ;;  %v549_v43 = vpop.f32.mrb[19].mxu1 }
  0xfe   :  { %v759_v44 = vadd.f32 %v758_v41, %v8600_v5  ;;  %v550_v45 = vadd.f32 %v549_v43, %v8604_v7 }
  0xff   :  { %807 = vst.msk [vmem:[#allocation2 + $0x148] sm:$0xff] %vm146_vm0, %v764_v40  ;;  %582 = vst.msk [vmem:[#allocation2 + $0xe8] sm:$0xff] %vm146_vm0, %v555_v42 }
 0x100   :  { %806 = vst.msk [vmem:[#allocation2 + $0x140] sm:$0xff] %vm146_vm0, %v759_v44  ;;  %v6410_v46 = vpop.f32.mrb[20].mxu0  ;;  %581 = vst.msk [vmem:[#allocation2 + $0xe0] sm:$0xff] %vm146_vm0, %v550_v45  ;;  %v6390_v47 = vpop.f32.mrb[20].mxu1 }
 0x101   :  { %v774_v48 = vadd.f32 %v6410_v46, %v8606_v8  ;;  %v768_v49 = vpop.f32.mrb[21].mxu0  ;;  %v565_v50 = vadd.f32 %v6390_v47, %v8623_v27  ;;  %v559_v51 = vpop.f32.mrb[21].mxu1 }
 0x102   :  { %v769_v52 = vadd.f32 %v768_v49, %v8608_v9  ;;  %v560_v53 = vadd.f32 %v559_v51, %v8625_v28 }
 0x103   :  { %809 = vst.msk [vmem:[#allocation2 + $0x158] sm:$0xff] %vm146_vm0, %v774_v48  ;;  %584 = vst.msk [vmem:[#allocation2 + $0xf8] sm:$0xff] %vm146_vm0, %v565_v50 }
 0x104   :  { %808 = vst.msk [vmem:[#allocation2 + $0x150] sm:$0xff] %vm146_vm0, %v769_v52  ;;  %v6413_v54 = vpop.f32.mrb[22].mxu0  ;;  %583 = vst.msk [vmem:[#allocation2 + $0xf0] sm:$0xff] %vm146_vm0, %v560_v53  ;;  %v6421_v55 = vpop.f32.mrb[22].mxu1 }
 0x105   :  { %v784_v56 = vadd.f32 %v6413_v54, %v8602_v6  ;;  %v778_v57 = vpop.f32.mrb[23].mxu0  ;;  %v953_v58 = vadd.f32 %v6421_v55, %v8588_v63  ;;  %v947_v59 = vpop.f32.mrb[23].mxu1 }
 0x106   :  { %v779_v10 = vadd.f32 %v778_v57, %v8604_v7  ;;  %v948_v11 = vadd.f32 %v947_v59, %v8584_v61 }
 0x107   :  { %811 = vst.msk [vmem:[#allocation2 + $0x168] sm:$0xff] %vm146_vm0, %v784_v56  ;;  %1028 = vst.msk [vmem:[#allocation2 + $0x188] sm:$0xff] %vm146_vm0, %v953_v58 }
 0x108   :  { %810 = vst.msk [vmem:[#allocation2 + $0x160] sm:$0xff] %vm146_vm0, %v779_v10  ;;  %v6416_v12 = vpop.f32.mrb[24].mxu0  ;;  %1027 = vst.msk [vmem:[#allocation2 + $0x180] sm:$0xff] %vm146_vm0, %v948_v11  ;;  %v6424_v13 = vpop.f32.mrb[24].mxu1 }
 0x109   :  { %v794_v14 = vadd.f32 %v6416_v12, %v8623_v27  ;;  %v788_v15 = vpop.f32.mrb[25].mxu0  ;;  %v963_v16 = vadd.f32 %v6424_v13, %v8590_v0  ;;  %v957_v17 = vpop.f32.mrb[25].mxu1 }
 0x10a   :  { %v789_v18 = vadd.f32 %v788_v15, %v8625_v28  ;;  %v958_v19 = vadd.f32 %v957_v17, %v8592_v1 }
 0x10b   :  { %813 = vst.msk [vmem:[#allocation2 + $0x178] sm:$0xff] %vm146_vm0, %v794_v14  ;;  %1030 = vst.msk [vmem:[#allocation2 + $0x198] sm:$0xff] %vm146_vm0, %v963_v16 }
 0x10c   :  { %812 = vst.msk [vmem:[#allocation2 + $0x170] sm:$0xff] %vm146_vm0, %v789_v18  ;;  %v6447_v20 = vpop.f32.mrb[26].mxu0  ;;  %1029 = vst.msk [vmem:[#allocation2 + $0x190] sm:$0xff] %vm146_vm0, %v958_v19  ;;  %v6427_v21 = vpop.f32.mrb[26].mxu1 }
 0x10d   :  { %v1182_v23 = vadd.f32 %v6447_v20, %v8588_v63  ;;  %v1176_v24 = vpop.f32.mrb[27].mxu0  ;;  %v973_v25 = vadd.f32 %v6427_v21, %v8586_v62  ;;  %v967_v26 = vpop.f32.mrb[27].mxu1 }
 0x10e   :  { %v1177_v29 = vadd.f32 %v1176_v24, %v8584_v61  ;;  %v968_v30 = vadd.f32 %v967_v26, %v8582_v60 }
 0x10f   :  { %1257 = vst.msk [vmem:[#allocation2 + $0x208] sm:$0xff] %vm146_vm0, %v1182_v23  ;;  %1032 = vst.msk [vmem:[#allocation2 + $0x1a8] sm:$0xff] %vm146_vm0, %v973_v25 }
 0x110   :  { %1256 = vst.msk [vmem:[#allocation2 + $0x200] sm:$0xff] %vm146_vm0, %v1177_v29  ;;  %v6450_v31 = vpop.f32.mrb[28].mxu0  ;;  %1031 = vst.msk [vmem:[#allocation2 + $0x1a0] sm:$0xff] %vm146_vm0, %v968_v30  ;;  %v6430_v32 = vpop.f32.mrb[28].mxu1 }
 0x111   :  { %v1192_v33 = vadd.f32 %v6450_v31, %v8590_v0  ;;  %v1186_v34 = vpop.f32.mrb[29].mxu0  ;;  %v983_v35 = vadd.f32 %v6430_v32, %v8594_v2  ;;  %v977_v36 = vpop.f32.mrb[29].mxu1 }
 0x112   :  { %v1187_v37 = vadd.f32 %v1186_v34, %v8592_v1  ;;  %v978_v38 = vadd.f32 %v977_v36, %v8596_v3 }
 0x113   :  { %1259 = vst.msk [vmem:[#allocation2 + $0x218] sm:$0xff] %vm146_vm0, %v1192_v33  ;;  %1034 = vst.msk [vmem:[#allocation2 + $0x1b8] sm:$0xff] %vm146_vm0, %v983_v35 }
 0x114   :  { %1258 = vst.msk [vmem:[#allocation2 + $0x210] sm:$0xff] %vm146_vm0, %v1187_v37  ;;  %v6453_v39 = vpop.f32.mrb[30].mxu0  ;;  %1033 = vst.msk [vmem:[#allocation2 + $0x1b0] sm:$0xff] %vm146_vm0, %v978_v38  ;;  %v6433_v40 = vpop.f32.mrb[30].mxu1 }
 0x115   :  { %v1202_v41 = vadd.f32 %v6453_v39, %v8586_v62  ;;  %v1196_v42 = vpop.f32.mrb[31].mxu0  ;;  %v993_v43 = vadd.f32 %v6433_v40, %v8598_v4  ;;  %v987_v44 = vpop.f32.mrb[31].mxu1 }
 0x116   :  { %v1197_v45 = vadd.f32 %v1196_v42, %v8582_v60  ;;  %v988_v46 = vadd.f32 %v987_v44, %v8600_v5 }
 0x117   :  { %1261 = vst.msk [vmem:[#allocation2 + $0x228] sm:$0xff] %vm146_vm0, %v1202_v41  ;;  %1036 = vst.msk [vmem:[#allocation2 + $0x1c8] sm:$0xff] %vm146_vm0, %v993_v43 }
 0x118   :  { %1260 = vst.msk [vmem:[#allocation2 + $0x220] sm:$0xff] %vm146_vm0, %v1197_v45  ;;  %v6456_v47 = vpop.f32.mrb[32].mxu0  ;;  %1035 = vst.msk [vmem:[#allocation2 + $0x1c0] sm:$0xff] %vm146_vm0, %v988_v46  ;;  %v6436_v48 = vpop.f32.mrb[32].mxu1 }
 0x119   :  { %v1212_v49 = vadd.f32 %v6456_v47, %v8594_v2  ;;  %v1206_v50 = vpop.f32.mrb[33].mxu0  ;;  %v1003_v51 = vadd.f32 %v6436_v48, %v8606_v8  ;;  %v997_v52 = vpop.f32.mrb[33].mxu1 }
 0x11a   :  { %v1207_v53 = vadd.f32 %v1206_v50, %v8596_v3  ;;  %v998_v54 = vadd.f32 %v997_v52, %v8608_v9 }
 0x11b   :  { %1263 = vst.msk [vmem:[#allocation2 + $0x238] sm:$0xff] %vm146_vm0, %v1212_v49  ;;  %1038 = vst.msk [vmem:[#allocation2 + $0x1d8] sm:$0xff] %vm146_vm0, %v1003_v51 }
 0x11c   :  { %1262 = vst.msk [vmem:[#allocation2 + $0x230] sm:$0xff] %vm146_vm0, %v1207_v53  ;;  %v6459_v55 = vpop.f32.mrb[34].mxu0  ;;  %1037 = vst.msk [vmem:[#allocation2 + $0x1d0] sm:$0xff] %vm146_vm0, %v998_v54  ;;  %v6439_v56 = vpop.f32.mrb[34].mxu1 }
 0x11d   :  { %v1222_v57 = vadd.f32 %v6459_v55, %v8598_v4  ;;  %v1216_v58 = vpop.f32.mrb[35].mxu0  ;;  %v1013_v59 = vadd.f32 %v6439_v56, %v8602_v6  ;;  %v1007_v10 = vpop.f32.mrb[35].mxu1 }
 0x11e   :  { %v1217_v11 = vadd.f32 %v1216_v58, %v8600_v5  ;;  %v1008_v12 = vadd.f32 %v1007_v10, %v8604_v7 }
 0x11f   :  { %1265 = vst.msk [vmem:[#allocation2 + $0x248] sm:$0xff] %vm146_vm0, %v1222_v57  ;;  %1040 = vst.msk [vmem:[#allocation2 + $0x1e8] sm:$0xff] %vm146_vm0, %v1013_v59 }
 0x120   :  { %1264 = vst.msk [vmem:[#allocation2 + $0x240] sm:$0xff] %vm146_vm0, %v1217_v11  ;;  %v6462_v13 = vpop.f32.mrb[36].mxu0  ;;  %1039 = vst.msk [vmem:[#allocation2 + $0x1e0] sm:$0xff] %vm146_vm0, %v1008_v12  ;;  %v6442_v14 = vpop.f32.mrb[36].mxu1 }
 0x121   :  { %v1232_v15 = vadd.f32 %v6462_v13, %v8606_v8  ;;  %v1226_v16 = vpop.f32.mrb[37].mxu0  ;;  %v1023_v17 = vadd.f32 %v6442_v14, %v8623_v27  ;;  %v1017_v18 = vpop.f32.mrb[37].mxu1 }
 0x122   :  { %v1227_v19 = vadd.f32 %v1226_v16, %v8608_v9  ;;  %v1018_v20 = vadd.f32 %v1017_v18, %v8625_v28 }
 0x123   :  { %1267 = vst.msk [vmem:[#allocation2 + $0x258] sm:$0xff] %vm146_vm0, %v1232_v15  ;;  %1042 = vst.msk [vmem:[#allocation2 + $0x1f8] sm:$0xff] %vm146_vm0, %v1023_v17 }
 0x124   :  { %1266 = vst.msk [vmem:[#allocation2 + $0x250] sm:$0xff] %vm146_vm0, %v1227_v19  ;;  %v6465_v21 = vpop.f32.mrb[38].mxu0  ;;  %1041 = vst.msk [vmem:[#allocation2 + $0x1f0] sm:$0xff] %vm146_vm0, %v1018_v20  ;;  %v6473_v23 = vpop.f32.mrb[38].mxu1 }
 0x125   :  { %v1242_v24 = vadd.f32 %v6465_v21, %v8602_v6  ;;  %v1236_v25 = vpop.f32.mrb[39].mxu0  ;;  %v1411_v26 = vadd.f32 %v6473_v23, %v8588_v63  ;;  %v1405_v29 = vpop.f32.mrb[39].mxu1 }
 0x126   :  { %v1237_v30 = vadd.f32 %v1236_v25, %v8604_v7  ;;  %v1406_v31 = vadd.f32 %v1405_v29, %v8584_v61 }
 0x127   :  { %1269 = vst.msk [vmem:[#allocation2 + $0x268] sm:$0xff] %vm146_vm0, %v1242_v24  ;;  %1486 = vst.msk [vmem:[#allocation2 + $0x288] sm:$0xff] %vm146_vm0, %v1411_v26 }
 0x128   :  { %1268 = vst.msk [vmem:[#allocation2 + $0x260] sm:$0xff] %vm146_vm0, %v1237_v30  ;;  %v6468_v32 = vpop.f32.mrb[40].mxu0  ;;  %1485 = vst.msk [vmem:[#allocation2 + $0x280] sm:$0xff] %vm146_vm0, %v1406_v31  ;;  %v6476_v33 = vpop.f32.mrb[40].mxu1 }
 0x129   :  { %v1252_v34 = vadd.f32 %v6468_v32, %v8623_v27  ;;  %v1246_v35 = vpop.f32.mrb[41].mxu0  ;;  %v1421_v36 = vadd.f32 %v6476_v33, %v8590_v0  ;;  %v1415_v37 = vpop.f32.mrb[41].mxu1 }
 0x12a   :  { %v1247_v38 = vadd.f32 %v1246_v35, %v8625_v28  ;;  %v1416_v39 = vadd.f32 %v1415_v37, %v8592_v1 }
 0x12b   :  { %1271 = vst.msk [vmem:[#allocation2 + $0x278] sm:$0xff] %vm146_vm0, %v1252_v34  ;;  %1488 = vst.msk [vmem:[#allocation2 + $0x298] sm:$0xff] %vm146_vm0, %v1421_v36 }
 0x12c   :  { %1270 = vst.msk [vmem:[#allocation2 + $0x270] sm:$0xff] %vm146_vm0, %v1247_v38  ;;  %v6499_v40 = vpop.f32.mrb[42].mxu0  ;;  %1487 = vst.msk [vmem:[#allocation2 + $0x290] sm:$0xff] %vm146_vm0, %v1416_v39  ;;  %v6479_v41 = vpop.f32.mrb[42].mxu1 }
 0x12d   :  { %v1640_v42 = vadd.f32 %v6499_v40, %v8588_v63  ;;  %v1634_v43 = vpop.f32.mrb[43].mxu0  ;;  %v1431_v44 = vadd.f32 %v6479_v41, %v8586_v62  ;;  %v1425_v45 = vpop.f32.mrb[43].mxu1 }
 0x12e   :  { %v1635_v46 = vadd.f32 %v1634_v43, %v8584_v61  ;;  %v1426_v47 = vadd.f32 %v1425_v45, %v8582_v60 }
 0x12f   :  { %1715 = vst.msk [vmem:[#allocation2 + $0x308] sm:$0xff] %vm146_vm0, %v1640_v42  ;;  %1490 = vst.msk [vmem:[#allocation2 + $0x2a8] sm:$0xff] %vm146_vm0, %v1431_v44 }
 0x130   :  { %1714 = vst.msk [vmem:[#allocation2 + $0x300] sm:$0xff] %vm146_vm0, %v1635_v46  ;;  %v6502_v48 = vpop.f32.mrb[44].mxu0  ;;  %1489 = vst.msk [vmem:[#allocation2 + $0x2a0] sm:$0xff] %vm146_vm0, %v1426_v47  ;;  %v6482_v49 = vpop.f32.mrb[44].mxu1 }
 0x131   :  { %v1650_v50 = vadd.f32 %v6502_v48, %v8590_v0  ;;  %v1644_v51 = vpop.f32.mrb[45].mxu0  ;;  %v1441_v52 = vadd.f32 %v6482_v49, %v8594_v2  ;;  %v1435_v53 = vpop.f32.mrb[45].mxu1 }
 0x132   :  { %v1645_v54 = vadd.f32 %v1644_v51, %v8592_v1  ;;  %v1436_v55 = vadd.f32 %v1435_v53, %v8596_v3 }
 0x133   :  { %1717 = vst.msk [vmem:[#allocation2 + $0x318] sm:$0xff] %vm146_vm0, %v1650_v50  ;;  %1492 = vst.msk [vmem:[#allocation2 + $0x2b8] sm:$0xff] %vm146_vm0, %v1441_v52 }
 0x134   :  { %1716 = vst.msk [vmem:[#allocation2 + $0x310] sm:$0xff] %vm146_vm0, %v1645_v54  ;;  %v6505_v56 = vpop.f32.mrb[46].mxu0  ;;  %1491 = vst.msk [vmem:[#allocation2 + $0x2b0] sm:$0xff] %vm146_vm0, %v1436_v55  ;;  %v6485_v57 = vpop.f32.mrb[46].mxu1 }
 0x135   :  { %v1660_v58 = vadd.f32 %v6505_v56, %v8586_v62  ;;  %v1654_v59 = vpop.f32.mrb[47].mxu0  ;;  %v1451_v10 = vadd.f32 %v6485_v57, %v8598_v4  ;;  %v1445_v11 = vpop.f32.mrb[47].mxu1  ;;  %v2024_v56 = vld [vmem:[#allocation2 + $0x8] sm:$0xff] }
 0x136   :  { %v1655_v12 = vadd.f32 %v1654_v59, %v8582_v60  ;;  %v1446_v13 = vadd.f32 %v1445_v11, %v8600_v5 }
 0x137   :  { %1719 = vst.msk [vmem:[#allocation2 + $0x328] sm:$0xff] %vm146_vm0, %v1660_v58  ;;  %1494 = vst.msk [vmem:[#allocation2 + $0x2c8] sm:$0xff] %vm146_vm0, %v1451_v10  ;;  %v2023_v10 = vld [vmem:[#allocation2] sm:$0xff] }
 0x138   :  { %1718 = vst.msk [vmem:[#allocation2 + $0x320] sm:$0xff] %vm146_vm0, %v1655_v12  ;;  %v6508_v14 = vpop.f32.mrb[48].mxu0  ;;  %1493 = vst.msk [vmem:[#allocation2 + $0x2c0] sm:$0xff] %vm146_vm0, %v1446_v13  ;;  %v6488_v15 = vpop.f32.mrb[48].mxu1 }
 0x139   :  { %v1670_v16 = vadd.f32 %v6508_v14, %v8594_v2  ;;  %v1664_v17 = vpop.f32.mrb[49].mxu0  ;;  %v1461_v18 = vadd.f32 %v6488_v15, %v8606_v8  ;;  %v1455_v19 = vpop.f32.mrb[49].mxu1 }
 0x13a   :  { %v1665_v20 = vadd.f32 %v1664_v17, %v8596_v3  ;;  %v1456_v21 = vadd.f32 %v1455_v19, %v8608_v9 }
 0x13b   :  { %1721 = vst.msk [vmem:[#allocation2 + $0x338] sm:$0xff] %vm146_vm0, %v1670_v16  ;;  %1496 = vst.msk [vmem:[#allocation2 + $0x2d8] sm:$0xff] %vm146_vm0, %v1461_v18  ;;  %v2026_v16 = vld [vmem:[#allocation2 + $0x18] sm:$0xff] }
 0x13c   :  { %1720 = vst.msk [vmem:[#allocation2 + $0x330] sm:$0xff] %vm146_vm0, %v1665_v20  ;;  %v6511_v23 = vpop.f32.mrb[50].mxu0  ;;  %1495 = vst.msk [vmem:[#allocation2 + $0x2d0] sm:$0xff] %vm146_vm0, %v1456_v21  ;;  %v6491_v24 = vpop.f32.mrb[50].mxu1  ;;  %v2025_v20 = vld [vmem:[#allocation2 + $0x10] sm:$0xff] }
 0x13d   :  { %v1680_v25 = vadd.f32 %v6511_v23, %v8598_v4  ;;  %v1674_v26 = vpop.f32.mrb[51].mxu0  ;;  %v1471_v29 = vadd.f32 %v6491_v24, %v8602_v6  ;;  %v1465_v30 = vpop.f32.mrb[51].mxu1 }
 0x13e   :  { %v1675_v31 = vadd.f32 %v1674_v26, %v8600_v5  ;;  %v1466_v32 = vadd.f32 %v1465_v30, %v8604_v7 }
 0x13f   :  { %1723 = vst.msk [vmem:[#allocation2 + $0x348] sm:$0xff] %vm146_vm0, %v1680_v25  ;;  %1498 = vst.msk [vmem:[#allocation2 + $0x2e8] sm:$0xff] %vm146_vm0, %v1471_v29  ;;  %v2028_v29 = vld [vmem:[#allocation2 + $0x28] sm:$0xff] }
 0x140   :  { %1722 = vst.msk [vmem:[#allocation2 + $0x340] sm:$0xff] %vm146_vm0, %v1675_v31  ;;  %v6514_v33 = vpop.f32.mrb[52].mxu0  ;;  %1497 = vst.msk [vmem:[#allocation2 + $0x2e0] sm:$0xff] %vm146_vm0, %v1466_v32  ;;  %v6494_v34 = vpop.f32.mrb[52].mxu1 }
 0x141   :  { %v1690_v35 = vadd.f32 %v6514_v33, %v8606_v8  ;;  %v1684_v36 = vpop.f32.mrb[53].mxu0  ;;  %v1481_v37 = vadd.f32 %v6494_v34, %v8623_v27  ;;  %v1475_v38 = vpop.f32.mrb[53].mxu1  ;;  %v2027_v33 = vld [vmem:[#allocation2 + $0x20] sm:$0xff] }
 0x142   :  { %v1685_v39 = vadd.f32 %v1684_v36, %v8608_v9  ;;  %v1476_v40 = vadd.f32 %v1475_v38, %v8625_v28 }
 0x143   :  { %1725 = vst.msk [vmem:[#allocation2 + $0x358] sm:$0xff] %vm146_vm0, %v1690_v35  ;;  %1500 = vst.msk [vmem:[#allocation2 + $0x2f8] sm:$0xff] %vm146_vm0, %v1481_v37 }
 0x144   :  { %1724 = vst.msk [vmem:[#allocation2 + $0x350] sm:$0xff] %vm146_vm0, %v1685_v39  ;;  %1499 = vst.msk [vmem:[#allocation2 + $0x2f0] sm:$0xff] %vm146_vm0, %v1476_v40  ;;  %v6517_v41 = vpop.f32.mrb[54].mxu0  ;;  %v6525_v42 = vpop.f32.mrb[54].mxu1  ;;  %v2030_v39 = vld [vmem:[#allocation2 + $0x38] sm:$0xff] }
 0x145   :  { %v1700_v43 = vadd.f32 %v6517_v41, %v8602_v6  ;;  %v1869_v44 = vadd.f32 %v6525_v42, %v8588_v63  ;;  %v1694_v45 = vpop.f32.mrb[55].mxu0  ;;  %v1863_v46 = vpop.f32.mrb[55].mxu1 }
 0x146   :  { %v1695_v47 = vadd.f32 %v1694_v45, %v8604_v7  ;;  %v1864_v48 = vadd.f32 %v1863_v46, %v8584_v61 }
 0x147   :  { %1727 = vst.msk [vmem:[#allocation2 + $0x368] sm:$0xff] %vm146_vm0, %v1700_v43  ;;  %1944 = vst.msk [vmem:[#allocation2 + $0x388] sm:$0xff] %vm146_vm0, %v1869_v44  ;;  %v2029_v43 = vld [vmem:[#allocation2 + $0x30] sm:$0xff] }
 0x148   :  { %1726 = vst.msk [vmem:[#allocation2 + $0x360] sm:$0xff] %vm146_vm0, %v1695_v47  ;;  %1943 = vst.msk [vmem:[#allocation2 + $0x380] sm:$0xff] %vm146_vm0, %v1864_v48  ;;  %v6520_v49 = vpop.f32.mrb[56].mxu0  ;;  %v6528_v50 = vpop.f32.mrb[56].mxu1 }
 0x149   :  { %v1710_v51 = vadd.f32 %v6520_v49, %v8623_v27  ;;  %v1879_v63 = vadd.f32 %v6528_v50, %v8590_v0  ;;  %v1704_v52 = vpop.f32.mrb[57].mxu0  ;;  %v1873_v53 = vpop.f32.mrb[57].mxu1 }
 0x14a   :  { %v1705_v54 = vadd.f32 %v1704_v52, %v8625_v28  ;;  %v1874_v61 = vadd.f32 %v1873_v53, %v8592_v1 }
 0x14b   :  { %1729 = vst.msk [vmem:[#allocation2 + $0x378] sm:$0xff] %vm146_vm0, %v1710_v51  ;;  %1946 = vst.msk [vmem:[#allocation2 + $0x398] sm:$0xff] %vm146_vm0, %v1879_v63  ;;  %v2032_v63 = vld [vmem:[#allocation2 + $0x48] sm:$0xff] }
 0x14c   :  { %1728 = vst.msk [vmem:[#allocation2 + $0x370] sm:$0xff] %vm146_vm0, %v1705_v54  ;;  %1945 = vst.msk [vmem:[#allocation2 + $0x390] sm:$0xff] %vm146_vm0, %v1874_v61  ;;  %v6531_v55 = vpop.f32.mrb[58].mxu1  ;;  %v6551_v57 = vpop.f32.mrb[58].mxu0 }
 0x14d   :  { %v1889_v58 = vadd.f32 %v6531_v55, %v8586_v62  ;;  %v2234_v0 = vadd.f32 %v6551_v57, %v2024_v56  ;;  %v1883_v59 = vpop.f32.mrb[59].mxu1  ;;  %v2154_v11 = vpop.f32.mrb[59].mxu0  ;;  %v2031_v57 = vld [vmem:[#allocation2 + $0x40] sm:$0xff] }
 0x14e   :  { %v1884_v12 = vadd.f32 %v1883_v59, %v8582_v60  ;;  %v2233_v1 = vadd.f32 %v2154_v11, %v2023_v10  ;;  %v2034_v11 = vld [vmem:[#allocation2 + $0x58] sm:$0xff] }
 0x14f   :  { %1948 = vst.msk [vmem:[#allocation2 + $0x3a8] sm:$0xff] %vm146_vm0, %v1889_v58  ;;  %v5677_v13 = vmul.f32 -1.442695, %v2234_v0 }
 0x150   :  { %1947 = vst.msk [vmem:[#allocation2 + $0x3a0] sm:$0xff] %vm146_vm0, %v1884_v12  ;;  %v5676_v14 = vmul.f32 -1.442695, %v2233_v1  ;;  %v6534_v15 = vpop.f32.mrb[60].mxu1  ;;  %v6554_v17 = vpop.f32.mrb[60].mxu0 }
 0x151   :  { %7035 = vpow2.f32 %v5677_v13  ;;  %v1899_v18 = vadd.f32 %v6534_v15, %v8594_v2  ;;  %v2236_v62 = vadd.f32 %v6554_v17, %v2026_v16  ;;  %v1893_v19 = vpop.f32.mrb[61].mxu1  ;;  %v2164_v21 = vpop.f32.mrb[61].mxu0  ;;  %v2033_v17 = vld [vmem:[#allocation2 + $0x50] sm:$0xff] }
 0x152   :  { %7037 = vpow2.f32 %v5676_v14  ;;  %v1894_v60 = vadd.f32 %v1893_v19, %v8596_v3  ;;  %v2235_v23 = vadd.f32 %v2164_v21, %v2025_v20  ;;  %v2036_v20 = vld [vmem:[#allocation2 + $0x68] sm:$0xff] }
 0x153   :  { %1950 = vst.msk [vmem:[#allocation2 + $0x3b8] sm:$0xff] %vm146_vm0, %v1899_v18  ;;  %v5679_v24 = vmul.f32 -1.442695, %v2236_v62 }
 0x154   :  { %1949 = vst.msk [vmem:[#allocation2 + $0x3b0] sm:$0xff] %vm146_vm0, %v1894_v60  ;;  %v5678_v25 = vmul.f32 -1.442695, %v2235_v23  ;;  %v6537_v26 = vpop.f32.mrb[62].mxu1  ;;  %v6557_v30 = vpop.f32.mrb[62].mxu0  ;;  %v2035_v23 = vld [vmem:[#allocation2 + $0x60] sm:$0xff] }
 0x155   :  { %7039 = vpow2.f32 %v5679_v24  ;;  %v1909_v2 = vadd.f32 %v6537_v26, %v8598_v4  ;;  %v2238_v31 = vadd.f32 %v6557_v30, %v2028_v29  ;;  %v1903_v32 = vpop.f32.mrb[63].mxu1  ;;  %v2174_v34 = vpop.f32.mrb[63].mxu0 }
 0x156   :  { %7041 = vpow2.f32 %v5678_v25  ;;  %v1904_v3 = vadd.f32 %v1903_v32, %v8600_v5  ;;  %v2237_v35 = vadd.f32 %v2174_v34, %v2027_v33 }
 0x157   :  { %1952 = vst.msk [vmem:[#allocation2 + $0x3c8] sm:$0xff] %vm146_vm0, %v1909_v2  ;;  %v5681_v36 = vmul.f32 -1.442695, %v2238_v31  ;;  %v2038_v31 = vld [vmem:[#allocation2 + $0x78] sm:$0xff] }
 0x158   :  { %1951 = vst.msk [vmem:[#allocation2 + $0x3c0] sm:$0xff] %vm146_vm0, %v1904_v3  ;;  %v5680_v37 = vmul.f32 -1.442695, %v2237_v35  ;;  %v6540_v38 = vpop.f32.mrb[64].mxu1  ;;  %v6560_v40 = vpop.f32.mrb[64].mxu0  ;;  %v2037_v3 = vld [vmem:[#allocation2 + $0x70] sm:$0xff] }
 0x159   :  { %7043 = vpow2.f32 %v5681_v36  ;;  %v1919_v4 = vadd.f32 %v6540_v38, %v8606_v8  ;;  %v2240_v41 = vadd.f32 %v6560_v40, %v2030_v39  ;;  %v1913_v42 = vpop.f32.mrb[65].mxu1  ;;  %v2184_v44 = vpop.f32.mrb[65].mxu0 }
 0x15a   :  { %7045 = vpow2.f32 %v5680_v37  ;;  %v1914_v5 = vadd.f32 %v1913_v42, %v8608_v9  ;;  %v2239_v45 = vadd.f32 %v2184_v44, %v2029_v43 }
 0x15b   :  { %v7036_v46 = vpop.eup %7035  ;;  %1954 = vst.msk [vmem:[#allocation2 + $0x3d8] sm:$0xff] %vm146_vm0, %v1919_v4  ;;  %v5683_v47 = vmul.f32 -1.442695, %v2240_v41 }
 0x15c   :  { %v7038_v48 = vpop.eup %7037  ;;  %v2262_v49 = vadd.f32 1.0, %v7036_v46  ;;  %1953 = vst.msk [vmem:[#allocation2 + $0x3d0] sm:$0xff] %vm146_vm0, %v1914_v5  ;;  %v5682_v50 = vmul.f32 -1.442695, %v2239_v45  ;;  %v6543_v51 = vpop.f32.mrb[66].mxu1 }
 0x15d   :  { %v6563_v8 = vpop.f32.mrb[66].mxu0  ;;  %v2261_v52 = vadd.f32 1.0, %v7038_v48  ;;  %7047 = vpow2.f32 %v5683_v47  ;;  %v1929_v53 = vadd.f32 %v6543_v51, %v8602_v6  ;;  %v1923_v61 = vpop.f32.mrb[67].mxu1 }
 0x15e   :  { %v2242_v54 = vadd.f32 %v6563_v8, %v2032_v63  ;;  %v2194_v9 = vpop.f32.mrb[67].mxu0  ;;  %7049 = vrcp.f32 %v2262_v49  ;;  %v1924_v55 = vadd.f32 %v1923_v61, %v8604_v7 }
 0x15f   :  { %v7040_v56 = vpop.eup %7039  ;;  %7051 = vrcp.f32 %v2261_v52  ;;  %1956 = vst.msk [vmem:[#allocation2 + $0x3e8] sm:$0xff] %vm146_vm0, %v1929_v53  ;;  %v2241_v59 = vadd.f32 %v2194_v9, %v2031_v57 }
 0x160   :  { %v7042_v58 = vpop.eup %7041  ;;  %v2264_v0 = vadd.f32 1.0, %v7040_v56  ;;  %7053 = vpow2.f32 %v5682_v50  ;;  %1955 = vst.msk [vmem:[#allocation2 + $0x3e0] sm:$0xff] %vm146_vm0, %v1924_v55  ;;  %v6546_v10 = vpop.f32.mrb[68].mxu1 }
 0x161   :  { %v6566_v6 = vpop.f32.mrb[68].mxu0  ;;  %v2263_v12 = vadd.f32 1.0, %v7042_v58  ;;  %7055 = vtanh.f32 %v2242_v54  ;;  %v1939_v1 = vadd.f32 %v6546_v10, %v8623_v27  ;;  %v1933_v7 = vpop.f32.mrb[69].mxu1 }
 0x162   :  { %v2244_v13 = vadd.f32 %v6566_v6, %v2034_v11  ;;  %v2204_v14 = vpop.f32.mrb[69].mxu0  ;;  %7057 = vrcp.f32 %v2264_v0  ;;  %v1934_v15 = vadd.f32 %v1933_v7, %v8625_v28 }
 0x163   :  { %v7044_v16 = vpop.eup %7043  ;;  %7059 = vrcp.f32 %v2263_v12  ;;  %1958 = vst.msk [vmem:[#allocation2 + $0x3f8] sm:$0xff] %vm146_vm0, %v1939_v1  ;;  %v2243_v19 = vadd.f32 %v2204_v14, %v2033_v17 }
 0x164   :  { %v7046_v18 = vpop.eup %7045  ;;  %v2286_v62 = vadd.f32 1.0, %v7044_v16  ;;  %7061 = vtanh.f32 %v2241_v59  ;;  %1957 = vst.msk [vmem:[#allocation2 + $0x3f0] sm:$0xff] %vm146_vm0, %v1934_v15  ;;  %v6569_v21 = vpop.f32.mrb[70].mxu0 }
 0x165   :  { %v2285_v27 = vadd.f32 1.0, %v7046_v18  ;;  %7063 = vtanh.f32 %v2244_v13  ;;  %v2246_v60 = vadd.f32 %v6569_v21, %v2036_v20  ;;  %v2214_v24 = vpop.f32.mrb[71].mxu0 }
 0x166   :  { %7065 = vrcp.f32 %v2286_v62  ;;  %v2245_v28 = vadd.f32 %v2214_v24, %v2035_v23  ;;  %v8885_v23 = vld [vmem:[%s9822_s3 + $0x8] sm:$0xff]  ;;  %v8892_v24 = vld [vmem:[%s9822_s3 + $0x10] sm:$0xff] }
 0x167   :  { %v7048_v25 = vpop.eup %7047  ;;  %7067 = vrcp.f32 %v2285_v27  ;;  %v5685_v26 = vmul.f32 -1.442695, %v2246_v60 }
 0x168   :  { %v7050_v29 = vpop.eup %7049  ;;  %v2288_v30 = vadd.f32 1.0, %v7048_v25  ;;  %7069 = vtanh.f32 %v2243_v19  ;;  %v5684_v2 = vmul.f32 -1.442695, %v2245_v28  ;;  %v6572_v32 = vpop.f32.mrb[72].mxu0  ;;  %v8899_v28 = vld [vmem:[%s9822_s3 + $0x18] sm:$0xff]  ;;  %v8906_v25 = vld [vmem:[%s9822_s3 + $0x20] sm:$0xff] }
 0x169   :  { %v7052_v33 = vpop.eup %7051  ;;  %7071 = vpow2.f32 %v5685_v26  ;;  %v2248_v34 = vadd.f32 %v6572_v32, %v2038_v31  ;;  %v2224_v35 = vpop.f32.mrb[73].mxu0  ;;  %v8913_v26 = vld [vmem:[%s9822_s3 + $0x28] sm:$0xff]  ;;  %v8948_v32 = vld [vmem:[%s9822_s3 + $0x50] sm:$0xff] }
 0x16a   :  { %v7054_v36 = vpop.eup %7053  ;;  %7073 = vrcp.f32 %v2288_v30  ;;  %v2247_v37 = vadd.f32 %v2224_v35, %v2037_v3  ;;  %v8927_v30 = vld [vmem:[%s9822_s3 + $0x38] sm:$0xff]  ;;  %v8941_v31 = vld [vmem:[%s9822_s3 + $0x48] sm:$0xff]  ;;  %v8976_v35 = vld [vmem:[%s9822_s3 + $0x70] sm:$0xff] }
 0x16b   :  { %v7056_v38 = vpop.eup %7055  ;;  %v2287_v39 = vadd.f32 1.0, %v7054_v36  ;;  %7075 = vpow2.f32 %v5684_v2  ;;  %v5687_v40 = vmul.f32 -1.442695, %v2248_v34  ;;  %v8934_v2 = vld [vmem:[%s9822_s3 + $0x40] sm:$0xff]  ;;  %v8969_v3 = vld [vmem:[%s9822_s3 + $0x68] sm:$0xff]  ;;  %v8983_v36 = vld [vmem:[%s9822_s3 + $0x78] sm:$0xff] }
 0x16c   :  { %v7058_v4 = vpop.eup %7057  ;;  %v2330_v41 = vmul.f32 %v7056_v38, %v7050_v29  ;;  %v5686_v42 = vmul.f32 -1.442695, %v2247_v37  ;;  %v8920_v29 = vld [vmem:[%s9822_s3 + $0x30] sm:$0xff]  ;;  %v8962_v34 = vld [vmem:[%s9822_s3 + $0x60] sm:$0xff]  ;;  %v2346_v38 = vld [vmem:[#allocation2 + $0x88] sm:$0xff] }
 0x16d   :  { %v7060_v43 = vpop.eup %7059  ;;  %7077 = vrcp.f32 %v2287_v39  ;;  %v8990_v37 = vld [vmem:[%s9822_s3] sm:$0xff] }
 0x16e   :  { %v7062_v44 = vpop.eup %7061  ;;  %7079 = vpow2.f32 %v5687_v40 }
 0x16f   :  { %v7064_v5 = vpop.eup %7063  ;;  %v2329_v45 = vmul.f32 %v7062_v44, %v7052_v33  ;;  %7081 = vpow2.f32 %v5686_v42  ;;  %v8955_v33 = vld [vmem:[%s9822_s3 + $0x58] sm:$0xff] }
 0x170   :  { %v7066_v46 = vpop.eup %7065  ;;  %v2332_v47 = vmul.f32 %v7064_v5, %v7058_v4  ;;  %v2345_v4 = vld [vmem:[#allocation2 + $0x80] sm:$0xff]  ;;  %v2348_v5 = vld [vmem:[#allocation2 + $0x98] sm:$0xff] }
 0x171   :  { %v7068_v48 = vpop.eup %7067  ;;  %v2326_v49 = vmul.f32 0.0, %v7066_v46 }
 0x172   :  { %v7070_v50 = vpop.eup %7069  ;;  %v2325_v51 = vmul.f32 0.0, %v7068_v48 }
 0x173   :  { %v7072_v63 = vpop.eup %7071  ;;  %v8870_v8 = vadd.f32 %v2330_v41, %v2326_v49  ;;  %v2331_v52 = vmul.f32 %v7070_v50, %v7060_v43 }
 0x174   :  { %v7074_v53 = vpop.eup %7073  ;;  %v8872_v54 = vadd.f32 %v2329_v45, %v2325_v51  ;;  %v2314_v61 = vadd.f32 1.0, %v7072_v63  ;;  %v2350_v63 = vld [vmem:[#allocation2 + $0xa8] sm:$0xff] }
 0x175   :  { %v7076_v9 = vpop.eup %7075  ;;  %v2328_v55 = vmul.f32 0.0, %v7074_v53  ;;  %7083 = vtanh.f32 %v8870_v8 }
 0x176   :  { %7085 = vtanh.f32 %v8872_v54  ;;  %v2313_v56 = vadd.f32 1.0, %v7076_v9 }
 0x177   :  { %v7078_v57 = vpop.eup %7077  ;;  %v8876_v58 = vadd.f32 %v2332_v47, %v2328_v55  ;;  %7087 = vrcp.f32 %v2314_v61  ;;  %v2347_v47 = vld [vmem:[#allocation2 + $0x90] sm:$0xff]  ;;  %v2349_v61 = vld [vmem:[#allocation2 + $0xa0] sm:$0xff] }
 0x178   :  { %v7080_v0 = vpop.eup %7079  ;;  %v2327_v59 = vmul.f32 0.0, %v7078_v57  ;;  %7089 = vrcp.f32 %v2313_v56 }
 0x179   :  { %v7082_v10 = vpop.eup %7081  ;;  %7091 = vtanh.f32 %v8876_v58  ;;  %v2316_v11 = vadd.f32 1.0, %v7080_v0  ;;  %v2352_v0 = vld [vmem:[#allocation2 + $0xb8] sm:$0xff] }
 0x17a   :  { %v8879_v6 = vadd.f32 %v2331_v52, %v2327_v59  ;;  %v2315_v12 = vadd.f32 1.0, %v7082_v10 }
 0x17b   :  { %7093 = vrcp.f32 %v2316_v11  ;;  %v2351_v11 = vld [vmem:[#allocation2 + $0xb0] sm:$0xff] }
 0x17c   :  { %7095 = vtanh.f32 %v8879_v6 }
 0x17d   :  { %7097 = vrcp.f32 %v2315_v12 }
 0x17f   :  { %v7084_v1 = vpop.eup %7083 }
 0x180   :  { %v7086_v13 = vpop.eup %7085 }
 0x181   :  { %v7088_v7 = vpop.eup %7087 }
 0x182   :  { %v7090_v14 = vpop.eup %7089  ;;  %v2342_v15 = vmul.f32 %v7088_v7, %v7084_v1 }
 0x183   :  { %v7092_v16 = vpop.eup %7091  ;;  %v2341_v17 = vmul.f32 %v7090_v14, %v7086_v13 }
 0x185   :  { %v7094_v18 = vpop.eup %7093  ;;  %v6926_v62 = vpack.c.bf16 %v2342_v15, %v2341_v17  ;;  %v2354_v17 = vld [vmem:[#allocation2 + $0xc8] sm:$0xff] }
 0x186   :  { %v7096_v19 = vpop.eup %7095  ;;  %v2344_v20 = vmul.f32 %v7094_v18, %v7092_v16 }
 0x187   :  { %v7098_v21 = vpop.eup %7097  ;;  %6927 = vmatprep.subr.bf16.mxu1 %v6926_v62 }
 0x188   :  { %6929 = vmatpush3.bf16.msra.mxu1 %v6926_v62  ;;  %v2343_v27 = vmul.f32 %v7098_v21, %v7096_v19 }
 0x18a   :  { %v6930_v60 = vpack.c.bf16 %v2344_v20, %v2343_v27  ;;  %v2353_v27 = vld [vmem:[#allocation2 + $0xc0] sm:$0xff] }
 0x18c   :  { %6931 = vmatprep.subr.bf16.mxu1 %v6930_v60 }
 0x18d   :  { %6933 = vmatpush3.bf16.msra.mxu1 %v6930_v60 }
 0x190   :  { %6582 = vmatmul.mubr.msk.f32.vlgmr.msra.gmra.mrb[70].mxu1 %vm2039_vm1, %v8885_v23 }
 0x191   :  { %6584 = vmatprep.mubr.msk.f32.mxu1 %vm2039_vm1, %v8892_v24 }
 0x194   :  { %6585 = vmatmul.mubr.msk.f32.gmra.mrb[72].mxu1 %vm2039_vm1, %v8899_v28 }
 0x195   :  { %6587 = vmatprep.mubr.msk.f32.mxu1 %vm2039_vm1, %v8906_v25 }
 0x198   :  { %6588 = vmatmul.mubr.msk.f32.gmra.mrb[74].mxu1 %vm2039_vm1, %v8913_v26 }
 0x199   :  { %6590 = vmatprep.mubr.msk.f32.mxu1 %vm2039_vm1, %v8920_v29 }
 0x19c   :  { %6591 = vmatmul.mubr.msk.f32.gmra.mrb[76].mxu1 %vm2039_vm1, %v8927_v30 }
 0x19d   :  { %6593 = vmatprep.mubr.msk.f32.mxu1 %vm2039_vm1, %v8934_v2 }
 0x1a0   :  { %6594 = vmatmul.mubr.msk.f32.gmra.mrb[78].mxu1 %vm2039_vm1, %v8941_v31 }
 0x1a1   :  { %6596 = vmatprep.mubr.msk.f32.mxu1 %vm2039_vm1, %v8948_v32 }
 0x1a4   :  { %6597 = vmatmul.mubr.msk.f32.gmra.mrb[80].mxu1 %vm2039_vm1, %v8955_v33 }
 0x1a5   :  { %6599 = vmatprep.mubr.msk.f32.mxu1 %vm2039_vm1, %v8962_v34 }
 0x1a8   :  { %6600 = vmatmul.mubr.msk.f32.gmra.mrb[82].mxu1 %vm2039_vm1, %v8969_v3 }
 0x1a9   :  { %6602 = vmatprep.mubr.msk.f32.mxu1 %vm2039_vm1, %v8976_v35 }
 0x1ac   :  { %6603 = vmatmul.mubr.msk.f32.gmra.mrb[84].mxu1 %vm2039_vm1, %v8983_v36 }
 0x1ad   :  { %6645 = vmatprep.mubr.msk.f32.mxu1 %vm2039_vm1, %v8990_v37 }
 0x263   :  { %v6583_v39 = vpop.f32.mrb[70].mxu1 }
 0x264   :  { %v2507_v40 = vadd.f32 %v6583_v39, %v2346_v38  ;;  %v2427_v41 = vpop.f32.mrb[71].mxu1 }
 0x265   :  { %v2506_v42 = vadd.f32 %v2427_v41, %v2345_v4 }
 0x266   :  { %v5705_v43 = vmul.f32 -1.442695, %v2507_v40  ;;  %v2356_v40 = vld [vmem:[#allocation2 + $0xd8] sm:$0xff] }
 0x267   :  { %v5704_v44 = vmul.f32 -1.442695, %v2506_v42  ;;  %v6586_v45 = vpop.f32.mrb[72].mxu1 }
 0x268   :  { %7099 = vpow2.f32 %v5705_v43  ;;  %v2509_v46 = vadd.f32 %v6586_v45, %v2348_v5  ;;  %v2437_v48 = vpop.f32.mrb[73].mxu1  ;;  %v2355_v5 = vld [vmem:[#allocation2 + $0xd0] sm:$0xff] }
 0x269   :  { %7101 = vpow2.f32 %v5704_v44  ;;  %v2508_v49 = vadd.f32 %v2437_v48, %v2347_v47  ;;  %v2358_v48 = vld [vmem:[#allocation2 + $0xe8] sm:$0xff] }
 0x26a   :  { %v5707_v50 = vmul.f32 -1.442695, %v2509_v46 }
 0x26b   :  { %v5706_v51 = vmul.f32 -1.442695, %v2508_v49  ;;  %v6589_v52 = vpop.f32.mrb[74].mxu1 }
 0x26c   :  { %7103 = vpow2.f32 %v5707_v50  ;;  %v2511_v53 = vadd.f32 %v6589_v52, %v2350_v63  ;;  %v2447_v9 = vpop.f32.mrb[75].mxu1  ;;  %v2357_v63 = vld [vmem:[#allocation2 + $0xe0] sm:$0xff] }
 0x26d   :  { %7105 = vpow2.f32 %v5706_v51  ;;  %v2510_v55 = vadd.f32 %v2447_v9, %v2349_v61 }
 0x26e   :  { %v5709_v56 = vmul.f32 -1.442695, %v2511_v53 }
 0x26f   :  { %v5708_v57 = vmul.f32 -1.442695, %v2510_v55  ;;  %v6592_v59 = vpop.f32.mrb[76].mxu1 }
 0x270   :  { %7107 = vpow2.f32 %v5709_v56  ;;  %v2513_v10 = vadd.f32 %v6592_v59, %v2352_v0  ;;  %v2457_v12 = vpop.f32.mrb[77].mxu1  ;;  %v2360_v0 = vld [vmem:[#allocation2 + $0xf8] sm:$0xff] }
 0x271   :  { %7109 = vpow2.f32 %v5708_v57  ;;  %v2512_v1 = vadd.f32 %v2457_v12, %v2351_v11  ;;  %v2359_v12 = vld [vmem:[#allocation2 + $0xf0] sm:$0xff] }
 0x272   :  { %v7100_v13 = vpop.eup %7099  ;;  %v5711_v7 = vmul.f32 -1.442695, %v2513_v10 }
 0x273   :  { %v7102_v14 = vpop.eup %7101  ;;  %v2535_v15 = vadd.f32 1.0, %v7100_v13  ;;  %v5710_v16 = vmul.f32 -1.442695, %v2512_v1  ;;  %v6595_v18 = vpop.f32.mrb[78].mxu1 }
 0x274   :  { %v2534_v62 = vadd.f32 1.0, %v7102_v14  ;;  %7111 = vpow2.f32 %v5711_v7  ;;  %v2515_v19 = vadd.f32 %v6595_v18, %v2354_v17  ;;  %v2467_v20 = vpop.f32.mrb[79].mxu1 }
 0x275   :  { %7113 = vrcp.f32 %v2535_v15  ;;  %v2514_v39 = vadd.f32 %v2467_v20, %v2353_v27 }
 0x276   :  { %v7104_v21 = vpop.eup %7103  ;;  %7115 = vrcp.f32 %v2534_v62 }
 0x277   :  { %v7106_v60 = vpop.eup %7105  ;;  %v2537_v38 = vadd.f32 1.0, %v7104_v21  ;;  %7117 = vpow2.f32 %v5710_v16  ;;  %v6598_v4 = vpop.f32.mrb[80].mxu1 }
 0x278   :  { %v2536_v41 = vadd.f32 1.0, %v7106_v60  ;;  %7119 = vtanh.f32 %v2515_v19  ;;  %v2517_v42 = vadd.f32 %v6598_v4, %v2356_v40  ;;  %v2477_v43 = vpop.f32.mrb[81].mxu1 }
 0x279   :  { %7121 = vrcp.f32 %v2537_v38  ;;  %v2516_v47 = vadd.f32 %v2477_v43, %v2355_v5 }
 0x27a   :  { %v7108_v44 = vpop.eup %7107  ;;  %7123 = vrcp.f32 %v2536_v41 }
 0x27b   :  { %v7110_v45 = vpop.eup %7109  ;;  %v2559_v46 = vadd.f32 1.0, %v7108_v44  ;;  %7125 = vtanh.f32 %v2514_v39  ;;  %v6601_v49 = vpop.f32.mrb[82].mxu1 }
 0x27c   :  { %v2558_v50 = vadd.f32 1.0, %v7110_v45  ;;  %7127 = vtanh.f32 %v2517_v42  ;;  %v2519_v51 = vadd.f32 %v6601_v49, %v2358_v48  ;;  %v2487_v52 = vpop.f32.mrb[83].mxu1 }
 0x27d   :  { %7129 = vrcp.f32 %v2559_v46  ;;  %v2518_v53 = vadd.f32 %v2487_v52, %v2357_v63 }
 0x27e   :  { %v7112_v61 = vpop.eup %7111  ;;  %7131 = vrcp.f32 %v2558_v50  ;;  %v5713_v9 = vmul.f32 -1.442695, %v2519_v51 }
 0x27f   :  { %v7114_v55 = vpop.eup %7113  ;;  %v2561_v56 = vadd.f32 1.0, %v7112_v61  ;;  %7133 = vtanh.f32 %v2516_v47  ;;  %v5712_v57 = vmul.f32 -1.442695, %v2518_v53  ;;  %v6604_v59 = vpop.f32.mrb[84].mxu1 }
 0x280   :  { %v7116_v10 = vpop.eup %7115  ;;  %7135 = vpow2.f32 %v5713_v9  ;;  %v2521_v11 = vadd.f32 %v6604_v59, %v2360_v0  ;;  %v2497_v1 = vpop.f32.mrb[85].mxu1 }
 0x281   :  { %v7118_v13 = vpop.eup %7117  ;;  %7137 = vrcp.f32 %v2561_v56  ;;  %v2520_v7 = vadd.f32 %v2497_v1, %v2359_v12 }
 0x282   :  { %v7120_v14 = vpop.eup %7119  ;;  %v2560_v15 = vadd.f32 1.0, %v7118_v13  ;;  %7139 = vpow2.f32 %v5712_v57  ;;  %v5715_v16 = vmul.f32 -1.442695, %v2521_v11 }
 0x283   :  { %v7122_v17 = vpop.eup %7121  ;;  %v2603_v18 = vmul.f32 %v7120_v14, %v7114_v55  ;;  %v5714_v62 = vmul.f32 -1.442695, %v2520_v7  ;;  %v2619_v14 = vld [vmem:[#allocation2 + $0x108] sm:$0xff] }
 0x284   :  { %v7124_v19 = vpop.eup %7123  ;;  %7141 = vrcp.f32 %v2560_v15 }
 0x285   :  { %v7126_v20 = vpop.eup %7125  ;;  %7143 = vpow2.f32 %v5715_v16 }
 0x286   :  { %v7128_v21 = vpop.eup %7127  ;;  %v2602_v27 = vmul.f32 %v7126_v20, %v7116_v10  ;;  %7145 = vpow2.f32 %v5714_v62 }
 0x287   :  { %v7130_v60 = vpop.eup %7129  ;;  %v2605_v38 = vmul.f32 %v7128_v21, %v7122_v17  ;;  %v2618_v17 = vld [vmem:[#allocation2 + $0x100] sm:$0xff]  ;;  %v2621_v21 = vld [vmem:[#allocation2 + $0x118] sm:$0xff] }
 0x288   :  { %v7132_v39 = vpop.eup %7131  ;;  %v2599_v40 = vmul.f32 %v7130_v60, %v8870_v8 }
 0x289   :  { %v7134_v4 = vpop.eup %7133  ;;  %v2598_v41 = vmul.f32 %v7132_v39, %v8872_v54 }
 0x28a   :  { %v7136_v42 = vpop.eup %7135  ;;  %v8996_v43 = vadd.f32 %v2603_v18, %v2599_v40  ;;  %v2604_v44 = vmul.f32 %v7134_v4, %v7124_v19 }
 0x28b   :  { %v7138_v5 = vpop.eup %7137  ;;  %v8998_v45 = vadd.f32 %v2602_v27, %v2598_v41  ;;  %v2587_v46 = vadd.f32 1.0, %v7136_v42  ;;  %v2623_v42 = vld [vmem:[#allocation2 + $0x128] sm:$0xff] }
 0x28c   :  { %v7140_v47 = vpop.eup %7139  ;;  %v2601_v48 = vmul.f32 %v7138_v5, %v8876_v58  ;;  %7147 = vtanh.f32 %v8996_v43 }
 0x28d   :  { %7149 = vtanh.f32 %v8998_v45  ;;  %v2586_v49 = vadd.f32 1.0, %v7140_v47 }
 0x28e   :  { %v7142_v8 = vpop.eup %7141  ;;  %v9003_v50 = vadd.f32 %v2605_v38, %v2601_v48  ;;  %7151 = vrcp.f32 %v2587_v46  ;;  %v2620_v38 = vld [vmem:[#allocation2 + $0x110] sm:$0xff]  ;;  %v2622_v46 = vld [vmem:[#allocation2 + $0x120] sm:$0xff] }
 0x28f   :  { %v7144_v54 = vpop.eup %7143  ;;  %v2600_v51 = vmul.f32 %v7142_v8, %v8879_v6  ;;  %7153 = vrcp.f32 %v2586_v49 }
 0x290   :  { %v7146_v63 = vpop.eup %7145  ;;  %7155 = vtanh.f32 %v9003_v50  ;;  %v2589_v52 = vadd.f32 1.0, %v7144_v54  ;;  %v2625_v54 = vld [vmem:[#allocation2 + $0x138] sm:$0xff] }
 0x291   :  { %v9007_v53 = vadd.f32 %v2604_v44, %v2600_v51  ;;  %v2588_v58 = vadd.f32 1.0, %v7146_v63 }
 0x292   :  { %7157 = vrcp.f32 %v2589_v52  ;;  %v2624_v52 = vld [vmem:[#allocation2 + $0x130] sm:$0xff] }
 0x293   :  { %7159 = vtanh.f32 %v9007_v53 }
 0x294   :  { %7161 = vrcp.f32 %v2588_v58 }
 0x296   :  { %v7148_v61 = vpop.eup %7147 }
 0x297   :  { %v7150_v9 = vpop.eup %7149 }
 0x298   :  { %v7152_v55 = vpop.eup %7151 }
 0x299   :  { %v7154_v56 = vpop.eup %7153  ;;  %v2615_v57 = vmul.f32 %v7152_v55, %v7148_v61 }
 0x29a   :  { %v7156_v0 = vpop.eup %7155  ;;  %v2614_v59 = vmul.f32 %v7154_v56, %v7150_v9 }
 0x29c   :  { %v7158_v6 = vpop.eup %7157  ;;  %v6934_v10 = vpack.c.bf16 %v2615_v57, %v2614_v59  ;;  %v2627_v59 = vld [vmem:[#allocation2 + $0x148] sm:$0xff] }
 0x29d   :  { %v7160_v11 = vpop.eup %7159  ;;  %v2617_v12 = vmul.f32 %v7158_v6, %v7156_v0 }
 0x29e   :  { %v7162_v1 = vpop.eup %7161  ;;  %6935 = vmatprep.subr.bf16.mxu0 %v6934_v10 }
 0x29f   :  { %6937 = vmatpush3.bf16.msra.mxu0 %v6934_v10  ;;  %v2616_v13 = vmul.f32 %v7162_v1, %v7160_v11 }
 0x2a1   :  { %v6938_v7 = vpack.c.bf16 %v2617_v12, %v2616_v13  ;;  %v2626_v13 = vld [vmem:[#allocation2 + $0x140] sm:$0xff] }
 0x2a3   :  { %6939 = vmatprep.subr.bf16.mxu0 %v6938_v7 }
 0x2a4   :  { %6941 = vmatpush3.bf16.msra.mxu0 %v6938_v7 }
 0x2a7   :  { %6614 = vmatmul.mubr.msk.f32.vlgmr.msra.gmra.mrb[74].mxu0 %vm2039_vm1, %v8885_v23 }
 0x2a8   :  { %6616 = vmatprep.mubr.msk.f32.mxu0 %vm2039_vm1, %v8892_v24 }
 0x2ab   :  { %6617 = vmatmul.mubr.msk.f32.gmra.mrb[76].mxu0 %vm2039_vm1, %v8899_v28 }
 0x2ac   :  { %6619 = vmatprep.mubr.msk.f32.mxu0 %vm2039_vm1, %v8906_v25 }
 0x2af   :  { %6620 = vmatmul.mubr.msk.f32.gmra.mrb[78].mxu0 %vm2039_vm1, %v8913_v26 }
 0x2b0   :  { %6622 = vmatprep.mubr.msk.f32.mxu0 %vm2039_vm1, %v8920_v29 }
 0x2b3   :  { %6623 = vmatmul.mubr.msk.f32.gmra.mrb[80].mxu0 %vm2039_vm1, %v8927_v30 }
 0x2b4   :  { %6625 = vmatprep.mubr.msk.f32.mxu0 %vm2039_vm1, %v8934_v2 }
 0x2b7   :  { %6626 = vmatmul.mubr.msk.f32.gmra.mrb[82].mxu0 %vm2039_vm1, %v8941_v31 }
 0x2b8   :  { %6628 = vmatprep.mubr.msk.f32.mxu0 %vm2039_vm1, %v8948_v32 }
 0x2bb   :  { %6629 = vmatmul.mubr.msk.f32.gmra.mrb[84].mxu0 %vm2039_vm1, %v8955_v33 }
 0x2bc   :  { %6631 = vmatprep.mubr.msk.f32.mxu0 %vm2039_vm1, %v8962_v34 }
 0x2bf   :  { %6632 = vmatmul.mubr.msk.f32.gmra.mrb[86].mxu0 %vm2039_vm1, %v8969_v3 }
 0x2c0   :  { %6634 = vmatprep.mubr.msk.f32.mxu0 %vm2039_vm1, %v8976_v35 }
 0x2c3   :  { %6635 = vmatmul.mubr.msk.f32.gmra.mrb[88].mxu0 %vm2039_vm1, %v8983_v36 }
 0x2c4   :  { %6677 = vmatprep.mubr.msk.f32.mxu0 %vm2039_vm1, %v8990_v37 }
 0x37a   :  { %v6615_v15 = vpop.f32.mrb[74].mxu0 }
 0x37b   :  { %v2780_v16 = vadd.f32 %v6615_v15, %v2619_v14  ;;  %v2700_v18 = vpop.f32.mrb[75].mxu0 }
 0x37c   :  { %v2779_v62 = vadd.f32 %v2700_v18, %v2618_v17 }
 0x37d   :  { %v5733_v19 = vmul.f32 -1.442695, %v2780_v16  ;;  %v2629_v16 = vld [vmem:[#allocation2 + $0x158] sm:$0xff] }
 0x37e   :  { %v5732_v20 = vmul.f32 -1.442695, %v2779_v62  ;;  %v6618_v27 = vpop.f32.mrb[76].mxu0 }
 0x37f   :  { %7163 = vpow2.f32 %v5733_v19  ;;  %v2782_v60 = vadd.f32 %v6618_v27, %v2621_v21  ;;  %v2710_v39 = vpop.f32.mrb[77].mxu0  ;;  %v2628_v21 = vld [vmem:[#allocation2 + $0x150] sm:$0xff] }
 0x380   :  { %7165 = vpow2.f32 %v5732_v20  ;;  %v2781_v40 = vadd.f32 %v2710_v39, %v2620_v38  ;;  %v2631_v39 = vld [vmem:[#allocation2 + $0x168] sm:$0xff] }
 0x381   :  { %v5735_v4 = vmul.f32 -1.442695, %v2782_v60 }
 0x382   :  { %v5734_v41 = vmul.f32 -1.442695, %v2781_v40  ;;  %v6621_v44 = vpop.f32.mrb[78].mxu0 }
 0x383   :  { %7167 = vpow2.f32 %v5735_v4  ;;  %v2784_v5 = vadd.f32 %v6621_v44, %v2623_v42  ;;  %v2720_v47 = vpop.f32.mrb[79].mxu0  ;;  %v2630_v42 = vld [vmem:[#allocation2 + $0x160] sm:$0xff] }
 0x384   :  { %7169 = vpow2.f32 %v5734_v41  ;;  %v2783_v48 = vadd.f32 %v2720_v47, %v2622_v46 }
 0x385   :  { %v5737_v49 = vmul.f32 -1.442695, %v2784_v5 }
 0x386   :  { %v5736_v8 = vmul.f32 -1.442695, %v2783_v48  ;;  %v6624_v51 = vpop.f32.mrb[80].mxu0 }
 0x387   :  { %7171 = vpow2.f32 %v5737_v49  ;;  %v2786_v63 = vadd.f32 %v6624_v51, %v2625_v54  ;;  %v2730_v58 = vpop.f32.mrb[81].mxu0  ;;  %v2633_v54 = vld [vmem:[#allocation2 + $0x178] sm:$0xff] }
 0x388   :  { %7173 = vpow2.f32 %v5736_v8  ;;  %v2785_v61 = vadd.f32 %v2730_v58, %v2624_v52  ;;  %v2632_v58 = vld [vmem:[#allocation2 + $0x170] sm:$0xff] }
 0x389   :  { %v7164_v9 = vpop.eup %7163  ;;  %v5739_v55 = vmul.f32 -1.442695, %v2786_v63 }
 0x38a   :  { %v7166_v56 = vpop.eup %7165  ;;  %v2808_v57 = vadd.f32 1.0, %v7164_v9  ;;  %v5738_v0 = vmul.f32 -1.442695, %v2785_v61  ;;  %v6627_v6 = vpop.f32.mrb[82].mxu0 }
 0x38b   :  { %v2807_v10 = vadd.f32 1.0, %v7166_v56  ;;  %7175 = vpow2.f32 %v5739_v55  ;;  %v2788_v11 = vadd.f32 %v6627_v6, %v2627_v59  ;;  %v2740_v12 = vpop.f32.mrb[83].mxu0 }
 0x38c   :  { %7177 = vrcp.f32 %v2808_v57  ;;  %v2787_v15 = vadd.f32 %v2740_v12, %v2626_v13 }
 0x38d   :  { %v7168_v1 = vpop.eup %7167  ;;  %7179 = vrcp.f32 %v2807_v10 }
 0x38e   :  { %v7170_v7 = vpop.eup %7169  ;;  %v2810_v14 = vadd.f32 1.0, %v7168_v1  ;;  %7181 = vpow2.f32 %v5738_v0  ;;  %v6630_v17 = vpop.f32.mrb[84].mxu0 }
 0x38f   :  { %v2809_v18 = vadd.f32 1.0, %v7170_v7  ;;  %7183 = vtanh.f32 %v2788_v11  ;;  %v2790_v62 = vadd.f32 %v6630_v17, %v2629_v16  ;;  %v2750_v19 = vpop.f32.mrb[85].mxu0 }
 0x390   :  { %7185 = vrcp.f32 %v2810_v14  ;;  %v2789_v38 = vadd.f32 %v2750_v19, %v2628_v21 }
 0x391   :  { %v7172_v20 = vpop.eup %7171  ;;  %7187 = vrcp.f32 %v2809_v18 }
 0x392   :  { %v7174_v27 = vpop.eup %7173  ;;  %v2832_v60 = vadd.f32 1.0, %v7172_v20  ;;  %7189 = vtanh.f32 %v2787_v15  ;;  %v6633_v40 = vpop.f32.mrb[86].mxu0 }
 0x393   :  { %v2831_v4 = vadd.f32 1.0, %v7174_v27  ;;  %7191 = vtanh.f32 %v2790_v62  ;;  %v2792_v41 = vadd.f32 %v6633_v40, %v2631_v39  ;;  %v2760_v44 = vpop.f32.mrb[87].mxu0 }
 0x394   :  { %7193 = vrcp.f32 %v2832_v60  ;;  %v2791_v5 = vadd.f32 %v2760_v44, %v2630_v42 }
 0x395   :  { %v7176_v46 = vpop.eup %7175  ;;  %7195 = vrcp.f32 %v2831_v4  ;;  %v5741_v47 = vmul.f32 -1.442695, %v2792_v41 }
 0x396   :  { %v7178_v48 = vpop.eup %7177  ;;  %v2834_v49 = vadd.f32 1.0, %v7176_v46  ;;  %7197 = vtanh.f32 %v2789_v38  ;;  %v5740_v8 = vmul.f32 -1.442695, %v2791_v5  ;;  %v6636_v51 = vpop.f32.mrb[88].mxu0 }
 0x397   :  { %v7180_v63 = vpop.eup %7179  ;;  %7199 = vpow2.f32 %v5741_v47  ;;  %v2794_v52 = vadd.f32 %v6636_v51, %v2633_v54  ;;  %v2770_v61 = vpop.f32.mrb[89].mxu0 }
 0x398   :  { %v7182_v9 = vpop.eup %7181  ;;  %7201 = vrcp.f32 %v2834_v49  ;;  %v2793_v55 = vadd.f32 %v2770_v61, %v2632_v58 }
 0x399   :  { %v7184_v56 = vpop.eup %7183  ;;  %v2833_v57 = vadd.f32 1.0, %v7182_v9  ;;  %7203 = vpow2.f32 %v5740_v8  ;;  %v5743_v0 = vmul.f32 -1.442695, %v2794_v52 }
 0x39a   :  { %v7186_v59 = vpop.eup %7185  ;;  %v2876_v6 = vmul.f32 %v7184_v56, %v7178_v48  ;;  %v5742_v10 = vmul.f32 -1.442695, %v2793_v55 }
 0x39b   :  { %v7188_v11 = vpop.eup %7187  ;;  %7205 = vrcp.f32 %v2833_v57  ;;  %v2896_v57 = vld [vmem:[#allocation2 + $0x1a8] sm:$0xff] }
 0x39c   :  { %v7190_v12 = vpop.eup %7189  ;;  %7207 = vpow2.f32 %v5743_v0 }
 0x39d   :  { %v7192_v1 = vpop.eup %7191  ;;  %v2875_v13 = vmul.f32 %v7190_v12, %v7180_v63  ;;  %7209 = vpow2.f32 %v5742_v10 }
 0x39e   :  { %v7194_v7 = vpop.eup %7193  ;;  %v2878_v14 = vmul.f32 %v7192_v1, %v7186_v59  ;;  %v2895_v59 = vld [vmem:[#allocation2 + $0x1a0] sm:$0xff]  ;;  %v2898_v1 = vld [vmem:[#allocation2 + $0x1b8] sm:$0xff] }
 0x39f   :  { %v7196_v15 = vpop.eup %7195  ;;  %v2872_v16 = vmul.f32 %v7194_v7, %v8996_v43 }
 0x3a0   :  { %v7198_v17 = vpop.eup %7197  ;;  %v2871_v18 = vmul.f32 %v7196_v15, %v8998_v45 }
 0x3a1   :  { %v7200_v62 = vpop.eup %7199  ;;  %v9044_v19 = vadd.f32 %v2876_v6, %v2872_v16  ;;  %v2877_v20 = vmul.f32 %v7198_v17, %v7188_v11 }
 0x3a2   :  { %v7202_v21 = vpop.eup %7201  ;;  %v9046_v27 = vadd.f32 %v2875_v13, %v2871_v18  ;;  %v2860_v60 = vadd.f32 1.0, %v7200_v62 }
 0x3a3   :  { %v7204_v38 = vpop.eup %7203  ;;  %v2874_v39 = vmul.f32 %v7202_v21, %v9003_v50  ;;  %7211 = vtanh.f32 %v9044_v19 }
 0x3a4   :  { %7213 = vtanh.f32 %v9046_v27  ;;  %v2859_v40 = vadd.f32 1.0, %v7204_v38 }
 0x3a5   :  { %v7206_v43 = vpop.eup %7205  ;;  %v9051_v4 = vadd.f32 %v2878_v14, %v2874_v39  ;;  %7215 = vrcp.f32 %v2860_v60  ;;  %v2897_v14 = vld [vmem:[#allocation2 + $0x1b0] sm:$0xff]  ;;  %v2900_v60 = vld [vmem:[#allocation2 + $0x1c8] sm:$0xff] }
 0x3a6   :  { %v7208_v45 = vpop.eup %7207  ;;  %v2873_v41 = vmul.f32 %v7206_v43, %v9007_v53  ;;  %7217 = vrcp.f32 %v2859_v40 }
 0x3a7   :  { %v7210_v42 = vpop.eup %7209  ;;  %7219 = vtanh.f32 %v9051_v4  ;;  %v2862_v44 = vadd.f32 1.0, %v7208_v45 }
 0x3a8   :  { %v9055_v5 = vadd.f32 %v2877_v20, %v2873_v41  ;;  %v2861_v50 = vadd.f32 1.0, %v7210_v42  ;;  %v2899_v41 = vld [vmem:[#allocation2 + $0x1c0] sm:$0xff] }
 0x3a9   :  { %7221 = vrcp.f32 %v2862_v44 }
 0x3aa   :  { %7223 = vtanh.f32 %v9055_v5 }
 0x3ab   :  { %7225 = vrcp.f32 %v2861_v50 }
 0x3ad   :  { %v7212_v46 = vpop.eup %7211 }
 0x3ae   :  { %v7214_v47 = vpop.eup %7213 }
 0x3af   :  { %v7216_v48 = vpop.eup %7215 }
 0x3b0   :  { %v7218_v49 = vpop.eup %7217  ;;  %v2888_v8 = vmul.f32 %v7216_v48, %v7212_v46  ;;  %v2902_v46 = vld [vmem:[#allocation2 + $0x1d8] sm:$0xff] }
 0x3b1   :  { %v7220_v54 = vpop.eup %7219  ;;  %v2887_v51 = vmul.f32 %v7218_v49, %v7214_v47 }
 0x3b3   :  { %v7222_v53 = vpop.eup %7221  ;;  %v6942_v63 = vpack.c.bf16 %v2888_v8, %v2887_v51  ;;  %v2901_v51 = vld [vmem:[#allocation2 + $0x1d0] sm:$0xff] }
 0x3b4   :  { %v7224_v52 = vpop.eup %7223  ;;  %v2890_v58 = vmul.f32 %v7222_v53, %v7220_v54 }
 0x3b5   :  { %v7226_v61 = vpop.eup %7225  ;;  %6943 = vmatprep.subr.bf16.mxu1 %v6942_v63 }
 0x3b6   :  { %6945 = vmatpush3.bf16.msra.mxu1 %v6942_v63  ;;  %v2889_v9 = vmul.f32 %v7226_v61, %v7224_v52 }
 0x3b8   :  { %v6946_v55 = vpack.c.bf16 %v2890_v58, %v2889_v9  ;;  %v2904_v58 = vld [vmem:[#allocation2 + $0x1e8] sm:$0xff] }
 0x3ba   :  { %6947 = vmatprep.subr.bf16.mxu1 %v6946_v55 }
 0x3bb   :  { %6949 = vmatpush3.bf16.msra.mxu1 %v6946_v55 }
 0x3be   :  { %6646 = vmatmul.mubr.msk.f32.vlgmr.msra.gmra.mrb[86].mxu1 %vm2039_vm1, %v8885_v23  ;;  %v2892_v23 = vld [vmem:[#allocation2 + $0x188] sm:$0xff] }
 0x3bf   :  { %6648 = vmatprep.mubr.msk.f32.mxu1 %vm2039_vm1, %v8892_v24 }
 0x3c2   :  { %6649 = vmatmul.mubr.msk.f32.gmra.mrb[88].mxu1 %vm2039_vm1, %v8899_v28 }
 0x3c3   :  { %6651 = vmatprep.mubr.msk.f32.mxu1 %vm2039_vm1, %v8906_v25  ;;  %v2891_v25 = vld [vmem:[#allocation2 + $0x180] sm:$0xff] }
 0x3c6   :  { %6652 = vmatmul.mubr.msk.f32.gmra.mrb[90].mxu1 %vm2039_vm1, %v8913_v26 }
 0x3c7   :  { %6654 = vmatprep.mubr.msk.f32.mxu1 %vm2039_vm1, %v8920_v29 }
 0x3ca   :  { %6655 = vmatmul.mubr.msk.f32.gmra.mrb[92].mxu1 %vm2039_vm1, %v8927_v30 }
 0x3cb   :  { %6657 = vmatprep.mubr.msk.f32.mxu1 %vm2039_vm1, %v8934_v2 }
 0x3ce   :  { %6658 = vmatmul.mubr.msk.f32.gmra.mrb[94].mxu1 %vm2039_vm1, %v8941_v31  ;;  %v2894_v31 = vld [vmem:[#allocation2 + $0x198] sm:$0xff] }
 0x3cf   :  { %6660 = vmatprep.mubr.msk.f32.mxu1 %vm2039_vm1, %v8948_v32 }
 0x3d2   :  { %6661 = vmatmul.mubr.msk.f32.gmra.mrb[96].mxu1 %vm2039_vm1, %v8955_v33 }
 0x3d3   :  { %6663 = vmatprep.mubr.msk.f32.mxu1 %vm2039_vm1, %v8962_v34  ;;  %v2893_v34 = vld [vmem:[#allocation2 + $0x190] sm:$0xff] }
 0x3d6   :  { %6664 = vmatmul.mubr.msk.f32.gmra.mrb[98].mxu1 %vm2039_vm1, %v8969_v3 }
 0x3d7   :  { %6666 = vmatprep.mubr.msk.f32.mxu1 %vm2039_vm1, %v8976_v35 }
 0x3da   :  { %6667 = vmatmul.mubr.msk.f32.gmra.mrb[100].mxu1 %vm2039_vm1, %v8983_v36 }
 0x3db   :  { %6709 = vmatprep.mubr.msk.f32.mxu1 %vm2039_vm1, %v8990_v37 }
 0x491   :  { %v6647_v24 = vpop.f32.mrb[86].mxu1 }
 0x492   :  { %v3053_v28 = vadd.f32 %v6647_v24, %v2892_v23  ;;  %v2973_v26 = vpop.f32.mrb[87].mxu1  ;;  %v2903_v23 = vld [vmem:[#allocation2 + $0x1e0] sm:$0xff] }
 0x493   :  { %v3052_v29 = vadd.f32 %v2973_v26, %v2891_v25 }
 0x494   :  { %v5761_v30 = vmul.f32 -1.442695, %v3053_v28 }
 0x495   :  { %v5760_v2 = vmul.f32 -1.442695, %v3052_v29  ;;  %v6650_v32 = vpop.f32.mrb[88].mxu1 }
 0x496   :  { %7227 = vpow2.f32 %v5761_v30  ;;  %v3055_v33 = vadd.f32 %v6650_v32, %v2894_v31  ;;  %v2983_v3 = vpop.f32.mrb[89].mxu1  ;;  %v2906_v31 = vld [vmem:[#allocation2 + $0x1f8] sm:$0xff] }
 0x497   :  { %7229 = vpow2.f32 %v5760_v2  ;;  %v3054_v35 = vadd.f32 %v2983_v3, %v2893_v34  ;;  %v2905_v3 = vld [vmem:[#allocation2 + $0x1f0] sm:$0xff] }
 0x498   :  { %v5763_v36 = vmul.f32 -1.442695, %v3055_v33 }
 0x499   :  { %v5762_v56 = vmul.f32 -1.442695, %v3054_v35  ;;  %v6653_v37 = vpop.f32.mrb[90].mxu1 }
 0x49a   :  { %7231 = vpow2.f32 %v5763_v36  ;;  %v3057_v0 = vadd.f32 %v6653_v37, %v2896_v57  ;;  %v2993_v6 = vpop.f32.mrb[91].mxu1 }
 0x49b   :  { %7233 = vpow2.f32 %v5762_v56  ;;  %v3056_v10 = vadd.f32 %v2993_v6, %v2895_v59 }
 0x49c   :  { %v5765_v11 = vmul.f32 -1.442695, %v3057_v0 }
 0x49d   :  { %v5764_v12 = vmul.f32 -1.442695, %v3056_v10  ;;  %v6656_v13 = vpop.f32.mrb[92].mxu1 }
 0x49e   :  { %7235 = vpow2.f32 %v5765_v11  ;;  %v3059_v7 = vadd.f32 %v6656_v13, %v2898_v1  ;;  %v3003_v15 = vpop.f32.mrb[93].mxu1 }
 0x49f   :  { %7237 = vpow2.f32 %v5764_v12  ;;  %v3058_v16 = vadd.f32 %v3003_v15, %v2897_v14 }
 0x4a0   :  { %v7228_v17 = vpop.eup %7227  ;;  %v5767_v18 = vmul.f32 -1.442695, %v3059_v7 }
 0x4a1   :  { %v7230_v62 = vpop.eup %7229  ;;  %v3081_v20 = vadd.f32 1.0, %v7228_v17  ;;  %v5766_v21 = vmul.f32 -1.442695, %v3058_v16  ;;  %v6659_v38 = vpop.f32.mrb[94].mxu1 }
 0x4a2   :  { %v3080_v39 = vadd.f32 1.0, %v7230_v62  ;;  %7239 = vpow2.f32 %v5767_v18  ;;  %v3061_v40 = vadd.f32 %v6659_v38, %v2900_v60  ;;  %v3013_v43 = vpop.f32.mrb[95].mxu1 }
 0x4a3   :  { %7241 = vrcp.f32 %v3081_v20  ;;  %v3060_v50 = vadd.f32 %v3013_v43, %v2899_v41 }
 0x4a4   :  { %v7232_v45 = vpop.eup %7231  ;;  %7243 = vrcp.f32 %v3080_v39 }
 0x4a5   :  { %v7234_v42 = vpop.eup %7233  ;;  %v3083_v44 = vadd.f32 1.0, %v7232_v45  ;;  %7245 = vpow2.f32 %v5766_v21  ;;  %v6662_v47 = vpop.f32.mrb[96].mxu1 }
 0x4a6   :  { %v3082_v48 = vadd.f32 1.0, %v7234_v42  ;;  %7247 = vtanh.f32 %v3061_v40  ;;  %v3063_v49 = vadd.f32 %v6662_v47, %v2902_v46  ;;  %v3023_v8 = vpop.f32.mrb[97].mxu1 }
 0x4a7   :  { %7249 = vrcp.f32 %v3083_v44  ;;  %v3062_v52 = vadd.f32 %v3023_v8, %v2901_v51 }
 0x4a8   :  { %v7236_v54 = vpop.eup %7235  ;;  %7251 = vrcp.f32 %v3082_v48 }
 0x4a9   :  { %v7238_v53 = vpop.eup %7237  ;;  %v3105_v63 = vadd.f32 1.0, %v7236_v54  ;;  %7253 = vtanh.f32 %v3060_v50  ;;  %v6665_v61 = vpop.f32.mrb[98].mxu1 }
 0x4aa   :  { %v3104_v9 = vadd.f32 1.0, %v7238_v53  ;;  %7255 = vtanh.f32 %v3063_v49  ;;  %v3065_v55 = vadd.f32 %v6665_v61, %v2904_v58  ;;  %v3033_v24 = vpop.f32.mrb[99].mxu1 }
 0x4ab   :  { %7257 = vrcp.f32 %v3105_v63  ;;  %v3064_v28 = vadd.f32 %v3033_v24, %v2903_v23  ;;  %v9109_v23 = vld [vmem:[%s9822_s3 + $0x8] sm:$0xff]  ;;  %v9116_v24 = vld [vmem:[%s9822_s3 + $0x10] sm:$0xff] }
 0x4ac   :  { %v7240_v25 = vpop.eup %7239  ;;  %7259 = vrcp.f32 %v3104_v9  ;;  %v5769_v26 = vmul.f32 -1.442695, %v3065_v55 }
 0x4ad   :  { %v7242_v29 = vpop.eup %7241  ;;  %v3107_v30 = vadd.f32 1.0, %v7240_v25  ;;  %7261 = vtanh.f32 %v3062_v52  ;;  %v5768_v2 = vmul.f32 -1.442695, %v3064_v28  ;;  %v6668_v32 = vpop.f32.mrb[100].mxu1  ;;  %v9123_v28 = vld [vmem:[%s9822_s3 + $0x18] sm:$0xff]  ;;  %v9130_v25 = vld [vmem:[%s9822_s3 + $0x20] sm:$0xff] }
 0x4ae   :  { %v7244_v33 = vpop.eup %7243  ;;  %7263 = vpow2.f32 %v5769_v26  ;;  %v3067_v34 = vadd.f32 %v6668_v32, %v2906_v31  ;;  %v3043_v35 = vpop.f32.mrb[101].mxu1  ;;  %v9137_v26 = vld [vmem:[%s9822_s3 + $0x28] sm:$0xff]  ;;  %v9172_v32 = vld [vmem:[%s9822_s3 + $0x50] sm:$0xff] }
 0x4af   :  { %v7246_v36 = vpop.eup %7245  ;;  %7265 = vrcp.f32 %v3107_v30  ;;  %v3066_v56 = vadd.f32 %v3043_v35, %v2905_v3  ;;  %v9151_v30 = vld [vmem:[%s9822_s3 + $0x38] sm:$0xff]  ;;  %v9165_v31 = vld [vmem:[%s9822_s3 + $0x48] sm:$0xff]  ;;  %v9200_v35 = vld [vmem:[%s9822_s3 + $0x70] sm:$0xff] }
 0x4b0   :  { %v7248_v57 = vpop.eup %7247  ;;  %v3106_v37 = vadd.f32 1.0, %v7246_v36  ;;  %7267 = vpow2.f32 %v5768_v2  ;;  %v5771_v0 = vmul.f32 -1.442695, %v3067_v34  ;;  %v9158_v2 = vld [vmem:[%s9822_s3 + $0x40] sm:$0xff]  ;;  %v9193_v3 = vld [vmem:[%s9822_s3 + $0x68] sm:$0xff]  ;;  %v9207_v36 = vld [vmem:[%s9822_s3 + $0x78] sm:$0xff] }
 0x4b1   :  { %v7250_v59 = vpop.eup %7249  ;;  %v3149_v6 = vmul.f32 %v7248_v57, %v7242_v29  ;;  %v5770_v10 = vmul.f32 -1.442695, %v3066_v56  ;;  %v9144_v29 = vld [vmem:[%s9822_s3 + $0x30] sm:$0xff]  ;;  %v9186_v34 = vld [vmem:[%s9822_s3 + $0x60] sm:$0xff]  ;;  %v3165_v57 = vld [vmem:[#allocation2 + $0x208] sm:$0xff] }
 0x4b2   :  { %v7252_v11 = vpop.eup %7251  ;;  %7269 = vrcp.f32 %v3106_v37  ;;  %v9214_v56 = vld [vmem:[%s9822_s3] sm:$0xff] }
 0x4b3   :  { %v7254_v12 = vpop.eup %7253  ;;  %7271 = vpow2.f32 %v5771_v0 }
 0x4b4   :  { %v7256_v1 = vpop.eup %7255  ;;  %v3148_v13 = vmul.f32 %v7254_v12, %v7244_v33  ;;  %7273 = vpow2.f32 %v5770_v10  ;;  %v9179_v33 = vld [vmem:[%s9822_s3 + $0x58] sm:$0xff] }
 0x4b5   :  { %v7258_v7 = vpop.eup %7257  ;;  %v3151_v14 = vmul.f32 %v7256_v1, %v7250_v59  ;;  %v3164_v59 = vld [vmem:[#allocation2 + $0x200] sm:$0xff]  ;;  %v3167_v1 = vld [vmem:[#allocation2 + $0x218] sm:$0xff] }
 0x4b6   :  { %v7260_v15 = vpop.eup %7259  ;;  %v3145_v16 = vmul.f32 %v7258_v7, %v9044_v19 }
 0x4b7   :  { %v7262_v17 = vpop.eup %7261  ;;  %v3144_v18 = vmul.f32 %v7260_v15, %v9046_v27 }
 0x4b8   :  { %v7264_v62 = vpop.eup %7263  ;;  %v9092_v20 = vadd.f32 %v3149_v6, %v3145_v16  ;;  %v3150_v21 = vmul.f32 %v7262_v17, %v7252_v11 }
 0x4b9   :  { %v7266_v60 = vpop.eup %7265  ;;  %v9094_v38 = vadd.f32 %v3148_v13, %v3144_v18  ;;  %v3133_v39 = vadd.f32 1.0, %v7264_v62  ;;  %v3169_v62 = vld [vmem:[#allocation2 + $0x228] sm:$0xff] }
 0x4ba   :  { %v7268_v40 = vpop.eup %7267  ;;  %v3147_v43 = vmul.f32 %v7266_v60, %v9051_v4  ;;  %7275 = vtanh.f32 %v9092_v20 }
 0x4bb   :  { %7277 = vtanh.f32 %v9094_v38  ;;  %v3132_v45 = vadd.f32 1.0, %v7268_v40 }
 0x4bc   :  { %v7270_v19 = vpop.eup %7269  ;;  %v9099_v41 = vadd.f32 %v3151_v14, %v3147_v43  ;;  %7279 = vrcp.f32 %v3133_v39  ;;  %v3166_v14 = vld [vmem:[#allocation2 + $0x210] sm:$0xff]  ;;  %v3168_v39 = vld [vmem:[#allocation2 + $0x220] sm:$0xff] }
 0x4bd   :  { %v7272_v27 = vpop.eup %7271  ;;  %v3146_v42 = vmul.f32 %v7270_v19, %v9055_v5  ;;  %7281 = vrcp.f32 %v3132_v45 }
 0x4be   :  { %v7274_v44 = vpop.eup %7273  ;;  %7283 = vtanh.f32 %v9099_v41  ;;  %v3135_v50 = vadd.f32 1.0, %v7272_v27  ;;  %v3171_v27 = vld [vmem:[#allocation2 + $0x238] sm:$0xff] }
 0x4bf   :  { %v9103_v46 = vadd.f32 %v3150_v21, %v3146_v42  ;;  %v3134_v4 = vadd.f32 1.0, %v7274_v44 }
 0x4c0   :  { %7285 = vrcp.f32 %v3135_v50  ;;  %v3170_v50 = vld [vmem:[#allocation2 + $0x230] sm:$0xff] }
 0x4c1   :  { %7287 = vtanh.f32 %v9103_v46 }
 0x4c2   :  { %7289 = vrcp.f32 %v3134_v4 }
 0x4c4   :  { %v7276_v47 = vpop.eup %7275 }
 0x4c5   :  { %v7278_v48 = vpop.eup %7277 }
 0x4c6   :  { %v7280_v49 = vpop.eup %7279 }
 0x4c7   :  { %v7282_v8 = vpop.eup %7281  ;;  %v3161_v54 = vmul.f32 %v7280_v49, %v7276_v47 }
 0x4c8   :  { %v7284_v51 = vpop.eup %7283  ;;  %v3160_v53 = vmul.f32 %v7282_v8, %v7278_v48 }
 0x4ca   :  { %v7286_v5 = vpop.eup %7285  ;;  %v6950_v63 = vpack.c.bf16 %v3161_v54, %v3160_v53  ;;  %v3173_v53 = vld [vmem:[#allocation2 + $0x248] sm:$0xff] }
 0x4cb   :  { %v7288_v52 = vpop.eup %7287  ;;  %v3163_v58 = vmul.f32 %v7286_v5, %v7284_v51 }
 0x4cc   :  { %v7290_v61 = vpop.eup %7289  ;;  %6951 = vmatprep.subr.bf16.mxu0 %v6950_v63 }
 0x4cd   :  { %6953 = vmatpush3.bf16.msra.mxu0 %v6950_v63  ;;  %v3162_v9 = vmul.f32 %v7290_v61, %v7288_v52 }
 0x4cf   :  { %v6954_v55 = vpack.c.bf16 %v3163_v58, %v3162_v9  ;;  %v3172_v9 = vld [vmem:[#allocation2 + $0x240] sm:$0xff] }
 0x4d1   :  { %6955 = vmatprep.subr.bf16.mxu0 %v6954_v55 }
 0x4d2   :  { %6957 = vmatpush3.bf16.msra.mxu0 %v6954_v55 }
 0x4d5   :  { %6678 = vmatmul.mubr.msk.f32.vlgmr.msra.gmra.mrb[90].mxu0 %vm2039_vm1, %v9109_v23 }
 0x4d6   :  { %6680 = vmatprep.mubr.msk.f32.mxu0 %vm2039_vm1, %v9116_v24 }
 0x4d9   :  { %6681 = vmatmul.mubr.msk.f32.gmra.mrb[92].mxu0 %vm2039_vm1, %v9123_v28 }
 0x4da   :  { %6683 = vmatprep.mubr.msk.f32.mxu0 %vm2039_vm1, %v9130_v25 }
 0x4dd   :  { %6684 = vmatmul.mubr.msk.f32.gmra.mrb[94].mxu0 %vm2039_vm1, %v9137_v26 }
 0x4de   :  { %6686 = vmatprep.mubr.msk.f32.mxu0 %vm2039_vm1, %v9144_v29 }
 0x4e1   :  { %6687 = vmatmul.mubr.msk.f32.gmra.mrb[96].mxu0 %vm2039_vm1, %v9151_v30 }
 0x4e2   :  { %6689 = vmatprep.mubr.msk.f32.mxu0 %vm2039_vm1, %v9158_v2 }
 0x4e5   :  { %6690 = vmatmul.mubr.msk.f32.gmra.mrb[98].mxu0 %vm2039_vm1, %v9165_v31 }
 0x4e6   :  { %6692 = vmatprep.mubr.msk.f32.mxu0 %vm2039_vm1, %v9172_v32 }
 0x4e9   :  { %6693 = vmatmul.mubr.msk.f32.gmra.mrb[100].mxu0 %vm2039_vm1, %v9179_v33 }
 0x4ea   :  { %6695 = vmatprep.mubr.msk.f32.mxu0 %vm2039_vm1, %v9186_v34 }
 0x4ed   :  { %6696 = vmatmul.mubr.msk.f32.gmra.mrb[102].mxu0 %vm2039_vm1, %v9193_v3 }
 0x4ee   :  { %6698 = vmatprep.mubr.msk.f32.mxu0 %vm2039_vm1, %v9200_v35 }
 0x4f1   :  { %6699 = vmatmul.mubr.msk.f32.gmra.mrb[104].mxu0 %vm2039_vm1, %v9207_v36 }
 0x4f2   :  { %6741 = vmatprep.mubr.msk.f32.mxu0 %vm2039_vm1, %v9214_v56 }
 0x5a8   :  { %v6679_v37 = vpop.f32.mrb[90].mxu0 }
 0x5a9   :  { %v3326_v0 = vadd.f32 %v6679_v37, %v3165_v57  ;;  %v3246_v6 = vpop.f32.mrb[91].mxu0 }
 0x5aa   :  { %v3325_v10 = vadd.f32 %v3246_v6, %v3164_v59 }
 0x5ab   :  { %v5789_v11 = vmul.f32 -1.442695, %v3326_v0  ;;  %v3175_v0 = vld [vmem:[#allocation2 + $0x258] sm:$0xff] }
 0x5ac   :  { %v5788_v12 = vmul.f32 -1.442695, %v3325_v10  ;;  %v6682_v13 = vpop.f32.mrb[92].mxu0 }
 0x5ad   :  { %7291 = vpow2.f32 %v5789_v11  ;;  %v3328_v7 = vadd.f32 %v6682_v13, %v3167_v1  ;;  %v3256_v15 = vpop.f32.mrb[93].mxu0  ;;  %v3174_v1 = vld [vmem:[#allocation2 + $0x250] sm:$0xff] }
 0x5ae   :  { %7293 = vpow2.f32 %v5788_v12  ;;  %v3327_v16 = vadd.f32 %v3256_v15, %v3166_v14  ;;  %v3177_v15 = vld [vmem:[#allocation2 + $0x268] sm:$0xff] }
 0x5af   :  { %v5791_v17 = vmul.f32 -1.442695, %v3328_v7 }
 0x5b0   :  { %v5790_v18 = vmul.f32 -1.442695, %v3327_v16  ;;  %v6685_v21 = vpop.f32.mrb[94].mxu0 }
 0x5b1   :  { %7295 = vpow2.f32 %v5791_v17  ;;  %v3330_v60 = vadd.f32 %v6685_v21, %v3169_v62  ;;  %v3266_v40 = vpop.f32.mrb[95].mxu0  ;;  %v3176_v62 = vld [vmem:[#allocation2 + $0x260] sm:$0xff] }
 0x5b2   :  { %7297 = vpow2.f32 %v5790_v18  ;;  %v3329_v43 = vadd.f32 %v3266_v40, %v3168_v39 }
 0x5b3   :  { %v5793_v45 = vmul.f32 -1.442695, %v3330_v60 }
 0x5b4   :  { %v5792_v19 = vmul.f32 -1.442695, %v3329_v43  ;;  %v6688_v42 = vpop.f32.mrb[96].mxu0 }
 0x5b5   :  { %7299 = vpow2.f32 %v5793_v45  ;;  %v3332_v44 = vadd.f32 %v6688_v42, %v3171_v27  ;;  %v3276_v4 = vpop.f32.mrb[97].mxu0  ;;  %v3179_v27 = vld [vmem:[#allocation2 + $0x278] sm:$0xff] }
 0x5b6   :  { %7301 = vpow2.f32 %v5792_v19  ;;  %v3331_v47 = vadd.f32 %v3276_v4, %v3170_v50  ;;  %v3178_v4 = vld [vmem:[#allocation2 + $0x270] sm:$0xff] }
 0x5b7   :  { %v7292_v48 = vpop.eup %7291  ;;  %v5795_v49 = vmul.f32 -1.442695, %v3332_v44 }
 0x5b8   :  { %v7294_v8 = vpop.eup %7293  ;;  %v3354_v54 = vadd.f32 1.0, %v7292_v48  ;;  %v5794_v51 = vmul.f32 -1.442695, %v3331_v47  ;;  %v6691_v5 = vpop.f32.mrb[98].mxu0 }
 0x5b9   :  { %v3353_v63 = vadd.f32 1.0, %v7294_v8  ;;  %7303 = vpow2.f32 %v5795_v49  ;;  %v3334_v52 = vadd.f32 %v6691_v5, %v3173_v53  ;;  %v3286_v58 = vpop.f32.mrb[99].mxu0 }
 0x5ba   :  { %7305 = vrcp.f32 %v3354_v54  ;;  %v3333_v37 = vadd.f32 %v3286_v58, %v3172_v9 }
 0x5bb   :  { %v7296_v61 = vpop.eup %7295  ;;  %7307 = vrcp.f32 %v3353_v63 }
 0x5bc   :  { %v7298_v55 = vpop.eup %7297  ;;  %v3356_v57 = vadd.f32 1.0, %v7296_v61  ;;  %7309 = vpow2.f32 %v5794_v51  ;;  %v6694_v59 = vpop.f32.mrb[100].mxu0 }
 0x5bd   :  { %v3355_v6 = vadd.f32 1.0, %v7298_v55  ;;  %7311 = vtanh.f32 %v3334_v52  ;;  %v3336_v10 = vadd.f32 %v6694_v59, %v3175_v0  ;;  %v3296_v11 = vpop.f32.mrb[101].mxu0 }
 0x5be   :  { %7313 = vrcp.f32 %v3356_v57  ;;  %v3335_v14 = vadd.f32 %v3296_v11, %v3174_v1 }
 0x5bf   :  { %v7300_v12 = vpop.eup %7299  ;;  %7315 = vrcp.f32 %v3355_v6 }
 0x5c0   :  { %v7302_v13 = vpop.eup %7301  ;;  %v3378_v7 = vadd.f32 1.0, %v7300_v12  ;;  %7317 = vtanh.f32 %v3333_v37  ;;  %v6697_v16 = vpop.f32.mrb[102].mxu0 }
 0x5c1   :  { %v3377_v17 = vadd.f32 1.0, %v7302_v13  ;;  %7319 = vtanh.f32 %v3336_v10  ;;  %v3338_v18 = vadd.f32 %v6697_v16, %v3177_v15  ;;  %v3306_v21 = vpop.f32.mrb[103].mxu0 }
 0x5c2   :  { %7321 = vrcp.f32 %v3378_v7  ;;  %v3337_v60 = vadd.f32 %v3306_v21, %v3176_v62 }
 0x5c3   :  { %v7304_v39 = vpop.eup %7303  ;;  %7323 = vrcp.f32 %v3377_v17  ;;  %v5797_v40 = vmul.f32 -1.442695, %v3338_v18 }
 0x5c4   :  { %v7306_v43 = vpop.eup %7305  ;;  %v3380_v45 = vadd.f32 1.0, %v7304_v39  ;;  %7325 = vtanh.f32 %v3335_v14  ;;  %v5796_v19 = vmul.f32 -1.442695, %v3337_v60  ;;  %v6700_v42 = vpop.f32.mrb[104].mxu0 }
 0x5c5   :  { %v7308_v44 = vpop.eup %7307  ;;  %7327 = vpow2.f32 %v5797_v40  ;;  %v3340_v50 = vadd.f32 %v6700_v42, %v3179_v27  ;;  %v3316_v47 = vpop.f32.mrb[105].mxu0 }
 0x5c6   :  { %v7310_v48 = vpop.eup %7309  ;;  %7329 = vrcp.f32 %v3380_v45  ;;  %v3339_v49 = vadd.f32 %v3316_v47, %v3178_v4 }
 0x5c7   :  { %v7312_v8 = vpop.eup %7311  ;;  %v3379_v54 = vadd.f32 1.0, %v7310_v48  ;;  %7331 = vpow2.f32 %v5796_v19  ;;  %v5799_v51 = vmul.f32 -1.442695, %v3340_v50 }
 0x5c8   :  { %v7314_v53 = vpop.eup %7313  ;;  %v3422_v5 = vmul.f32 %v7312_v8, %v7306_v43  ;;  %v5798_v63 = vmul.f32 -1.442695, %v3339_v49  ;;  %v3438_v8 = vld [vmem:[#allocation2 + $0x288] sm:$0xff] }
 0x5c9   :  { %v7316_v52 = vpop.eup %7315  ;;  %7333 = vrcp.f32 %v3379_v54 }
 0x5ca   :  { %v7318_v58 = vpop.eup %7317  ;;  %7335 = vpow2.f32 %v5799_v51 }
 0x5cb   :  { %v7320_v61 = vpop.eup %7319  ;;  %v3421_v9 = vmul.f32 %v7318_v58, %v7308_v44  ;;  %7337 = vpow2.f32 %v5798_v63 }
 0x5cc   :  { %v7322_v55 = vpop.eup %7321  ;;  %v3424_v57 = vmul.f32 %v7320_v61, %v7314_v53  ;;  %v3437_v53 = vld [vmem:[#allocation2 + $0x280] sm:$0xff]  ;;  %v3440_v61 = vld [vmem:[#allocation2 + $0x298] sm:$0xff] }
 0x5cd   :  { %v7324_v37 = vpop.eup %7323  ;;  %v3418_v0 = vmul.f32 %v7322_v55, %v9092_v20 }
 0x5ce   :  { %v7326_v59 = vpop.eup %7325  ;;  %v3417_v6 = vmul.f32 %v7324_v37, %v9094_v38 }
 0x5cf   :  { %v7328_v10 = vpop.eup %7327  ;;  %v9220_v11 = vadd.f32 %v3422_v5, %v3418_v0  ;;  %v3423_v12 = vmul.f32 %v7326_v59, %v7316_v52 }
 0x5d0   :  { %v7330_v1 = vpop.eup %7329  ;;  %v9222_v13 = vadd.f32 %v3421_v9, %v3417_v6  ;;  %v3406_v7 = vadd.f32 1.0, %v7328_v10  ;;  %v3442_v10 = vld [vmem:[#allocation2 + $0x2a8] sm:$0xff] }
 0x5d1   :  { %v7332_v14 = vpop.eup %7331  ;;  %v3420_v15 = vmul.f32 %v7330_v1, %v9099_v41  ;;  %7339 = vtanh.f32 %v9220_v11  ;;  %v3441_v1 = vld [vmem:[#allocation2 + $0x2a0] sm:$0xff] }
 0x5d2   :  { %7341 = vtanh.f32 %v9222_v13  ;;  %v3405_v16 = vadd.f32 1.0, %v7332_v14 }
 0x5d3   :  { %v7334_v20 = vpop.eup %7333  ;;  %v9227_v17 = vadd.f32 %v3424_v57, %v3420_v15  ;;  %7343 = vrcp.f32 %v3406_v7  ;;  %v3439_v57 = vld [vmem:[#allocation2 + $0x290] sm:$0xff] }
 0x5d4   :  { %v7336_v38 = vpop.eup %7335  ;;  %v3419_v18 = vmul.f32 %v7334_v20, %v9103_v46  ;;  %7345 = vrcp.f32 %v3405_v16  ;;  %v3444_v20 = vld [vmem:[#allocation2 + $0x2b8] sm:$0xff] }
 0x5d5   :  { %v7338_v62 = vpop.eup %7337  ;;  %7347 = vtanh.f32 %v9227_v17  ;;  %v3408_v21 = vadd.f32 1.0, %v7336_v38 }
 0x5d6   :  { %v9231_v60 = vadd.f32 %v3423_v12, %v3419_v18  ;;  %v3407_v41 = vadd.f32 1.0, %v7338_v62  ;;  %v3443_v62 = vld [vmem:[#allocation2 + $0x2b0] sm:$0xff] }
 0x5d7   :  { %7349 = vrcp.f32 %v3408_v21 }
 0x5d8   :  { %7351 = vtanh.f32 %v9231_v60 }
 0x5d9   :  { %7353 = vrcp.f32 %v3407_v41 }
 0x5db   :  { %v7340_v39 = vpop.eup %7339 }
 0x5dc   :  { %v7342_v40 = vpop.eup %7341 }
 0x5dd   :  { %v7344_v43 = vpop.eup %7343 }
 0x5de   :  { %v7346_v45 = vpop.eup %7345  ;;  %v3434_v19 = vmul.f32 %v7344_v43, %v7340_v39 }
 0x5df   :  { %v7348_v27 = vpop.eup %7347  ;;  %v3433_v42 = vmul.f32 %v7346_v45, %v7342_v40 }
 0x5e1   :  { %v7350_v46 = vpop.eup %7349  ;;  %v6958_v44 = vpack.c.bf16 %v3434_v19, %v3433_v42 }
 0x5e2   :  { %v7352_v50 = vpop.eup %7351  ;;  %v3436_v4 = vmul.f32 %v7350_v46, %v7348_v27  ;;  %v3446_v27 = vld [vmem:[#allocation2 + $0x2c8] sm:$0xff] }
 0x5e3   :  { %v7354_v47 = vpop.eup %7353  ;;  %6959 = vmatprep.subr.bf16.mxu1 %v6958_v44 }
 0x5e4   :  { %6961 = vmatpush3.bf16.msra.mxu1 %v6958_v44  ;;  %v3435_v48 = vmul.f32 %v7354_v47, %v7352_v50  ;;  %v3445_v47 = vld [vmem:[#allocation2 + $0x2c0] sm:$0xff] }
 0x5e6   :  { %v6962_v49 = vpack.c.bf16 %v3436_v4, %v3435_v48 }
 0x5e8   :  { %6963 = vmatprep.subr.bf16.mxu1 %v6962_v49 }
 0x5e9   :  { %6965 = vmatpush3.bf16.msra.mxu1 %v6962_v49 }
 0x5ec   :  { %6710 = vmatmul.mubr.msk.f32.vlgmr.msra.gmra.mrb[102].mxu1 %vm2039_vm1, %v9109_v23 }
 0x5ed   :  { %6712 = vmatprep.mubr.msk.f32.mxu1 %vm2039_vm1, %v9116_v24 }
 0x5f0   :  { %6713 = vmatmul.mubr.msk.f32.gmra.mrb[104].mxu1 %vm2039_vm1, %v9123_v28 }
 0x5f1   :  { %6715 = vmatprep.mubr.msk.f32.mxu1 %vm2039_vm1, %v9130_v25 }
 0x5f4   :  { %6716 = vmatmul.mubr.msk.f32.gmra.mrb[106].mxu1 %vm2039_vm1, %v9137_v26 }
 0x5f5   :  { %6718 = vmatprep.mubr.msk.f32.mxu1 %vm2039_vm1, %v9144_v29 }
 0x5f8   :  { %6719 = vmatmul.mubr.msk.f32.gmra.mrb[108].mxu1 %vm2039_vm1, %v9151_v30 }
 0x5f9   :  { %6721 = vmatprep.mubr.msk.f32.mxu1 %vm2039_vm1, %v9158_v2 }
 0x5fc   :  { %6722 = vmatmul.mubr.msk.f32.gmra.mrb[110].mxu1 %vm2039_vm1, %v9165_v31 }
 0x5fd   :  { %6724 = vmatprep.mubr.msk.f32.mxu1 %vm2039_vm1, %v9172_v32 }
 0x600   :  { %6725 = vmatmul.mubr.msk.f32.gmra.mrb[112].mxu1 %vm2039_vm1, %v9179_v33 }
 0x601   :  { %6727 = vmatprep.mubr.msk.f32.mxu1 %vm2039_vm1, %v9186_v34 }
 0x604   :  { %6728 = vmatmul.mubr.msk.f32.gmra.mrb[114].mxu1 %vm2039_vm1, %v9193_v3 }
 0x605   :  { %6730 = vmatprep.mubr.msk.f32.mxu1 %vm2039_vm1, %v9200_v35 }
 0x608   :  { %6731 = vmatmul.mubr.msk.f32.gmra.mrb[116].mxu1 %vm2039_vm1, %v9207_v36 }
 0x609   :  { %6773 = vmatprep.mubr.msk.f32.mxu1 %vm2039_vm1, %v9214_v56 }
 0x6bf   :  { %v6711_v54 = vpop.f32.mrb[102].mxu1 }
 0x6c0   :  { %v3599_v51 = vadd.f32 %v6711_v54, %v3438_v8  ;;  %v3519_v5 = vpop.f32.mrb[103].mxu1  ;;  %v3448_v54 = vld [vmem:[#allocation2 + $0x2d8] sm:$0xff] }
 0x6c1   :  { %v3598_v63 = vadd.f32 %v3519_v5, %v3437_v53 }
 0x6c2   :  { %v5817_v52 = vmul.f32 -1.442695, %v3599_v51 }
 0x6c3   :  { %v5816_v58 = vmul.f32 -1.442695, %v3598_v63  ;;  %v6714_v9 = vpop.f32.mrb[104].mxu1 }
 0x6c4   :  { %7355 = vpow2.f32 %v5817_v52  ;;  %v3601_v55 = vadd.f32 %v6714_v9, %v3440_v61  ;;  %v3529_v37 = vpop.f32.mrb[105].mxu1 }
 0x6c5   :  { %7357 = vpow2.f32 %v5816_v58  ;;  %v3600_v0 = vadd.f32 %v3529_v37, %v3439_v57  ;;  %v3447_v58 = vld [vmem:[#allocation2 + $0x2d0] sm:$0xff]  ;;  %v3450_v57 = vld [vmem:[#allocation2 + $0x2e8] sm:$0xff] }
 0x6c6   :  { %v5819_v59 = vmul.f32 -1.442695, %v3601_v55 }
 0x6c7   :  { %v5818_v6 = vmul.f32 -1.442695, %v3600_v0  ;;  %v6717_v56 = vpop.f32.mrb[106].mxu1 }
 0x6c8   :  { %7359 = vpow2.f32 %v5819_v59  ;;  %v3603_v12 = vadd.f32 %v6717_v56, %v3442_v10  ;;  %v3539_v7 = vpop.f32.mrb[107].mxu1 }
 0x6c9   :  { %7361 = vpow2.f32 %v5818_v6  ;;  %v3602_v14 = vadd.f32 %v3539_v7, %v3441_v1  ;;  %v3449_v6 = vld [vmem:[#allocation2 + $0x2e0] sm:$0xff] }
 0x6ca   :  { %v5821_v15 = vmul.f32 -1.442695, %v3603_v12 }
 0x6cb   :  { %v5820_v16 = vmul.f32 -1.442695, %v3602_v14  ;;  %v6720_v38 = vpop.f32.mrb[108].mxu1 }
 0x6cc   :  { %7363 = vpow2.f32 %v5821_v15  ;;  %v3605_v18 = vadd.f32 %v6720_v38, %v3444_v20  ;;  %v3549_v21 = vpop.f32.mrb[109].mxu1 }
 0x6cd   :  { %7365 = vpow2.f32 %v5820_v16  ;;  %v3604_v41 = vadd.f32 %v3549_v21, %v3443_v62  ;;  %v3452_v16 = vld [vmem:[#allocation2 + $0x2f8] sm:$0xff]  ;;  %v3451_v62 = vld [vmem:[#allocation2 + $0x2f0] sm:$0xff] }
 0x6ce   :  { %v7356_v39 = vpop.eup %7355  ;;  %v5823_v40 = vmul.f32 -1.442695, %v3605_v18 }
 0x6cf   :  { %v7358_v43 = vpop.eup %7357  ;;  %v3627_v45 = vadd.f32 1.0, %v7356_v39  ;;  %v5822_v19 = vmul.f32 -1.442695, %v3604_v41  ;;  %v6723_v42 = vpop.f32.mrb[110].mxu1 }
 0x6d0   :  { %v3626_v46 = vadd.f32 1.0, %v7358_v43  ;;  %7367 = vpow2.f32 %v5823_v40  ;;  %v3607_v44 = vadd.f32 %v6723_v42, %v3446_v27  ;;  %v3559_v50 = vpop.f32.mrb[111].mxu1 }
 0x6d1   :  { %7369 = vrcp.f32 %v3627_v45  ;;  %v3606_v8 = vadd.f32 %v3559_v50, %v3445_v47 }
 0x6d2   :  { %v7360_v4 = vpop.eup %7359  ;;  %7371 = vrcp.f32 %v3626_v46 }
 0x6d3   :  { %v7362_v48 = vpop.eup %7361  ;;  %v3629_v49 = vadd.f32 1.0, %v7360_v4  ;;  %7373 = vpow2.f32 %v5822_v19  ;;  %v6726_v51 = vpop.f32.mrb[112].mxu1 }
 0x6d4   :  { %v3628_v53 = vadd.f32 1.0, %v7362_v48  ;;  %7375 = vtanh.f32 %v3607_v44  ;;  %v3609_v5 = vadd.f32 %v6726_v51, %v3448_v54  ;;  %v3569_v63 = vpop.f32.mrb[113].mxu1 }
 0x6d5   :  { %7377 = vrcp.f32 %v3629_v49  ;;  %v3608_v55 = vadd.f32 %v3569_v63, %v3447_v58 }
 0x6d6   :  { %v7364_v52 = vpop.eup %7363  ;;  %7379 = vrcp.f32 %v3628_v53 }
 0x6d7   :  { %v7366_v61 = vpop.eup %7365  ;;  %v3651_v9 = vadd.f32 1.0, %v7364_v52  ;;  %7381 = vtanh.f32 %v3606_v8  ;;  %v6729_v37 = vpop.f32.mrb[114].mxu1 }
 0x6d8   :  { %v3650_v0 = vadd.f32 1.0, %v7366_v61  ;;  %7383 = vtanh.f32 %v3609_v5  ;;  %v3611_v59 = vadd.f32 %v6729_v37, %v3450_v57  ;;  %v3579_v10 = vpop.f32.mrb[115].mxu1 }
 0x6d9   :  { %7385 = vrcp.f32 %v3651_v9  ;;  %v3610_v56 = vadd.f32 %v3579_v10, %v3449_v6 }
 0x6da   :  { %v7368_v12 = vpop.eup %7367  ;;  %7387 = vrcp.f32 %v3650_v0  ;;  %v5825_v1 = vmul.f32 -1.442695, %v3611_v59 }
 0x6db   :  { %v7370_v7 = vpop.eup %7369  ;;  %v3653_v14 = vadd.f32 1.0, %v7368_v12  ;;  %7389 = vtanh.f32 %v3608_v55  ;;  %v5824_v15 = vmul.f32 -1.442695, %v3610_v56  ;;  %v6732_v20 = vpop.f32.mrb[116].mxu1 }
 0x6dc   :  { %v7372_v38 = vpop.eup %7371  ;;  %7391 = vpow2.f32 %v5825_v1  ;;  %v3613_v18 = vadd.f32 %v6732_v20, %v3452_v16  ;;  %v3589_v21 = vpop.f32.mrb[117].mxu1 }
 0x6dd   :  { %v7374_v41 = vpop.eup %7373  ;;  %7393 = vrcp.f32 %v3653_v14  ;;  %v3612_v39 = vadd.f32 %v3589_v21, %v3451_v62 }
 0x6de   :  { %v7376_v40 = vpop.eup %7375  ;;  %v3652_v43 = vadd.f32 1.0, %v7374_v41  ;;  %7395 = vpow2.f32 %v5824_v15  ;;  %v5827_v45 = vmul.f32 -1.442695, %v3613_v18 }
 0x6df   :  { %v7378_v19 = vpop.eup %7377  ;;  %v3695_v27 = vmul.f32 %v7376_v40, %v7370_v7  ;;  %v5826_v42 = vmul.f32 -1.442695, %v3612_v39 }
 0x6e0   :  { %v7380_v46 = vpop.eup %7379  ;;  %7397 = vrcp.f32 %v3652_v43  ;;  %v3715_v43 = vld [vmem:[#allocation2 + $0x328] sm:$0xff] }
 0x6e1   :  { %v7382_v44 = vpop.eup %7381  ;;  %7399 = vpow2.f32 %v5827_v45 }
 0x6e2   :  { %v7384_v50 = vpop.eup %7383  ;;  %v3694_v4 = vmul.f32 %v7382_v44, %v7372_v38  ;;  %7401 = vpow2.f32 %v5826_v42 }
 0x6e3   :  { %v7386_v47 = vpop.eup %7385  ;;  %v3697_v48 = vmul.f32 %v7384_v50, %v7378_v19  ;;  %v3714_v19 = vld [vmem:[#allocation2 + $0x320] sm:$0xff]  ;;  %v3717_v50 = vld [vmem:[#allocation2 + $0x338] sm:$0xff] }
 0x6e4   :  { %v7388_v49 = vpop.eup %7387  ;;  %v3691_v8 = vmul.f32 %v7386_v47, %v9220_v11 }
 0x6e5   :  { %v7390_v54 = vpop.eup %7389  ;;  %v3690_v51 = vmul.f32 %v7388_v49, %v9222_v13 }
 0x6e6   :  { %v7392_v53 = vpop.eup %7391  ;;  %v9268_v5 = vadd.f32 %v3695_v27, %v3691_v8  ;;  %v3696_v63 = vmul.f32 %v7390_v54, %v7380_v46 }
 0x6e7   :  { %v7394_v52 = vpop.eup %7393  ;;  %v9270_v58 = vadd.f32 %v3694_v4, %v3690_v51  ;;  %v3679_v61 = vadd.f32 1.0, %v7392_v53 }
 0x6e8   :  { %v7396_v9 = vpop.eup %7395  ;;  %v3693_v55 = vmul.f32 %v7394_v52, %v9227_v17  ;;  %7403 = vtanh.f32 %v9268_v5 }
 0x6e9   :  { %7405 = vtanh.f32 %v9270_v58  ;;  %v3678_v57 = vadd.f32 1.0, %v7396_v9 }
 0x6ea   :  { %v7398_v11 = vpop.eup %7397  ;;  %v9275_v37 = vadd.f32 %v3697_v48, %v3693_v55  ;;  %7407 = vrcp.f32 %v3679_v61  ;;  %v3716_v48 = vld [vmem:[#allocation2 + $0x330] sm:$0xff]  ;;  %v3719_v61 = vld [vmem:[#allocation2 + $0x348] sm:$0xff] }
 0x6eb   :  { %v7400_v13 = vpop.eup %7399  ;;  %v3692_v0 = vmul.f32 %v7398_v11, %v9231_v60  ;;  %7409 = vrcp.f32 %v3678_v57 }
 0x6ec   :  { %v7402_v59 = vpop.eup %7401  ;;  %7411 = vtanh.f32 %v9275_v37  ;;  %v3681_v6 = vadd.f32 1.0, %v7400_v13 }
 0x6ed   :  { %v9279_v10 = vadd.f32 %v3696_v63, %v3692_v0  ;;  %v3680_v17 = vadd.f32 1.0, %v7402_v59  ;;  %v3718_v0 = vld [vmem:[#allocation2 + $0x340] sm:$0xff] }
 0x6ee   :  { %7413 = vrcp.f32 %v3681_v6 }
 0x6ef   :  { %7415 = vtanh.f32 %v9279_v10 }
 0x6f0   :  { %7417 = vrcp.f32 %v3680_v17 }
 0x6f2   :  { %v7404_v56 = vpop.eup %7403 }
 0x6f3   :  { %v7406_v12 = vpop.eup %7405 }
 0x6f4   :  { %v7408_v1 = vpop.eup %7407 }
 0x6f5   :  { %v7410_v7 = vpop.eup %7409  ;;  %v3707_v14 = vmul.f32 %v7408_v1, %v7404_v56  ;;  %v3721_v56 = vld [vmem:[#allocation2 + $0x358] sm:$0xff] }
 0x6f6   :  { %v7412_v15 = vpop.eup %7411  ;;  %v3706_v16 = vmul.f32 %v7410_v7, %v7406_v12 }
 0x6f8   :  { %v7414_v60 = vpop.eup %7413  ;;  %v6966_v20 = vpack.c.bf16 %v3707_v14, %v3706_v16  ;;  %v3720_v16 = vld [vmem:[#allocation2 + $0x350] sm:$0xff] }
 0x6f9   :  { %v7416_v38 = vpop.eup %7415  ;;  %v3709_v18 = vmul.f32 %v7414_v60, %v7412_v15 }
 0x6fa   :  { %v7418_v62 = vpop.eup %7417  ;;  %6967 = vmatprep.subr.bf16.mxu0 %v6966_v20 }
 0x6fb   :  { %6969 = vmatpush3.bf16.msra.mxu0 %v6966_v20  ;;  %v3708_v21 = vmul.f32 %v7418_v62, %v7416_v38 }
 0x6fd   :  { %v6970_v41 = vpack.c.bf16 %v3709_v18, %v3708_v21  ;;  %v3723_v18 = vld [vmem:[#allocation2 + $0x368] sm:$0xff] }
 0x6ff   :  { %6971 = vmatprep.subr.bf16.mxu0 %v6970_v41 }
 0x700   :  { %6973 = vmatpush3.bf16.msra.mxu0 %v6970_v41 }
 0x703   :  { %6742 = vmatmul.mubr.msk.f32.vlgmr.msra.gmra.mrb[106].mxu0 %vm2039_vm1, %v9109_v23  ;;  %v3711_v23 = vld [vmem:[#allocation2 + $0x308] sm:$0xff] }
 0x704   :  { %6744 = vmatprep.mubr.msk.f32.mxu0 %vm2039_vm1, %v9116_v24 }
 0x707   :  { %6745 = vmatmul.mubr.msk.f32.gmra.mrb[108].mxu0 %vm2039_vm1, %v9123_v28 }
 0x708   :  { %6747 = vmatprep.mubr.msk.f32.mxu0 %vm2039_vm1, %v9130_v25  ;;  %v3710_v25 = vld [vmem:[#allocation2 + $0x300] sm:$0xff] }
 0x70b   :  { %6748 = vmatmul.mubr.msk.f32.gmra.mrb[110].mxu0 %vm2039_vm1, %v9137_v26 }
 0x70c   :  { %6750 = vmatprep.mubr.msk.f32.mxu0 %vm2039_vm1, %v9144_v29 }
 0x70f   :  { %6751 = vmatmul.mubr.msk.f32.gmra.mrb[112].mxu0 %vm2039_vm1, %v9151_v30 }
 0x710   :  { %6753 = vmatprep.mubr.msk.f32.mxu0 %vm2039_vm1, %v9158_v2 }
 0x713   :  { %6754 = vmatmul.mubr.msk.f32.gmra.mrb[114].mxu0 %vm2039_vm1, %v9165_v31  ;;  %v3713_v31 = vld [vmem:[#allocation2 + $0x318] sm:$0xff] }
 0x714   :  { %6756 = vmatprep.mubr.msk.f32.mxu0 %vm2039_vm1, %v9172_v32 }
 0x717   :  { %6757 = vmatmul.mubr.msk.f32.gmra.mrb[116].mxu0 %vm2039_vm1, %v9179_v33 }
 0x718   :  { %6759 = vmatprep.mubr.msk.f32.mxu0 %vm2039_vm1, %v9186_v34  ;;  %v3712_v34 = vld [vmem:[#allocation2 + $0x310] sm:$0xff] }
 0x71b   :  { %6760 = vmatmul.mubr.msk.f32.gmra.mrb[118].mxu0 %vm2039_vm1, %v9193_v3 }
 0x71c   :  { %6762 = vmatprep.mubr.msk.f32.mxu0 %vm2039_vm1, %v9200_v35 }
 0x71f   :  { %6763 = vmatmul.mubr.msk.f32.gmra.mrb[120].mxu0 %vm2039_vm1, %v9207_v36 }
 0x7d6   :  { %v6743_v24 = vpop.f32.mrb[106].mxu0 }
 0x7d7   :  { %v3872_v28 = vadd.f32 %v6743_v24, %v3711_v23  ;;  %v3792_v26 = vpop.f32.mrb[107].mxu0  ;;  %v3722_v23 = vld [vmem:[#allocation2 + $0x360] sm:$0xff] }
 0x7d8   :  { %v3871_v29 = vadd.f32 %v3792_v26, %v3710_v25 }
 0x7d9   :  { %v5845_v30 = vmul.f32 -1.442695, %v3872_v28 }
 0x7da   :  { %v5844_v2 = vmul.f32 -1.442695, %v3871_v29  ;;  %v6746_v32 = vpop.f32.mrb[108].mxu0 }
 0x7db   :  { %7419 = vpow2.f32 %v5845_v30  ;;  %v3874_v33 = vadd.f32 %v6746_v32, %v3713_v31  ;;  %v3802_v3 = vpop.f32.mrb[109].mxu0  ;;  %v3725_v31 = vld [vmem:[#allocation2 + $0x378] sm:$0xff] }
 0x7dc   :  { %7421 = vpow2.f32 %v5844_v2  ;;  %v3873_v39 = vadd.f32 %v3802_v3, %v3712_v34  ;;  %v3724_v3 = vld [vmem:[#allocation2 + $0x370] sm:$0xff] }
 0x7dd   :  { %v5847_v35 = vmul.f32 -1.442695, %v3874_v33 }
 0x7de   :  { %v5846_v40 = vmul.f32 -1.442695, %v3873_v39  ;;  %v6749_v36 = vpop.f32.mrb[110].mxu0 }
 0x7df   :  { %7423 = vpow2.f32 %v5847_v35  ;;  %v3876_v45 = vadd.f32 %v6749_v36, %v3715_v43  ;;  %v3812_v27 = vpop.f32.mrb[111].mxu0 }
 0x7e0   :  { %7425 = vpow2.f32 %v5846_v40  ;;  %v3875_v42 = vadd.f32 %v3812_v27, %v3714_v19 }
 0x7e1   :  { %v5849_v46 = vmul.f32 -1.442695, %v3876_v45 }
 0x7e2   :  { %v5848_v44 = vmul.f32 -1.442695, %v3875_v42  ;;  %v6752_v4 = vpop.f32.mrb[112].mxu0 }
 0x7e3   :  { %7427 = vpow2.f32 %v5849_v46  ;;  %v3878_v47 = vadd.f32 %v6752_v4, %v3717_v50  ;;  %v3822_v49 = vpop.f32.mrb[113].mxu0 }
 0x7e4   :  { %7429 = vpow2.f32 %v5848_v44  ;;  %v3877_v8 = vadd.f32 %v3822_v49, %v3716_v48 }
 0x7e5   :  { %v7420_v54 = vpop.eup %7419  ;;  %v5851_v51 = vmul.f32 -1.442695, %v3878_v47 }
 0x7e6   :  { %v7422_v53 = vpop.eup %7421  ;;  %v3900_v63 = vadd.f32 1.0, %v7420_v54  ;;  %v5850_v52 = vmul.f32 -1.442695, %v3877_v8  ;;  %v6755_v9 = vpop.f32.mrb[114].mxu0 }
 0x7e7   :  { %v3899_v55 = vadd.f32 1.0, %v7422_v53  ;;  %7431 = vpow2.f32 %v5851_v51  ;;  %v3880_v57 = vadd.f32 %v6755_v9, %v3719_v61  ;;  %v3832_v11 = vpop.f32.mrb[115].mxu0 }
 0x7e8   :  { %7433 = vrcp.f32 %v3900_v63  ;;  %v3879_v17 = vadd.f32 %v3832_v11, %v3718_v0 }
 0x7e9   :  { %v7424_v13 = vpop.eup %7423  ;;  %7435 = vrcp.f32 %v3899_v55 }
 0x7ea   :  { %v7426_v59 = vpop.eup %7425  ;;  %v3902_v6 = vadd.f32 1.0, %v7424_v13  ;;  %7437 = vpow2.f32 %v5850_v52  ;;  %v6758_v12 = vpop.f32.mrb[116].mxu0 }
 0x7eb   :  { %v3901_v1 = vadd.f32 1.0, %v7426_v59  ;;  %7439 = vtanh.f32 %v3880_v57  ;;  %v3882_v7 = vadd.f32 %v6758_v12, %v3721_v56  ;;  %v3842_v14 = vpop.f32.mrb[117].mxu0 }
 0x7ec   :  { %7441 = vrcp.f32 %v3902_v6  ;;  %v3881_v38 = vadd.f32 %v3842_v14, %v3720_v16 }
 0x7ed   :  { %v7428_v15 = vpop.eup %7427  ;;  %7443 = vrcp.f32 %v3901_v1 }
 0x7ee   :  { %v7430_v60 = vpop.eup %7429  ;;  %v3924_v20 = vadd.f32 1.0, %v7428_v15  ;;  %7445 = vtanh.f32 %v3879_v17  ;;  %v6761_v62 = vpop.f32.mrb[118].mxu0 }
 0x7ef   :  { %v3923_v21 = vadd.f32 1.0, %v7430_v60  ;;  %7447 = vtanh.f32 %v3882_v7  ;;  %v3884_v41 = vadd.f32 %v6761_v62, %v3723_v18  ;;  %v3852_v24 = vpop.f32.mrb[119].mxu0 }
 0x7f0   :  { %7449 = vrcp.f32 %v3924_v20  ;;  %v3883_v28 = vadd.f32 %v3852_v24, %v3722_v23  ;;  %v7771_v23 = vld [vmem:[%s9822_s3 + $0x8] sm:$0xff]  ;;  %v7772_v24 = vld [vmem:[%s9822_s3 + $0x10] sm:$0xff] }
 0x7f1   :  { %v7432_v25 = vpop.eup %7431  ;;  %7451 = vrcp.f32 %v3923_v21  ;;  %v5853_v26 = vmul.f32 -1.442695, %v3884_v41 }
 0x7f2   :  { %v7434_v29 = vpop.eup %7433  ;;  %v3926_v30 = vadd.f32 1.0, %v7432_v25  ;;  %7453 = vtanh.f32 %v3881_v38  ;;  %v5852_v2 = vmul.f32 -1.442695, %v3883_v28  ;;  %v6764_v32 = vpop.f32.mrb[120].mxu0  ;;  %v7773_v28 = vld [vmem:[%s9822_s3 + $0x18] sm:$0xff]  ;;  %v7774_v25 = vld [vmem:[%s9822_s3 + $0x20] sm:$0xff] }
 0x7f3   :  { %v7436_v33 = vpop.eup %7435  ;;  %7455 = vpow2.f32 %v5853_v26  ;;  %v3886_v34 = vadd.f32 %v6764_v32, %v3725_v31  ;;  %v3862_v39 = vpop.f32.mrb[121].mxu0  ;;  %v7775_v26 = vld [vmem:[%s9822_s3 + $0x28] sm:$0xff]  ;;  %v7780_v32 = vld [vmem:[%s9822_s3 + $0x50] sm:$0xff] }
 0x7f4   :  { %v7438_v35 = vpop.eup %7437  ;;  %7457 = vrcp.f32 %v3926_v30  ;;  %v3885_v40 = vadd.f32 %v3862_v39, %v3724_v3  ;;  %v7777_v30 = vld [vmem:[%s9822_s3 + $0x38] sm:$0xff]  ;;  %v7779_v31 = vld [vmem:[%s9822_s3 + $0x48] sm:$0xff]  ;;  %v7784_v39 = vld [vmem:[%s9822_s3 + $0x70] sm:$0xff] }
 0x7f5   :  { %v7440_v43 = vpop.eup %7439  ;;  %v3925_v36 = vadd.f32 1.0, %v7438_v35  ;;  %7459 = vpow2.f32 %v5852_v2  ;;  %v5855_v45 = vmul.f32 -1.442695, %v3886_v34  ;;  %v7778_v2 = vld [vmem:[%s9822_s3 + $0x40] sm:$0xff]  ;;  %v7783_v3 = vld [vmem:[%s9822_s3 + $0x68] sm:$0xff]  ;;  %v7785_v35 = vld [vmem:[%s9822_s3 + $0x78] sm:$0xff] }
 0x7f6   :  { %v7442_v19 = vpop.eup %7441  ;;  %v3968_v27 = vmul.f32 %v7440_v43, %v7434_v29  ;;  %v5854_v42 = vmul.f32 -1.442695, %v3885_v40  ;;  %v7776_v29 = vld [vmem:[%s9822_s3 + $0x30] sm:$0xff]  ;;  %v7782_v34 = vld [vmem:[%s9822_s3 + $0x60] sm:$0xff]  ;;  %v3984_v43 = vld [vmem:[#allocation2 + $0x388] sm:$0xff] }
 0x7f7   :  { %v7444_v46 = vpop.eup %7443  ;;  %7461 = vrcp.f32 %v3925_v36  ;;  %v9391_v40 = vld [vmem:[%s9823_s4] sm:$0xff] }
 0x7f8   :  { %v7446_v44 = vpop.eup %7445  ;;  %7463 = vpow2.f32 %v5855_v45  ;;  %6805 = vmatprep.mubr.msk.f32.mxu0 %vm2039_vm1, %v9391_v40 }
 0x7f9   :  { %v7448_v50 = vpop.eup %7447  ;;  %v3967_v4 = vmul.f32 %v7446_v44, %v7436_v33  ;;  %7465 = vpow2.f32 %v5854_v42  ;;  %v7781_v33 = vld [vmem:[%s9822_s3 + $0x58] sm:$0xff] }
 0x7fa   :  { %v7450_v47 = vpop.eup %7449  ;;  %v3970_v48 = vmul.f32 %v7448_v50, %v7442_v19  ;;  %v3983_v19 = vld [vmem:[#allocation2 + $0x380] sm:$0xff]  ;;  %v3986_v50 = vld [vmem:[#allocation2 + $0x398] sm:$0xff] }
 0x7fb   :  { %v7452_v49 = vpop.eup %7451  ;;  %v3964_v8 = vmul.f32 %v7450_v47, %v9268_v5 }
 0x7fc   :  { %v7454_v54 = vpop.eup %7453  ;;  %v3963_v51 = vmul.f32 %v7452_v49, %v9270_v58 }
 0x7fd   :  { %v7456_v53 = vpop.eup %7455  ;;  %v9314_v63 = vadd.f32 %v3968_v27, %v3964_v8  ;;  %v3969_v52 = vmul.f32 %v7454_v54, %v7444_v46 }
 0x7fe   :  { %v7458_v61 = vpop.eup %7457  ;;  %v9316_v9 = vadd.f32 %v3967_v4, %v3963_v51  ;;  %v3952_v55 = vadd.f32 1.0, %v7456_v53  ;;  %v3988_v53 = vld [vmem:[#allocation2 + $0x3a8] sm:$0xff] }
 0x7ff   :  { %v7460_v57 = vpop.eup %7459  ;;  %v3966_v11 = vmul.f32 %v7458_v61, %v9275_v37  ;;  %7467 = vtanh.f32 %v9314_v63 }
 0x800   :  { %7469 = vtanh.f32 %v9316_v9  ;;  %v3951_v13 = vadd.f32 1.0, %v7460_v57 }
 0x801   :  { %v7462_v5 = vpop.eup %7461  ;;  %v9321_v0 = vadd.f32 %v3970_v48, %v3966_v11  ;;  %7471 = vrcp.f32 %v3952_v55  ;;  %v3985_v48 = vld [vmem:[#allocation2 + $0x390] sm:$0xff]  ;;  %v3987_v55 = vld [vmem:[#allocation2 + $0x3a0] sm:$0xff] }
 0x802   :  { %v7464_v58 = vpop.eup %7463  ;;  %v3965_v59 = vmul.f32 %v7462_v5, %v9279_v10  ;;  %7473 = vrcp.f32 %v3951_v13 }
 0x803   :  { %v7466_v6 = vpop.eup %7465  ;;  %7475 = vtanh.f32 %v9321_v0  ;;  %v3954_v17 = vadd.f32 1.0, %v7464_v58  ;;  %v3990_v58 = vld [vmem:[#allocation2 + $0x3b8] sm:$0xff] }
 0x804   :  { %v9325_v56 = vadd.f32 %v3969_v52, %v3965_v59  ;;  %v3953_v37 = vadd.f32 1.0, %v7466_v6 }
 0x805   :  { %7477 = vrcp.f32 %v3954_v17  ;;  %v3989_v17 = vld [vmem:[#allocation2 + $0x3b0] sm:$0xff] }
 0x806   :  { %7479 = vtanh.f32 %v9325_v56 }
 0x807   :  { %7481 = vrcp.f32 %v3953_v37 }
 0x809   :  { %v7468_v12 = vpop.eup %7467 }
 0x80a   :  { %v7470_v1 = vpop.eup %7469 }
 0x80b   :  { %v7472_v7 = vpop.eup %7471 }
 0x80c   :  { %v7474_v14 = vpop.eup %7473  ;;  %v3980_v15 = vmul.f32 %v7472_v7, %v7468_v12 }
 0x80d   :  { %v7476_v16 = vpop.eup %7475  ;;  %v3979_v60 = vmul.f32 %v7474_v14, %v7470_v1 }
 0x80f   :  { %v7478_v10 = vpop.eup %7477  ;;  %v6974_v20 = vpack.c.bf16 %v3980_v15, %v3979_v60  ;;  %v3992_v60 = vld [vmem:[#allocation2 + $0x3c8] sm:$0xff] }
 0x810   :  { %v7480_v38 = vpop.eup %7479  ;;  %v3982_v18 = vmul.f32 %v7478_v10, %v7476_v16 }
 0x811   :  { %v7482_v62 = vpop.eup %7481  ;;  %6975 = vmatprep.subr.bf16.mxu1 %v6974_v20 }
 0x812   :  { %6977 = vmatpush3.bf16.msra.mxu1 %v6974_v20  ;;  %v3981_v21 = vmul.f32 %v7482_v62, %v7480_v38 }
 0x814   :  { %v6978_v41 = vpack.c.bf16 %v3982_v18, %v3981_v21  ;;  %v3991_v21 = vld [vmem:[#allocation2 + $0x3c0] sm:$0xff] }
 0x816   :  { %6979 = vmatprep.subr.bf16.mxu1 %v6978_v41 }
 0x817   :  { %6981 = vmatpush3.bf16.msra.mxu1 %v6978_v41 }
 0x81a   :  { %6774 = vmatmul.mubr.msk.f32.vlgmr.msra.gmra.mrb[118].mxu1 %vm2039_vm1, %v7771_v23 }
 0x81b   :  { %6776 = vmatprep.mubr.msk.f32.mxu1 %vm2039_vm1, %v7772_v24 }
 0x81e   :  { %6777 = vmatmul.mubr.msk.f32.gmra.mrb[120].mxu1 %vm2039_vm1, %v7773_v28  ;;  %v3994_v28 = vld [vmem:[#allocation2 + $0x3d8] sm:$0xff] }
 0x81f   :  { %6779 = vmatprep.mubr.msk.f32.mxu1 %vm2039_vm1, %v7774_v25 }
 0x822   :  { %6780 = vmatmul.mubr.msk.f32.gmra.mrb[122].mxu1 %vm2039_vm1, %v7775_v26 }
 0x823   :  { %6782 = vmatprep.mubr.msk.f32.mxu1 %vm2039_vm1, %v7776_v29 }
 0x826   :  { %6783 = vmatmul.mubr.msk.f32.gmra.mrb[124].mxu1 %vm2039_vm1, %v7777_v30 }
 0x827   :  { %6785 = vmatprep.mubr.msk.f32.mxu1 %vm2039_vm1, %v7778_v2 }
 0x82a   :  { %6786 = vmatmul.mubr.msk.f32.gmra.mrb[126].mxu1 %vm2039_vm1, %v7779_v31  ;;  %v3993_v31 = vld [vmem:[#allocation2 + $0x3d0] sm:$0xff] }
 0x82b   :  { %6788 = vmatprep.mubr.msk.f32.mxu1 %vm2039_vm1, %v7780_v32 }
 0x82e   :  { %6789 = vmatmul.mubr.msk.f32.gmra.mrb[128].mxu1 %vm2039_vm1, %v7781_v33 }
 0x82f   :  { %6791 = vmatprep.mubr.msk.f32.mxu1 %vm2039_vm1, %v7782_v34 }
 0x832   :  { %6792 = vmatmul.mubr.msk.f32.gmra.mrb[130].mxu1 %vm2039_vm1, %v7783_v3  ;;  %v3996_v3 = vld [vmem:[#allocation2 + $0x3e8] sm:$0xff] }
 0x833   :  { %6794 = vmatprep.mubr.msk.f32.mxu1 %vm2039_vm1, %v7784_v39 }
 0x836   :  { %6795 = vmatmul.mubr.msk.f32.gmra.mrb[132].mxu1 %vm2039_vm1, %v7785_v35 }
 0x837   :  { %6837 = vmatprep.mubr.msk.f32.mxu1 %vm7813_vm2, %v7811_v22 }
 0x8ed   :  { %v6775_v36 = vpop.f32.mrb[118].mxu1 }
 0x8ee   :  { %v4145_v45 = vadd.f32 %v6775_v36, %v3984_v43  ;;  %v4065_v27 = vpop.f32.mrb[119].mxu1  ;;  %v3995_v36 = vld [vmem:[#allocation2 + $0x3e0] sm:$0xff] }
 0x8ef   :  { %v4144_v42 = vadd.f32 %v4065_v27, %v3983_v19 }
 0x8f0   :  { %v5873_v46 = vmul.f32 -1.442695, %v4145_v45 }
 0x8f1   :  { %v5872_v44 = vmul.f32 -1.442695, %v4144_v42  ;;  %v6778_v4 = vpop.f32.mrb[120].mxu1 }
 0x8f2   :  { %7483 = vpow2.f32 %v5873_v46  ;;  %v4147_v47 = vadd.f32 %v6778_v4, %v3986_v50  ;;  %v4075_v49 = vpop.f32.mrb[121].mxu1  ;;  %v3998_v4 = vld [vmem:[#allocation2 + $0x3f8] sm:$0xff] }
 0x8f3   :  { %7485 = vpow2.f32 %v5872_v44  ;;  %v4146_v8 = vadd.f32 %v4075_v49, %v3985_v48 }
 0x8f4   :  { %v5875_v54 = vmul.f32 -1.442695, %v4147_v47 }
 0x8f5   :  { %v5874_v51 = vmul.f32 -1.442695, %v4146_v8  ;;  %v6781_v52 = vpop.f32.mrb[122].mxu1  ;;  %v3997_v8 = vld [vmem:[#allocation2 + $0x3f0] sm:$0xff] }
 0x8f6   :  { %7487 = vpow2.f32 %v5875_v54  ;;  %v4149_v61 = vadd.f32 %v6781_v52, %v3988_v53  ;;  %v4085_v57 = vpop.f32.mrb[123].mxu1 }
 0x8f7   :  { %7489 = vpow2.f32 %v5874_v51  ;;  %v4148_v11 = vadd.f32 %v4085_v57, %v3987_v55 }
 0x8f8   :  { %v5877_v13 = vmul.f32 -1.442695, %v4149_v61 }
 0x8f9   :  { %v5876_v5 = vmul.f32 -1.442695, %v4148_v11  ;;  %v6784_v59 = vpop.f32.mrb[124].mxu1 }
 0x8fa   :  { %7491 = vpow2.f32 %v5877_v13  ;;  %v4151_v6 = vadd.f32 %v6784_v59, %v3990_v58  ;;  %v4095_v37 = vpop.f32.mrb[125].mxu1 }
 0x8fb   :  { %7493 = vpow2.f32 %v5876_v5  ;;  %v4150_v12 = vadd.f32 %v4095_v37, %v3989_v17 }
 0x8fc   :  { %v7484_v1 = vpop.eup %7483  ;;  %v5879_v7 = vmul.f32 -1.442695, %v4151_v6 }
 0x8fd   :  { %v7486_v14 = vpop.eup %7485  ;;  %v4173_v15 = vadd.f32 1.0, %v7484_v1  ;;  %v5878_v16 = vmul.f32 -1.442695, %v4150_v12  ;;  %v6787_v10 = vpop.f32.mrb[126].mxu1 }
 0x8fe   :  { %v4172_v20 = vadd.f32 1.0, %v7486_v14  ;;  %7495 = vpow2.f32 %v5879_v7  ;;  %v4153_v38 = vadd.f32 %v6787_v10, %v3992_v60  ;;  %v4105_v18 = vpop.f32.mrb[127].mxu1 }
 0x8ff   :  { %7497 = vrcp.f32 %v4173_v15  ;;  %v4152_v24 = vadd.f32 %v4105_v18, %v3991_v21 }
 0x900   :  { %v7488_v62 = vpop.eup %7487  ;;  %7499 = vrcp.f32 %v4172_v20 }
 0x901   :  { %v7490_v41 = vpop.eup %7489  ;;  %v4175_v23 = vadd.f32 1.0, %v7488_v62  ;;  %7501 = vpow2.f32 %v5878_v16  ;;  %v6790_v25 = vpop.f32.mrb[128].mxu1 }
 0x902   :  { %v4174_v26 = vadd.f32 1.0, %v7490_v41  ;;  %7503 = vtanh.f32 %v4153_v38  ;;  %v4155_v29 = vadd.f32 %v6790_v25, %v3994_v28  ;;  %v4115_v30 = vpop.f32.mrb[129].mxu1 }
 0x903   :  { %7505 = vrcp.f32 %v4175_v23  ;;  %v4154_v34 = vadd.f32 %v4115_v30, %v3993_v31 }
 0x904   :  { %v7492_v2 = vpop.eup %7491  ;;  %7507 = vrcp.f32 %v4174_v26 }
 0x905   :  { %v7494_v32 = vpop.eup %7493  ;;  %v4197_v33 = vadd.f32 1.0, %v7492_v2  ;;  %7509 = vtanh.f32 %v4152_v24  ;;  %v6793_v39 = vpop.f32.mrb[130].mxu1 }
 0x906   :  { %v4196_v35 = vadd.f32 1.0, %v7494_v32  ;;  %7511 = vtanh.f32 %v4155_v29  ;;  %v4157_v43 = vadd.f32 %v6793_v39, %v3996_v3  ;;  %v4125_v45 = vpop.f32.mrb[131].mxu1 }
 0x907   :  { %7513 = vrcp.f32 %v4197_v33  ;;  %v4156_v19 = vadd.f32 %v4125_v45, %v3995_v36  ;;  %v9402_v45 = vld [vmem:[%s9823_s4 + $0x8] sm:$0xff] }
 0x908   :  { %v7496_v27 = vpop.eup %7495  ;;  %7515 = vrcp.f32 %v4196_v35  ;;  %v5881_v42 = vmul.f32 -1.442695, %v4157_v43 }
 0x909   :  { %v7498_v46 = vpop.eup %7497  ;;  %v4199_v44 = vadd.f32 1.0, %v7496_v27  ;;  %7517 = vtanh.f32 %v4154_v34  ;;  %v5880_v50 = vmul.f32 -1.442695, %v4156_v19  ;;  %v6796_v47 = vpop.f32.mrb[132].mxu1  ;;  %v9407_v19 = vld [vmem:[%s9823_s4 + $0x10] sm:$0xff]  ;;  %v9416_v27 = vld [vmem:[%s9823_s4 + $0x18] sm:$0xff] }
 0x90a   :  { %v7500_v48 = vpop.eup %7499  ;;  %7519 = vpow2.f32 %v5881_v42  ;;  %v4159_v49 = vadd.f32 %v6796_v47, %v3998_v4  ;;  %v4135_v54 = vpop.f32.mrb[133].mxu1  ;;  %v9421_v42 = vld [vmem:[%s9823_s4 + $0x20] sm:$0xff]  ;;  %v9458_v47 = vld [vmem:[%s9823_s4 + $0x48] sm:$0xff] }
 0x90b   :  { %v7502_v51 = vpop.eup %7501  ;;  %7521 = vrcp.f32 %v4199_v44  ;;  %v4158_v53 = vadd.f32 %v4135_v54, %v3997_v8  ;;  %v9435_v44 = vld [vmem:[%s9823_s4 + $0x30] sm:$0xff]  ;;  %v9449_v4 = vld [vmem:[%s9823_s4 + $0x40] sm:$0xff]  ;;  %v9486_v54 = vld [vmem:[%s9823_s4 + $0x68] sm:$0xff] }
 0x90c   :  { %v7504_v52 = vpop.eup %7503  ;;  %v4198_v61 = vadd.f32 1.0, %v7502_v51  ;;  %7523 = vpow2.f32 %v5880_v50  ;;  %v5883_v55 = vmul.f32 -1.442695, %v4159_v49  ;;  %v9444_v50 = vld [vmem:[%s9823_s4 + $0x38] sm:$0xff]  ;;  %v9477_v8 = vld [vmem:[%s9823_s4 + $0x60] sm:$0xff]  ;;  %v9491_v51 = vld [vmem:[%s9823_s4 + $0x70] sm:$0xff] }
 0x90d   :  { %v7506_v57 = vpop.eup %7505  ;;  %v4241_v11 = vmul.f32 %v7504_v52, %v7498_v46  ;;  %v5882_v13 = vmul.f32 -1.442695, %v4158_v53  ;;  %v9430_v46 = vld [vmem:[%s9823_s4 + $0x28] sm:$0xff]  ;;  %v9472_v49 = vld [vmem:[%s9823_s4 + $0x58] sm:$0xff]  ;;  %v7812_v52 = vmov 0.0|0.0  }
 0x90e   :  { %v7508_v5 = vpop.eup %7507  ;;  %7525 = vrcp.f32 %v4198_v61  ;;  %v9500_v53 = vld [vmem:[%s9823_s4 + $0x78] sm:$0xff]  ;;  %6990 = vmatprep.subr.bf16.mxu1 %v7812_v52  ;;  %v9510_v61 = vpop.permute.xlu1 %4279 }
 0x90f   :  { %v7510_v58 = vpop.eup %7509  ;;  %7527 = vpow2.f32 %v5883_v55  ;;  %v9512_v55 = vpop.permute.xlu0 %4274 }
 0x910   :  { %v7512_v59 = vpop.eup %7511  ;;  %v4240_v6 = vmul.f32 %v7510_v58, %v7500_v48  ;;  %7529 = vpow2.f32 %v5882_v13  ;;  %v9463_v48 = vld [vmem:[%s9823_s4 + $0x50] sm:$0xff] }
 0x911   :  { %v7514_v17 = vpop.eup %7513  ;;  %v4243_v37 = vmul.f32 %v7512_v59, %v7506_v57 }
 0x912   :  { %v7516_v12 = vpop.eup %7515  ;;  %v4237_v1 = vmul.f32 %v7514_v17, %v9314_v63  ;;  %v9514_v57 = vpop.permute.xlu1 %4299 }
 0x913   :  { %v7518_v7 = vpop.eup %7517  ;;  %v4236_v14 = vmul.f32 %v7516_v12, %v9316_v9 }
 0x914   :  { %v7520_v15 = vpop.eup %7519  ;;  %v4245_v16 = vadd.f32 %v4241_v11, %v4237_v1  ;;  %v4242_v60 = vmul.f32 %v7518_v7, %v7508_v5  ;;  %v9516_v11 = vpop.permute.xlu0 %4294 }
 0x915   :  { %v7522_v10 = vpop.eup %7521  ;;  %v4244_v20 = vadd.f32 %v4240_v6, %v4236_v14  ;;  %v4225_v38 = vadd.f32 1.0, %v7520_v15 }
 0x916   :  { %v7524_v18 = vpop.eup %7523  ;;  %v4239_v62 = vmul.f32 %v7522_v10, %v9321_v0  ;;  %7531 = vtanh.f32 %v4245_v16  ;;  %v9518_v13 = vpop.permute.xlu1 %4289 }
 0x917   :  { %7533 = vtanh.f32 %v4244_v20  ;;  %v4224_v21 = vadd.f32 1.0, %v7524_v18 }
 0x918   :  { %v7526_v41 = vpop.eup %7525  ;;  %v4247_v23 = vadd.f32 %v4243_v37, %v4239_v62  ;;  %7535 = vrcp.f32 %v4225_v38  ;;  %v9520_v5 = vpop.permute.xlu0 %4284 }
 0x919   :  { %v7528_v24 = vpop.eup %7527  ;;  %v4238_v63 = vmul.f32 %v7526_v41, %v9325_v56  ;;  %7537 = vrcp.f32 %v4224_v21 }
 0x91a   :  { %v7530_v9 = vpop.eup %7529  ;;  %7539 = vtanh.f32 %v4247_v23  ;;  %v4227_v28 = vadd.f32 1.0, %v7528_v24  ;;  %v9523_v17 = vpop.permute.xlu1 %4309 }
 0x91b   :  { %v4246_v25 = vadd.f32 %v4242_v60, %v4238_v63  ;;  %v4226_v26 = vadd.f32 1.0, %v7530_v9 }
 0x91c   :  { %7541 = vrcp.f32 %v4227_v28  ;;  %v9526_v14 = vpop.permute.xlu0 %4304 }
 0x91d   :  { %7543 = vtanh.f32 %v4246_v25 }
 0x91e   :  { %7545 = vrcp.f32 %v4226_v26  ;;  %v9530_v20 = vpop.permute.xlu1 %4319 }
 0x920   :  { %v7532_v29 = vpop.eup %7531  ;;  %v9534_v23 = vpop.permute.xlu0 %4314 }
 0x921   :  { %v7534_v0 = vpop.eup %7533 }
 0x922   :  { %v7536_v30 = vpop.eup %7535  ;;  %v9537_v26 = vpop.permute.xlu1 %4339 }
 0x923   :  { %v7538_v2 = vpop.eup %7537  ;;  %v4253_v31 = vmul.f32 %v7536_v30, %v7532_v29 }
 0x924   :  { %v7540_v32 = vpop.eup %7539  ;;  %v4252_v33 = vmul.f32 %v7538_v2, %v7534_v0 }
 0x926   :  { %v7542_v34 = vpop.eup %7541  ;;  %v6982_v3 = vpack.c.bf16 %v4253_v31, %v4252_v33 }
 0x927   :  { %v7544_v39 = vpop.eup %7543  ;;  %v4255_v56 = vmul.f32 %v7542_v34, %v7540_v32  ;;  %v9540_v34 = vpop.permute.xlu0 %4334 }
 0x928   :  { %v7546_v35 = vpop.eup %7545  ;;  %6983 = vmatprep.subr.bf16.mxu0 %v6982_v3 }
 0x929   :  { %6985 = vmatpush3.bf16.msra.mxu0 %v6982_v3  ;;  %v4254_v43 = vmul.f32 %v7546_v35, %v7544_v39 }
 0x92b   :  { %v6986_v36 = vpack.c.bf16 %v4255_v56, %v4254_v43 }
 0x92d   :  { %6987 = vmatprep.subr.bf16.mxu0 %v6986_v36 }
 0x92e   :  { %6989 = vmatpush3.bf16.msra.mxu0 %v6986_v36  ;;  %v9543_v36 = vpop.permute.xlu1 %4329 }
 0x92f   :  { %7004 = vmatprep.subr.bf16.mxu0 %v7812_v52 }
 0x931   :  { %6806 = vmatmul.mubr.msk.f32.vlgmr.msra.gmra.mrb[122].mxu0 %vm2039_vm1, %v9402_v45 }
 0x932   :  { %6808 = vmatprep.mubr.msk.f32.mxu0 %vm2039_vm1, %v9407_v19 }
 0x935   :  { %6809 = vmatmul.mubr.msk.f32.gmra.mrb[124].mxu0 %vm2039_vm1, %v9416_v27 }
 0x936   :  { %6811 = vmatprep.mubr.msk.f32.mxu0 %vm2039_vm1, %v9421_v42 }
 0x939   :  { %6812 = vmatmul.mubr.msk.f32.gmra.mrb[126].mxu0 %vm2039_vm1, %v9430_v46 }
 0x93a   :  { %6814 = vmatprep.mubr.msk.f32.mxu0 %vm2039_vm1, %v9435_v44 }
 0x93d   :  { %6815 = vmatmul.mubr.msk.f32.gmra.mrb[128].mxu0 %vm2039_vm1, %v9444_v50 }
 0x93e   :  { %6817 = vmatprep.mubr.msk.f32.mxu0 %vm2039_vm1, %v9449_v4 }
 0x941   :  { %6818 = vmatmul.mubr.msk.f32.gmra.mrb[130].mxu0 %vm2039_vm1, %v9458_v47 }
 0x942   :  { %6820 = vmatprep.mubr.msk.f32.mxu0 %vm2039_vm1, %v9463_v48 }
 0x945   :  { %6821 = vmatmul.mubr.msk.f32.gmra.mrb[132].mxu0 %vm2039_vm1, %v9472_v49 }
 0x946   :  { %6823 = vmatprep.mubr.msk.f32.mxu0 %vm2039_vm1, %v9477_v8 }
 0x949   :  { %6824 = vmatmul.mubr.msk.f32.gmra.mrb[134].mxu0 %vm2039_vm1, %v9486_v54 }
 0x94a   :  { %6826 = vmatprep.mubr.msk.f32.mxu0 %vm2039_vm1, %v9491_v51 }
 0x94d   :  { %6827 = vmatmul.mubr.msk.f32.gmra.mrb[136].mxu0 %vm2039_vm1, %v9500_v53 }
 0x94e   :  { %6880 = vmatprep.mubr.msk.f32.mxu0 %vm7813_vm2, %v7811_v22 }
 0xa04   :  { %v6807_v58 = vpop.f32.mrb[122].mxu0 }
 0xa05   :  { %v4479_v59 = vadd.f32 %v6807_v58, %v9510_v61  ;;  %v4473_v6 = vpop.f32.mrb[123].mxu0 }
 0xa06   :  { %v4474_v37 = vadd.f32 %v4473_v6, %v9512_v55 }
 0xa07   :  { %v5901_v12 = vmul.f32 -1.442695, %v4479_v59 }
 0xa08   :  { %v5900_v1 = vmul.f32 -1.442695, %v4474_v37  ;;  %v6810_v7 = vpop.f32.mrb[124].mxu0 }
 0xa09   :  { %7547 = vpow2.f32 %v5901_v12  ;;  %v4489_v15 = vadd.f32 %v6810_v7, %v9518_v13  ;;  %v4483_v16 = vpop.f32.mrb[125].mxu0 }
 0xa0a   :  { %7549 = vpow2.f32 %v5900_v1  ;;  %v4484_v60 = vadd.f32 %v4483_v16, %v9520_v5 }
 0xa0b   :  { %v5903_v10 = vmul.f32 -1.442695, %v4489_v15  ;;  %v9547_v15 = vpop.permute.xlu0 %4324 }
 0xa0c   :  { %v5902_v38 = vmul.f32 -1.442695, %v4484_v60  ;;  %v6813_v18 = vpop.f32.mrb[126].mxu0 }
 0xa0d   :  { %7551 = vpow2.f32 %v5903_v10  ;;  %v4499_v62 = vadd.f32 %v6813_v18, %v9514_v57  ;;  %v4493_v21 = vpop.f32.mrb[127].mxu0 }
 0xa0e   :  { %7553 = vpow2.f32 %v5902_v38  ;;  %v4494_v41 = vadd.f32 %v4493_v21, %v9516_v11 }
 0xa0f   :  { %v5905_v24 = vmul.f32 -1.442695, %v4499_v62 }
 0xa10   :  { %v5904_v63 = vmul.f32 -1.442695, %v4494_v41  ;;  %v6816_v9 = vpop.f32.mrb[128].mxu0 }
 0xa11   :  { %7555 = vpow2.f32 %v5905_v24  ;;  %v4509_v28 = vadd.f32 %v6816_v9, %v9523_v17  ;;  %v4503_v25 = vpop.f32.mrb[129].mxu0 }
 0xa12   :  { %7557 = vpow2.f32 %v5904_v63  ;;  %v4504_v29 = vadd.f32 %v4503_v25, %v9526_v14 }
 0xa13   :  { %v7548_v0 = vpop.eup %7547  ;;  %v5907_v30 = vmul.f32 -1.442695, %v4509_v28  ;;  %v9552_v28 = vpop.permute.xlu1 %4349 }
 0xa14   :  { %v7550_v2 = vpop.eup %7549  ;;  %v4565_v31 = vadd.f32 1.0, %v7548_v0  ;;  %v5906_v32 = vmul.f32 -1.442695, %v4504_v29  ;;  %v6819_v33 = vpop.f32.mrb[130].mxu0 }
 0xa15   :  { %v4564_v3 = vadd.f32 1.0, %v7550_v2  ;;  %7559 = vpow2.f32 %v5907_v30  ;;  %v4519_v39 = vadd.f32 %v6819_v33, %v9530_v20  ;;  %v4513_v56 = vpop.f32.mrb[131].mxu0  ;;  %v9554_v2 = vpop.permute.xlu0 %4344 }
 0xa16   :  { %7561 = vrcp.f32 %v4565_v31  ;;  %v4514_v59 = vadd.f32 %v4513_v56, %v9534_v23 }
 0xa17   :  { %v7552_v35 = vpop.eup %7551  ;;  %7563 = vrcp.f32 %v4564_v3 }
 0xa18   :  { %v7554_v43 = vpop.eup %7553  ;;  %v4567_v58 = vadd.f32 1.0, %v7552_v35  ;;  %7565 = vpow2.f32 %v5906_v32  ;;  %v6822_v6 = vpop.f32.mrb[132].mxu0 }
 0xa19   :  { %v4566_v37 = vadd.f32 1.0, %v7554_v43  ;;  %7567 = vtanh.f32 %v4519_v39  ;;  %v4529_v12 = vadd.f32 %v6822_v6, %v9543_v36  ;;  %v4523_v1 = vpop.f32.mrb[133].mxu0 }
 0xa1a   :  { %7569 = vrcp.f32 %v4567_v58  ;;  %v4524_v10 = vadd.f32 %v4523_v1, %v9547_v15 }
 0xa1b   :  { %v7556_v7 = vpop.eup %7555  ;;  %7571 = vrcp.f32 %v4566_v37 }
 0xa1c   :  { %v7558_v16 = vpop.eup %7557  ;;  %v4589_v60 = vadd.f32 1.0, %v7556_v7  ;;  %7573 = vtanh.f32 %v4514_v59  ;;  %v6825_v38 = vpop.f32.mrb[134].mxu0 }
 0xa1d   :  { %v4588_v18 = vadd.f32 1.0, %v7558_v16  ;;  %7575 = vtanh.f32 %v4529_v12  ;;  %v4539_v62 = vadd.f32 %v6825_v38, %v9537_v26  ;;  %v4533_v21 = vpop.f32.mrb[135].mxu0 }
 0xa1e   :  { %7577 = vrcp.f32 %v4589_v60  ;;  %v4534_v41 = vadd.f32 %v4533_v21, %v9540_v34 }
 0xa1f   :  { %v7560_v24 = vpop.eup %7559  ;;  %7579 = vrcp.f32 %v4588_v18  ;;  %v5909_v63 = vmul.f32 -1.442695, %v4539_v62 }
 0xa20   :  { %v7562_v9 = vpop.eup %7561  ;;  %v4591_v25 = vadd.f32 1.0, %v7560_v24  ;;  %7581 = vtanh.f32 %v4524_v10  ;;  %v5908_v29 = vmul.f32 -1.442695, %v4534_v41  ;;  %v6828_v0 = vpop.f32.mrb[136].mxu0 }
 0xa21   :  { %v7564_v30 = vpop.eup %7563  ;;  %7583 = vpow2.f32 %v5909_v63  ;;  %v4549_v31 = vadd.f32 %v6828_v0, %v9552_v28  ;;  %v4543_v32 = vpop.f32.mrb[137].mxu0 }
 0xa22   :  { %v7566_v33 = vpop.eup %7565  ;;  %7585 = vrcp.f32 %v4591_v25  ;;  %v4544_v3 = vadd.f32 %v4543_v32, %v9554_v2 }
 0xa23   :  { %v7568_v39 = vpop.eup %7567  ;;  %v4590_v56 = vadd.f32 1.0, %v7566_v33  ;;  %7587 = vpow2.f32 %v5908_v29  ;;  %v5911_v35 = vmul.f32 -1.442695, %v4549_v31 }
 0xa24   :  { %v7570_v43 = vpop.eup %7569  ;;  %v4633_v58 = vmul.f32 %v7568_v39, %v7562_v9  ;;  %v5910_v59 = vmul.f32 -1.442695, %v4544_v3 }
 0xa25   :  { %v7572_v6 = vpop.eup %7571  ;;  %7589 = vrcp.f32 %v4590_v56 }
 0xa26   :  { %v7574_v37 = vpop.eup %7573  ;;  %7591 = vpow2.f32 %v5911_v35 }
 0xa27   :  { %v7576_v12 = vpop.eup %7575  ;;  %v4632_v1 = vmul.f32 %v7574_v37, %v7564_v30  ;;  %7593 = vpow2.f32 %v5910_v59 }
 0xa28   :  { %v7578_v7 = vpop.eup %7577  ;;  %v4635_v16 = vmul.f32 %v7576_v12, %v7570_v43 }
 0xa29   :  { %v7580_v60 = vpop.eup %7579  ;;  %v4629_v10 = vmul.f32 0.0, %v7578_v7 }
 0xa2a   :  { %v7582_v38 = vpop.eup %7581  ;;  %v4628_v18 = vmul.f32 0.0, %v7580_v60 }
 0xa2b   :  { %v7584_v62 = vpop.eup %7583  ;;  %v9558_v21 = vadd.f32 %v4633_v58, %v4629_v10  ;;  %v4634_v41 = vmul.f32 %v7582_v38, %v7572_v6 }
 0xa2c   :  { %v7586_v24 = vpop.eup %7585  ;;  %v9560_v63 = vadd.f32 %v4632_v1, %v4628_v18  ;;  %v4617_v9 = vadd.f32 1.0, %v7584_v62  ;;  %v1991_v62 = vld [vmem:[%s9824_s5] sm:$0xff] }
 0xa2d   :  { %v7588_v25 = vpop.eup %7587  ;;  %v4631_v29 = vmul.f32 0.0, %v7586_v24  ;;  %7595 = vtanh.f32 %v9558_v21  ;;  %v9575_v24 = vadd.f32 %v1991_v62, %v9391_v40  ;;  %v1993_v40 = vld [vmem:[%s9824_s5 + $0x10] sm:$0xff] }
 0xa2e   :  { %7597 = vtanh.f32 %v9560_v63  ;;  %v4616_v0 = vadd.f32 1.0, %v7588_v25  ;;  %v1992_v25 = vld [vmem:[%s9824_s5 + $0x8] sm:$0xff] }
 0xa2f   :  { %v7590_v30 = vpop.eup %7589  ;;  %v9564_v31 = vadd.f32 %v4635_v16, %v4631_v29  ;;  %7599 = vrcp.f32 %v4617_v9  ;;  %v9580_v9 = vld [vmem:[%s9826_s7] sm:$0xf]  ;;  %v9593_v29 = vadd.f32 %v1992_v25, %v9402_v45 }
 0xa30   :  { %v7592_v32 = vpop.eup %7591  ;;  %v4630_v33 = vmul.f32 0.0, %v7590_v30  ;;  %7601 = vrcp.f32 %v4616_v0  ;;  %v9596_v0 = vadd.f32 %v1993_v40, %v9407_v19  ;;  %v1994_v30 = vld [vmem:[%s9824_s5 + $0x18] sm:$0xff]  ;;  %v1996_v19 = vld [vmem:[%s9824_s5 + $0x28] sm:$0xff] }
 0xa31   :  { %v7594_v3 = vpop.eup %7593  ;;  %7603 = vtanh.f32 %v9564_v31  ;;  %v4619_v39 = vadd.f32 1.0, %v7592_v32  ;;  %v1995_v32 = vld [vmem:[%s9824_s5 + $0x20] sm:$0xff] }
 0xa32   :  { %v9567_v56 = vadd.f32 %v4634_v41, %v4630_v33  ;;  %v4618_v35 = vadd.f32 1.0, %v7594_v3  ;;  %v9606_v33 = vadd.f32 %v1994_v30, %v9416_v27  ;;  %v9611_v45 = vadd.f32 %v1995_v32, %v9421_v42  ;;  %v1997_v3 = vld [vmem:[%s9824_s5 + $0x30] sm:$0xff] }
 0xa33   :  { %7605 = vrcp.f32 %v4619_v39  ;;  %v9622_v27 = vadd.f32 %v1996_v19, %v9430_v46  ;;  %v9627_v42 = vadd.f32 %v1997_v3, %v9435_v44  ;;  %v1998_v39 = vld [vmem:[%s9824_s5 + $0x38] sm:$0xff] }
 0xa34   :  { %7607 = vtanh.f32 %v9567_v56  ;;  %v9638_v46 = vadd.f32 %v1998_v39, %v9444_v50 }
 0xa35   :  { %7609 = vrcp.f32 %v4618_v35  ;;  %v1999_v35 = vld [vmem:[%s9824_s5 + $0x40] sm:$0xff] }
 0xa36   :  { %v9643_v44 = vadd.f32 %v1999_v35, %v9449_v4 }
 0xa37   :  { %v7596_v43 = vpop.eup %7595 }
 0xa38   :  { %v7598_v58 = vpop.eup %7597 }
 0xa39   :  { %v7600_v59 = vpop.eup %7599 }
 0xa3a   :  { %v7602_v6 = vpop.eup %7601  ;;  %v4645_v37 = vmul.f32 %v7600_v59, %v7596_v43  ;;  %v2000_v43 = vld [vmem:[%s9824_s5 + $0x48] sm:$0xff]  ;;  %v2002_v59 = vld [vmem:[%s9824_s5 + $0x58] sm:$0xff] }
 0xa3b   :  { %v7604_v12 = vpop.eup %7603  ;;  %v4644_v1 = vmul.f32 %v7602_v6, %v7598_v58  ;;  %v2001_v58 = vld [vmem:[%s9824_s5 + $0x50] sm:$0xff]  ;;  %v9654_v50 = vadd.f32 %v2000_v43, %v9458_v47  ;;  %v2003_v6 = vld [vmem:[%s9824_s5 + $0x60] sm:$0xff]  ;;  %v9670_v47 = vadd.f32 %v2002_v59, %v9472_v49 }
 0xa3c   :  { %v9659_v4 = vadd.f32 %v2001_v58, %v9463_v48  ;;  %v9675_v48 = vadd.f32 %v2003_v6, %v9477_v8 }
 0xa3d   :  { %v7606_v7 = vpop.eup %7605  ;;  %v6991_v16 = vpack.c.bf16 %v4645_v37, %v4644_v1  ;;  %v2004_v37 = vld [vmem:[%s9824_s5 + $0x68] sm:$0xff]  ;;  %v2006_v1 = vld [vmem:[%s9824_s5 + $0x78] sm:$0xff] }
 0xa3e   :  { %v7608_v60 = vpop.eup %7607  ;;  %v4647_v10 = vmul.f32 %v7606_v7, %v7604_v12  ;;  %v2005_v12 = vld [vmem:[%s9824_s5 + $0x70] sm:$0xff]  ;;  %v9686_v49 = vadd.f32 %v2004_v37, %v9486_v54  ;;  %v9699_v7 = vadd.f32 %v2006_v1, %v9500_v53  ;;  %v9709_v54 = vpop.permute.xlu0 %4355  ;;  %s7814_s5 = smov [#allocation3]  }
 0xa3f   :  { %v7610_v38 = vpop.eup %7609  ;;  %6992 = vmatpush3.bf16.msra.mxu1 %v6991_v16  ;;  %v9691_v8 = vadd.f32 %v2005_v12, %v9491_v51  ;;  %s5402_s14 = sshll.u32 %s7814_s5, 4  ;;  %s5403_s14 = int_to_ptr.vmem [resolvable:$true] %s5402_s14 }
 0xa40   :  { %6993 = vmatprep.subr.bf16.mxu1 %v7812_v52  ;;  %v4646_v18 = vmul.f32 %v7610_v38, %v7608_v60  ;;  %s7786_s15 = scalar_lea.vmem %s5403_s14, 192  ;;  %p7791_p1 = scmp.lt.s32.totalorder %s5403_s14, %s5403_s14 }
 0xa41   :  { %p7787_p0 = scmp.ne.s32.totalorder %s5403_s14, %s7786_s15  ;;  %p7792_p2 = scmp.lt.s32.totalorder %s7786_s15, %s7786_s15 }
 0xa42   :  { %v6994_v41 = vpack.c.bf16 %v4647_v10, %v4646_v18 }
 0xa43   :  { %p7793_p3 = por %p7792_p2, %p7791_p1 }
 0xa44   :  { %6995 = vmatpush3.bf16.msra.mxu1 %v6994_v41 }
 0xa45   :  { %6997 = vmatprep.subr.bf16.mxu1 %v6991_v16  ;;  %p7794_p4 = pnand %p7793_p3, %p7787_p0 }
 0xa47   :  { %6838 = vmatmul.mubr.msk.f32.vlgmr.msra.gmra.mrb[134].mxu1 %vm2039_vm1, %v9580_v9 }
 0xa48   :  { %6999 = vmatpush3.bf16.msra.mxu1 %v6991_v16  ;;  %6848 = vmatprep.mubr.msk.f32.mxu1 %vm2039_vm1, %v9575_v24 }
 0xa49   :  { %7001 = vmatprep.subr.bf16.mxu1 %v6994_v41 }
 0xa4c   :  { %7003 = vmatpush3.bf16.msra.mxu1 %v6994_v41 }
 0xa4d   :  { %7018 = vmatprep.subr.bf16.mxu1 %v7812_v52 }
 0xa4f   :  { %6849 = vmatmul.mubr.msk.f32.vlgmr.msra.gmra.mrb[136].mxu1 %vm2039_vm1, %v9593_v29 }
 0xa50   :  { %6851 = vmatprep.mubr.msk.f32.mxu1 %vm2039_vm1, %v9596_v0 }
 0xa53   :  { %6852 = vmatmul.mubr.msk.f32.gmra.mrb[138].mxu1 %vm2039_vm1, %v9606_v33 }
 0xa54   :  { %6854 = vmatprep.mubr.msk.f32.mxu1 %vm2039_vm1, %v9611_v45 }
 0xa57   :  { %6855 = vmatmul.mubr.msk.f32.gmra.mrb[140].mxu1 %vm2039_vm1, %v9622_v27 }
 0xa58   :  { %6857 = vmatprep.mubr.msk.f32.mxu1 %vm2039_vm1, %v9627_v42 }
 0xa5b   :  { %6858 = vmatmul.mubr.msk.f32.gmra.mrb[142].mxu1 %vm2039_vm1, %v9638_v46 }
 0xa5c   :  { %6860 = vmatprep.mubr.msk.f32.mxu1 %vm2039_vm1, %v9643_v44 }
 0xa5f   :  { %6861 = vmatmul.mubr.msk.f32.gmra.mrb[144].mxu1 %vm2039_vm1, %v9654_v50 }
 0xa60   :  { %6863 = vmatprep.mubr.msk.f32.mxu1 %vm2039_vm1, %v9659_v4 }
 0xa63   :  { %6864 = vmatmul.mubr.msk.f32.gmra.mrb[146].mxu1 %vm2039_vm1, %v9670_v47 }
 0xa64   :  { %6866 = vmatprep.mubr.msk.f32.mxu1 %vm2039_vm1, %v9675_v48 }
 0xa67   :  { %6867 = vmatmul.mubr.msk.f32.gmra.mrb[148].mxu1 %vm2039_vm1, %v9686_v49 }
 0xa68   :  { %6869 = vmatprep.mubr.msk.f32.mxu1 %vm2039_vm1, %v9691_v8 }
 0xa6b   :  { %6870 = vmatmul.mubr.msk.f32.gmra.mrb[150].mxu1 %vm2039_vm1, %v9699_v7 }
 0xa6c   :  { %6923 = vmatprep.mubr.msk.f32.mxu1 %vm7813_vm2, %v7811_v22 }
 0xb1a   :  { %v4717_v51 = vpop.f32.mrb[134].mxu1 }
 0xb1b   :  { %v4718_v16 = vadd.f32 %v4717_v51, %v9709_v54  ;;  %v6839_v53 = vpop.f32.mrb[135].mxu1 }
 0xb1d   :  { %4722 = vst.msk [vmem:[#allocation3] sm:$0xf] %vm4721_vm3, %v4718_v16 }
 0xb22   :  { %v6850_v60 = vpop.f32.mrb[136].mxu1 }
 0xb23   :  { %v4843_v10 = vadd.f32 %v6850_v60, %v9510_v61  ;;  %v4837_v38 = vpop.f32.mrb[137].mxu1 }
 0xb24   :  { %v4838_v18 = vadd.f32 %v4837_v38, %v9512_v55 }
 0xb25   :  { %v5930_v62 = vmul.f32 -1.442695, %v4843_v10 }
 0xb26   :  { %v5929_v41 = vmul.f32 -1.442695, %v4838_v18  ;;  %v6853_v25 = vpop.f32.mrb[138].mxu1 }
 0xb27   :  { %7611 = vpow2.f32 %v5930_v62  ;;  %v4853_v22 = vadd.f32 %v6853_v25, %v9518_v13  ;;  %v4847_v40 = vpop.f32.mrb[139].mxu1 }
 0xb28   :  { %7613 = vpow2.f32 %v5929_v41  ;;  %v4848_v30 = vadd.f32 %v4847_v40, %v9520_v5 }
 0xb29   :  { %v5932_v32 = vmul.f32 -1.442695, %v4853_v22 }
 0xb2a   :  { %v5931_v19 = vmul.f32 -1.442695, %v4848_v30  ;;  %v6856_v3 = vpop.f32.mrb[140].mxu1 }
 0xb2b   :  { %7615 = vpow2.f32 %v5932_v32  ;;  %v4863_v39 = vadd.f32 %v6856_v3, %v9514_v57  ;;  %v4857_v35 = vpop.f32.mrb[141].mxu1 }
 0xb2c   :  { %7617 = vpow2.f32 %v5931_v19  ;;  %v4858_v43 = vadd.f32 %v4857_v35, %v9516_v11 }
 0xb2d   :  { %v5934_v58 = vmul.f32 -1.442695, %v4863_v39 }
 0xb2e   :  { %v5933_v59 = vmul.f32 -1.442695, %v4858_v43  ;;  %v6859_v6 = vpop.f32.mrb[142].mxu1 }
 0xb2f   :  { %7619 = vpow2.f32 %v5934_v58  ;;  %v4873_v37 = vadd.f32 %v6859_v6, %v9523_v17  ;;  %v4867_v12 = vpop.f32.mrb[143].mxu1 }
 0xb30   :  { %7621 = vpow2.f32 %v5933_v59  ;;  %v4868_v1 = vadd.f32 %v4867_v12, %v9526_v14 }
 0xb31   :  { %v7612_v51 = vpop.eup %7611  ;;  %v5936_v16 = vmul.f32 -1.442695, %v4873_v37 }
 0xb32   :  { %v7614_v53 = vpop.eup %7613  ;;  %v4929_v60 = vadd.f32 1.0, %v7612_v51  ;;  %v5935_v10 = vmul.f32 -1.442695, %v4868_v1  ;;  %v6862_v38 = vpop.f32.mrb[144].mxu1 }
 0xb33   :  { %v4928_v18 = vadd.f32 1.0, %v7614_v53  ;;  %7623 = vpow2.f32 %v5936_v16  ;;  %v4883_v62 = vadd.f32 %v6862_v38, %v9530_v20  ;;  %v4877_v41 = vpop.f32.mrb[145].mxu1 }
 0xb34   :  { %7625 = vrcp.f32 %v4929_v60  ;;  %v4878_v30 = vadd.f32 %v4877_v41, %v9534_v23 }
 0xb35   :  { %v7616_v25 = vpop.eup %7615  ;;  %7627 = vrcp.f32 %v4928_v18 }
 0xb36   :  { %v7618_v22 = vpop.eup %7617  ;;  %v4931_v40 = vadd.f32 1.0, %v7616_v25  ;;  %7629 = vpow2.f32 %v5935_v10  ;;  %v6865_v32 = vpop.f32.mrb[146].mxu1 }
 0xb37   :  { %v4930_v19 = vadd.f32 1.0, %v7618_v22  ;;  %7631 = vtanh.f32 %v4883_v62  ;;  %v4893_v3 = vadd.f32 %v6865_v32, %v9543_v36  ;;  %v4887_v39 = vpop.f32.mrb[147].mxu1 }
 0xb38   :  { %7633 = vrcp.f32 %v4931_v40  ;;  %v4888_v59 = vadd.f32 %v4887_v39, %v9547_v15 }
 0xb39   :  { %v7620_v35 = vpop.eup %7619  ;;  %7635 = vrcp.f32 %v4930_v19 }
 0xb3a   :  { %v7622_v43 = vpop.eup %7621  ;;  %v4953_v58 = vadd.f32 1.0, %v7620_v35  ;;  %7637 = vtanh.f32 %v4878_v30  ;;  %v6868_v6 = vpop.f32.mrb[148].mxu1 }
 0xb3b   :  { %v4952_v37 = vadd.f32 1.0, %v7622_v43  ;;  %7639 = vtanh.f32 %v4893_v3  ;;  %v4903_v12 = vadd.f32 %v6868_v6, %v9537_v26  ;;  %v4897_v1 = vpop.f32.mrb[149].mxu1 }
 0xb3c   :  { %7641 = vrcp.f32 %v4953_v58  ;;  %v4898_v51 = vadd.f32 %v4897_v1, %v9540_v34 }
 0xb3d   :  { %v7624_v16 = vpop.eup %7623  ;;  %7643 = vrcp.f32 %v4952_v37  ;;  %v5938_v53 = vmul.f32 -1.442695, %v4903_v12 }
 0xb3e   :  { %v7626_v60 = vpop.eup %7625  ;;  %v4955_v10 = vadd.f32 1.0, %v7624_v16  ;;  %7645 = vtanh.f32 %v4888_v59  ;;  %v5937_v38 = vmul.f32 -1.442695, %v4898_v51  ;;  %v6871_v18 = vpop.f32.mrb[150].mxu1 }
 0xb3f   :  { %v7628_v62 = vpop.eup %7627  ;;  %7647 = vpow2.f32 %v5938_v53  ;;  %v4913_v41 = vadd.f32 %v6871_v18, %v9552_v28  ;;  %v4907_v25 = vpop.f32.mrb[151].mxu1 }
 0xb40   :  { %v7630_v22 = vpop.eup %7629  ;;  %7649 = vrcp.f32 %v4955_v10  ;;  %v4908_v40 = vadd.f32 %v4907_v25, %v9554_v2 }
 0xb41   :  { %v7632_v30 = vpop.eup %7631  ;;  %v4954_v32 = vadd.f32 1.0, %v7630_v22  ;;  %7651 = vpow2.f32 %v5937_v38  ;;  %v5940_v19 = vmul.f32 -1.442695, %v4913_v41 }
 0xb42   :  { %v7634_v3 = vpop.eup %7633  ;;  %v4997_v39 = vmul.f32 %v7632_v30, %v7626_v60  ;;  %v5939_v35 = vmul.f32 -1.442695, %v4908_v40 }
 0xb43   :  { %v7636_v43 = vpop.eup %7635  ;;  %7653 = vrcp.f32 %v4954_v32 }
 0xb44   :  { %v7638_v58 = vpop.eup %7637  ;;  %7655 = vpow2.f32 %v5940_v19 }
 0xb45   :  { %v7640_v59 = vpop.eup %7639  ;;  %v4996_v6 = vmul.f32 %v7638_v58, %v7628_v62  ;;  %7657 = vpow2.f32 %v5939_v35 }
 0xb46   :  { %v7642_v37 = vpop.eup %7641  ;;  %v4999_v12 = vmul.f32 %v7640_v59, %v7634_v3 }
 0xb47   :  { %v7644_v1 = vpop.eup %7643  ;;  %v4993_v51 = vmul.f32 %v7642_v37, %v9558_v21 }
 0xb48   :  { %v7646_v16 = vpop.eup %7645  ;;  %v4992_v53 = vmul.f32 %v7644_v1, %v9560_v63 }
 0xb49   :  { %v7648_v10 = vpop.eup %7647  ;;  %v9731_v38 = vadd.f32 %v4997_v39, %v4993_v51  ;;  %v4998_v60 = vmul.f32 %v7646_v16, %v7636_v43 }
 0xb4a   :  { %v7650_v18 = vpop.eup %7649  ;;  %v9733_v41 = vadd.f32 %v4996_v6, %v4992_v53  ;;  %v4981_v25 = vadd.f32 1.0, %v7648_v10 }
 0xb4b   :  { %v7652_v22 = vpop.eup %7651  ;;  %v4995_v62 = vmul.f32 %v7650_v18, %v9564_v31  ;;  %7659 = vtanh.f32 %v9731_v38 }
 0xb4c   :  { %7661 = vtanh.f32 %v9733_v41  ;;  %v4980_v40 = vadd.f32 1.0, %v7652_v22 }
 0xb4d   :  { %v7654_v21 = vpop.eup %7653  ;;  %v9738_v30 = vadd.f32 %v4999_v12, %v4995_v62  ;;  %7663 = vrcp.f32 %v4981_v25 }
 0xb4e   :  { %v7656_v63 = vpop.eup %7655  ;;  %v4994_v32 = vmul.f32 %v7654_v21, %v9567_v56  ;;  %7665 = vrcp.f32 %v4980_v40 }
 0xb4f   :  { %v7658_v19 = vpop.eup %7657  ;;  %7667 = vtanh.f32 %v9738_v30  ;;  %v4983_v3 = vadd.f32 1.0, %v7656_v63 }
 0xb50   :  { %v9742_v39 = vadd.f32 %v4998_v60, %v4994_v32  ;;  %v4982_v31 = vadd.f32 1.0, %v7658_v19 }
 0xb51   :  { %7669 = vrcp.f32 %v4983_v3 }
 0xb52   :  { %7671 = vtanh.f32 %v9742_v39 }
 0xb53   :  { %7673 = vrcp.f32 %v4982_v31 }
 0xb55   :  { %v7660_v35 = vpop.eup %7659 }
 0xb56   :  { %v7662_v43 = vpop.eup %7661 }
 0xb57   :  { %v7664_v58 = vpop.eup %7663 }
 0xb58   :  { %v7666_v59 = vpop.eup %7665  ;;  %v5009_v6 = vmul.f32 %v7664_v58, %v7660_v35 }
 0xb59   :  { %v7668_v37 = vpop.eup %7667  ;;  %v5008_v12 = vmul.f32 %v7666_v59, %v7662_v43 }
 0xb5b   :  { %v7670_v56 = vpop.eup %7669  ;;  %v7005_v1 = vpack.c.bf16 %v5009_v6, %v5008_v12 }
 0xb5c   :  { %v7672_v51 = vpop.eup %7671  ;;  %v5011_v16 = vmul.f32 %v7670_v56, %v7668_v37 }
 0xb5d   :  { %v7674_v53 = vpop.eup %7673  ;;  %7006 = vmatpush3.bf16.msra.mxu0 %v7005_v1 }
 0xb5e   :  { %7007 = vmatprep.subr.bf16.mxu0 %v7812_v52  ;;  %v5010_v10 = vmul.f32 %v7674_v53, %v7672_v51 }
 0xb60   :  { %v7008_v60 = vpack.c.bf16 %v5011_v16, %v5010_v10 }
 0xb62   :  { %7009 = vmatpush3.bf16.msra.mxu0 %v7008_v60 }
 0xb63   :  { %7011 = vmatprep.subr.bf16.mxu0 %v7005_v1 }
 0xb65   :  { %6881 = vmatmul.mubr.msk.f32.vlgmr.msra.gmra.mrb[138].mxu0 %vm2039_vm1, %v9580_v9 }
 0xb66   :  { %7013 = vmatpush3.bf16.msra.mxu0 %v7005_v1  ;;  %6891 = vmatprep.mubr.msk.f32.mxu0 %vm2039_vm1, %v9575_v24 }
 0xb67   :  { %7015 = vmatprep.subr.bf16.mxu0 %v7008_v60 }
 0xb6a   :  { %7017 = vmatpush3.bf16.msra.mxu0 %v7008_v60 }
 0xb6d   :  { %6892 = vmatmul.mubr.msk.f32.vlgmr.msra.gmra.mrb[140].mxu0 %vm2039_vm1, %v9593_v29 }
 0xb6e   :  { %6894 = vmatprep.mubr.msk.f32.mxu0 %vm2039_vm1, %v9596_v0 }
 0xb71   :  { %6895 = vmatmul.mubr.msk.f32.gmra.mrb[142].mxu0 %vm2039_vm1, %v9606_v33 }
 0xb72   :  { %6897 = vmatprep.mubr.msk.f32.mxu0 %vm2039_vm1, %v9611_v45 }
 0xb75   :  { %6898 = vmatmul.mubr.msk.f32.gmra.mrb[144].mxu0 %vm2039_vm1, %v9622_v27 }
 0xb76   :  { %6900 = vmatprep.mubr.msk.f32.mxu0 %vm2039_vm1, %v9627_v42 }
 0xb79   :  { %6901 = vmatmul.mubr.msk.f32.gmra.mrb[146].mxu0 %vm2039_vm1, %v9638_v46 }
 0xb7a   :  { %6903 = vmatprep.mubr.msk.f32.mxu0 %vm2039_vm1, %v9643_v44 }
 0xb7d   :  { %6904 = vmatmul.mubr.msk.f32.gmra.mrb[148].mxu0 %vm2039_vm1, %v9654_v50 }
 0xb7e   :  { %6906 = vmatprep.mubr.msk.f32.mxu0 %vm2039_vm1, %v9659_v4 }
 0xb81   :  { %6907 = vmatmul.mubr.msk.f32.gmra.mrb[150].mxu0 %vm2039_vm1, %v9670_v47 }
 0xb82   :  { %6909 = vmatprep.mubr.msk.f32.mxu0 %vm2039_vm1, %v9675_v48 }
 0xb85   :  { %6910 = vmatmul.mubr.msk.f32.gmra.mrb[152].mxu0 %vm2039_vm1, %v9686_v49 }
 0xb86   :  { %6912 = vmatprep.mubr.msk.f32.mxu0 %vm2039_vm1, %v9691_v8 }
 0xb89   :  { %6913 = vmatmul.mubr.msk.f32.gmra.mrb[154].mxu0 %vm2039_vm1, %v9699_v7 }
 0xc38   :  { %v5078_v24 = vpop.f32.mrb[138].mxu0 }
 0xc39   :  { %v5079_v29 = vadd.f32 %v5078_v24, %v9709_v54  ;;  %v6882_v0 = vpop.f32.mrb[139].mxu0 }
 0xc3b   :  { %5083 = vst.msk [vmem:[#allocation3 + $0x4] sm:$0xf] %vm4721_vm3, %v5079_v29 }
 0xc40   :  { %v6893_v33 = vpop.f32.mrb[140].mxu0 }
 0xc41   :  { %v5156_v45 = vadd.f32 %v6893_v33, %v9510_v61  ;;  %v5150_v27 = vpop.f32.mrb[141].mxu0 }
 0xc42   :  { %v5151_v42 = vadd.f32 %v5150_v27, %v9512_v55 }
 0xc43   :  { %v5959_v46 = vmul.f32 -1.442695, %v5156_v45 }
 0xc44   :  { %v5958_v44 = vmul.f32 -1.442695, %v5151_v42  ;;  %v6896_v50 = vpop.f32.mrb[142].mxu0 }
 0xc45   :  { %7675 = vpow2.f32 %v5959_v46  ;;  %v5166_v4 = vadd.f32 %v6896_v50, %v9518_v13  ;;  %v5160_v47 = vpop.f32.mrb[143].mxu0 }
 0xc46   :  { %7677 = vpow2.f32 %v5958_v44  ;;  %v5161_v48 = vadd.f32 %v5160_v47, %v9520_v5 }
 0xc47   :  { %v5961_v49 = vmul.f32 -1.442695, %v5166_v4 }
 0xc48   :  { %v5960_v8 = vmul.f32 -1.442695, %v5161_v48  ;;  %v6899_v7 = vpop.f32.mrb[144].mxu0 }
 0xc49   :  { %7679 = vpow2.f32 %v5961_v49  ;;  %v5176_v18 = vadd.f32 %v6899_v7, %v9514_v57  ;;  %v5170_v61 = vpop.f32.mrb[145].mxu0 }
 0xc4a   :  { %7681 = vpow2.f32 %v5960_v8  ;;  %v5171_v55 = vadd.f32 %v5170_v61, %v9516_v11 }
 0xc4b   :  { %v5963_v25 = vmul.f32 -1.442695, %v5176_v18 }
 0xc4c   :  { %v5962_v22 = vmul.f32 -1.442695, %v5171_v55  ;;  %v6902_v62 = vpop.f32.mrb[146].mxu0 }
 0xc4d   :  { %7683 = vpow2.f32 %v5963_v25  ;;  %v5186_v13 = vadd.f32 %v6902_v62, %v9523_v17  ;;  %v5180_v40 = vpop.f32.mrb[147].mxu0 }
 0xc4e   :  { %7685 = vpow2.f32 %v5962_v22  ;;  %v5181_v5 = vadd.f32 %v5180_v40, %v9526_v14 }
 0xc4f   :  { %v7676_v21 = vpop.eup %7675  ;;  %v5965_v63 = vmul.f32 -1.442695, %v5186_v13 }
 0xc50   :  { %v7678_v32 = vpop.eup %7677  ;;  %v5242_v19 = vadd.f32 1.0, %v7676_v21  ;;  %v5964_v3 = vmul.f32 -1.442695, %v5181_v5  ;;  %v6905_v57 = vpop.f32.mrb[148].mxu0 }
 0xc51   :  { %v5241_v31 = vadd.f32 1.0, %v7678_v32  ;;  %7687 = vpow2.f32 %v5965_v63  ;;  %v5196_v11 = vadd.f32 %v6905_v57, %v9530_v20  ;;  %v5190_v35 = vpop.f32.mrb[149].mxu0 }
 0xc52   :  { %7689 = vrcp.f32 %v5242_v19  ;;  %v5191_v59 = vadd.f32 %v5190_v35, %v9534_v23 }
 0xc53   :  { %v7680_v43 = vpop.eup %7679  ;;  %7691 = vrcp.f32 %v5241_v31 }
 0xc54   :  { %v7682_v58 = vpop.eup %7681  ;;  %v5244_v17 = vadd.f32 1.0, %v7680_v43  ;;  %7693 = vpow2.f32 %v5964_v3  ;;  %v6908_v14 = vpop.f32.mrb[150].mxu0 }
 0xc55   :  { %v5243_v6 = vadd.f32 1.0, %v7682_v58  ;;  %7695 = vtanh.f32 %v5196_v11  ;;  %v5206_v37 = vadd.f32 %v6908_v14, %v9543_v36  ;;  %v5200_v12 = vpop.f32.mrb[151].mxu0 }
 0xc56   :  { %7697 = vrcp.f32 %v5244_v17  ;;  %v5201_v51 = vadd.f32 %v5200_v12, %v9547_v15 }
 0xc57   :  { %v7684_v56 = vpop.eup %7683  ;;  %7699 = vrcp.f32 %v5243_v6 }
 0xc58   :  { %v7686_v1 = vpop.eup %7685  ;;  %v5266_v20 = vadd.f32 1.0, %v7684_v56  ;;  %7701 = vtanh.f32 %v5191_v59  ;;  %v6911_v16 = vpop.f32.mrb[152].mxu0 }
 0xc59   :  { %v5265_v53 = vadd.f32 1.0, %v7686_v1  ;;  %7703 = vtanh.f32 %v5206_v37  ;;  %v5216_v10 = vadd.f32 %v6911_v16, %v9537_v26  ;;  %v5210_v23 = vpop.f32.mrb[153].mxu0 }
 0xc5a   :  { %7705 = vrcp.f32 %v5266_v20  ;;  %v5211_v60 = vadd.f32 %v5210_v23, %v9540_v34 }
 0xc5b   :  { %v7688_v24 = vpop.eup %7687  ;;  %7707 = vrcp.f32 %v5265_v53  ;;  %v5967_v36 = vmul.f32 -1.442695, %v5216_v10 }
 0xc5c   :  { %v7690_v29 = vpop.eup %7689  ;;  %v5268_v0 = vadd.f32 1.0, %v7688_v24  ;;  %7709 = vtanh.f32 %v5201_v51  ;;  %v5966_v33 = vmul.f32 -1.442695, %v5211_v60  ;;  %v6914_v45 = vpop.f32.mrb[154].mxu0 }
 0xc5d   :  { %v7692_v27 = vpop.eup %7691  ;;  %7711 = vpow2.f32 %v5967_v36  ;;  %v5226_v15 = vadd.f32 %v6914_v45, %v9552_v28  ;;  %v5220_v42 = vpop.f32.mrb[155].mxu0 }
 0xc5e   :  { %v7694_v46 = vpop.eup %7693  ;;  %7713 = vrcp.f32 %v5268_v0  ;;  %v5221_v26 = vadd.f32 %v5220_v42, %v9554_v2 }
 0xc5f   :  { %v7696_v44 = vpop.eup %7695  ;;  %v5267_v50 = vadd.f32 1.0, %v7694_v46  ;;  %7715 = vpow2.f32 %v5966_v33  ;;  %v5969_v34 = vmul.f32 -1.442695, %v5226_v15 }
 0xc60   :  { %v7698_v4 = vpop.eup %7697  ;;  %v5310_v47 = vmul.f32 %v7696_v44, %v7690_v29  ;;  %v5968_v48 = vmul.f32 -1.442695, %v5221_v26 }
 0xc61   :  { %v7700_v49 = vpop.eup %7699  ;;  %7717 = vrcp.f32 %v5267_v50 }
 0xc62   :  { %v7702_v8 = vpop.eup %7701  ;;  %7719 = vpow2.f32 %v5969_v34 }
 0xc63   :  { %v7704_v7 = vpop.eup %7703  ;;  %v5309_v18 = vmul.f32 %v7702_v8, %v7692_v27  ;;  %7721 = vpow2.f32 %v5968_v48 }
 0xc64   :  { %v7706_v28 = vpop.eup %7705  ;;  %v5312_v61 = vmul.f32 %v7704_v7, %v7698_v4 }
 0xc65   :  { %v7708_v55 = vpop.eup %7707  ;;  %v5306_v25 = vmul.f32 %v7706_v28, %v9731_v38 }
 0xc66   :  { %v7710_v2 = vpop.eup %7709  ;;  %v5305_v22 = vmul.f32 %v7708_v55, %v9733_v41 }
 0xc67   :  { %v7712_v62 = vpop.eup %7711  ;;  %v5314_v13 = vadd.f32 %v5310_v47, %v5306_v25  ;;  %v5311_v40 = vmul.f32 %v7710_v2, %v7700_v49 }
 0xc68   :  { %v7714_v5 = vpop.eup %7713  ;;  %v5313_v21 = vadd.f32 %v5309_v18, %v5305_v22  ;;  %v5294_v63 = vadd.f32 1.0, %v7712_v62 }
 0xc69   :  { %v7716_v32 = vpop.eup %7715  ;;  %v5308_v19 = vmul.f32 %v7714_v5, %v9738_v30  ;;  %7723 = vtanh.f32 %v5314_v13 }
 0xc6a   :  { %7725 = vtanh.f32 %v5313_v21  ;;  %v5293_v3 = vadd.f32 1.0, %v7716_v32 }
 0xc6b   :  { %v7718_v57 = vpop.eup %7717  ;;  %v5316_v31 = vadd.f32 %v5312_v61, %v5308_v19  ;;  %7727 = vrcp.f32 %v5294_v63 }
 0xc6c   :  { %v7720_v11 = vpop.eup %7719  ;;  %v5307_v38 = vmul.f32 %v7718_v57, %v9742_v39  ;;  %7729 = vrcp.f32 %v5293_v3 }
 0xc6d   :  { %v7722_v41 = vpop.eup %7721  ;;  %7731 = vtanh.f32 %v5316_v31  ;;  %v5296_v35 = vadd.f32 1.0, %v7720_v11 }
 0xc6e   :  { %v5315_v43 = vadd.f32 %v5311_v40, %v5307_v38  ;;  %v5295_v58 = vadd.f32 1.0, %v7722_v41 }
 0xc6f   :  { %7733 = vrcp.f32 %v5296_v35 }
 0xc70   :  { %7735 = vtanh.f32 %v5315_v43 }
 0xc71   :  { %7737 = vrcp.f32 %v5295_v58 }
 0xc73   :  { %v7724_v17 = vpop.eup %7723 }
 0xc74   :  { %v7726_v30 = vpop.eup %7725 }
 0xc75   :  { %v7728_v59 = vpop.eup %7727 }
 0xc76   :  { %v7730_v14 = vpop.eup %7729  ;;  %v5322_v6 = vmul.f32 %v7728_v59, %v7724_v17 }
 0xc77   :  { %v7732_v37 = vpop.eup %7731  ;;  %v5321_v12 = vmul.f32 %v7730_v14, %v7726_v30 }
 0xc79   :  { %v7734_v56 = vpop.eup %7733  ;;  %v7019_v1 = vpack.c.bf16 %v5322_v6, %v5321_v12 }
 0xc7a   :  { %v7736_v20 = vpop.eup %7735  ;;  %v5324_v39 = vmul.f32 %v7734_v56, %v7732_v37 }
 0xc7b   :  { %v7738_v51 = vpop.eup %7737  ;;  %7020 = vmatpush3.bf16.msra.mxu1 %v7019_v1 }
 0xc7c   :  { %7021 = vmatprep.subr.bf16.mxu1 %v7812_v52  ;;  %v5323_v16 = vmul.f32 %v7738_v51, %v7736_v20 }
 0xc7e   :  { %v7022_v53 = vpack.c.bf16 %v5324_v39, %v5323_v16 }
 0xc80   :  { %7023 = vmatpush3.bf16.msra.mxu1 %v7022_v53 }
 0xc83   :  { %6924 = vmatmul.mubr.msk.f32.vlgmr.msra.gmra.mrb[152].mxu1 %vm2039_vm1, %v9580_v9 }
 0xd56   :  { %v5391_v10 = vpop.f32.mrb[152].mxu1 }
 0xd57   :  { %v5392_v23 = vadd.f32 %v5391_v10, %v9709_v54  ;;  %v6925_v60 = vpop.f32.mrb[153].mxu1 }
 0xd59   :  { %5396 = vst.msk [vmem:[#allocation3 + $0x8] sm:$0xf] %vm4721_vm3, %v5392_v23 }
 0xd5a   :  { %7797 = shalt.err (!%p7794_p4)
}
 0xd5b   :  { %s7798_s2 = scalar_lea.hbm %s9828_s9, 192 }
 0xd5c   :  { %p7799_p5 = scmp.ne.s32.totalorder %s9828_s9, %s7798_s2  ;;  %p7802_p6 = scmp.lt.u32.totalorder %s7798_s2, %s9828_s9 }
 0xd5e   :  { %p7804_p7 = pnand %p7802_p6, %p7799_p5 }
 0xd60   :  { %7807 = shalt.err (!%p7804_p7)
}
 0xd61   :  { %s7815_s20 = smov 64   ;;  %s7816_s21 = smov 4  }
 0xd62   :  { %5408 = dma.vmem_to_hbm [thread:$0]  %s5403_s14, 192, %s9828_s9, [#allocation4], %s7815_s20, %s7815_s20, %s7816_s21  }
 0xd63   :  { %7808 = dma.done.wait [#allocation4], 192  }
 0xd64   :  { %7809 = vsyncadd [#allocation4], 4294967104 }
 0xd65   :  { %5412 = vsyncpa [#allocation4], 1 }

</bundles_post_ra>
